<compile_context>
chip_gen: v6e
topology: v6e:2x2x1
jax: 0.10.0
libtpu: 0.0.40
codegen_flags: <defaults>
</compile_context>

<pallas_src>
import functools

import jax
import jax.numpy as jnp
from jax.experimental import pallas as pl
from jax.experimental.pallas import tpu as pltpu

# Scoped-VMEM budget: worst-case working set of the tiles below is ~25 MiB,
# 40 MiB gives headroom and is safe on v5e/v6e (128 MiB) and v7x (64 MiB).
_VMEM_LIMIT = 40 * 1024 * 1024


def _round_up(x, m):
    return ((x + m - 1) // m) * m


# ----------------------------------------------------------------------------
# Pallas kernels
# ----------------------------------------------------------------------------

def _matmul_kernel(x_ref, w_ref, b_ref, o_ref, acc_ref, *, relu):
    """bf16 MXU matmul, f32 accumulator, fused bias + optional ReLU epilogue."""
    k = pl.program_id(2)

    @pl.when(k == 0)
    def _():
        acc_ref[...] = jnp.zeros_like(acc_ref)

    acc_ref[...] += jnp.dot(x_ref[...], w_ref[...],
                            preferred_element_type=jnp.float32)

    @pl.when(k == pl.num_programs(2) - 1)
    def _():
        y = acc_ref[...] + b_ref[...]          # f32 epilogue (v5e-safe)
        if relu:
            y = jnp.maximum(y, 0.0)
        o_ref[...] = y.astype(o_ref.dtype)


def _scale_shift_kernel(x_ref, s_ref, t_ref, o_ref, *, relu):
    y = x_ref[...] * s_ref[...] + t_ref[...]
    if relu:
        y = jnp.maximum(y, 0.0)
    o_ref[...] = y


def _softmax_kernel(x_ref, o_ref):
    x = x_ref[...]
    m = jnp.max(x, axis=-1, keepdims=True)
    e = jnp.exp(x - m)
    o_ref[...] = e / jnp.sum(e, axis=-1, keepdims=True)


# ----------------------------------------------------------------------------
# Tiling policy + pallas_call wrappers
# ----------------------------------------------------------------------------

def _matmul_tiles(M, K, N):
    """Pick (BM, BK, BN, k_pad) for an (M,K)x(K,N) matmul.

    BK divides K exactly whenever possible (all K in this network have a
    128-multiple divisor <= 2304), BN is the full N (<=512) or 512, and BM is a
    single block for small M or 512..2048 depending on BK's VMEM footprint.
    """
    if K <= 2304:
        bk, k_pad = K, 0
    else:
        bk = next((c for c in range(2304, 127, -128) if K % c == 0), None)
        if bk is None:                      # not hit in this network
            bk = 2048
            k_pad = (-K) % bk
        else:
            k_pad = 0

    if N <= 512:
        bn = N
    elif N % 512 == 0:
        bn = 512
    else:
        bn = N                              # not hit in this network

    if M <= 1360:
        bm = _round_up(M, 8)                # single M block (34x34 maps & smaller)
    elif bk <= 576:
        bm = 2048
    elif bk <= 1152:
        bm = 1024
    else:
        bm = 512
    return bm, bk, bn, k_pad


@functools.partial(jax.jit, static_argnames=("relu", "out_dtype"))
def matmul_bias_act(x, w, b, relu=False, out_dtype=jnp.float32):
    """y = relu?(x @ w + b).  x:(M,K)  w:(K,N)  b:(N,).  bf16 MXU, f32 acc."""
    M, K = x.shape
    N = w.shape[1]
    bm, bk, bn, k_pad = _matmul_tiles(M, K, N)

    xp = x.astype(jnp.bfloat16)
    wp = w.astype(jnp.bfloat16)
    if k_pad:
        xp = jnp.pad(xp, ((0, 0), (0, k_pad)))
        wp = jnp.pad(wp, ((0, k_pad), (0, 0)))
    m_pad = (-M) % bm
    if m_pad:
        xp = jnp.pad(xp, ((0, m_pad), (0, 0)))
    Mp, Kp = M + m_pad, K + k_pad
    bias = b.reshape(1, N).astype(jnp.float32)

    out = pl.pallas_call(
        functools.partial(_matmul_kernel, relu=relu),
        out_shape=jax.ShapeDtypeStruct((Mp, N), out_dtype),
        grid_spec=pltpu.PrefetchScalarGridSpec(
            num_scalar_prefetch=0,
            grid=(Mp // bm, N // bn, Kp // bk),
            in_specs=[
                pl.BlockSpec((bm, bk), lambda i, j, k: (i, k)),
                pl.BlockSpec((bk, bn), lambda i, j, k: (k, j)),
                pl.BlockSpec((1, bn), lambda i, j, k: (0, j)),
            ],
            out_specs=pl.BlockSpec((bm, bn), lambda i, j, k: (i, j)),
            scratch_shapes=[pltpu.VMEM((bm, bn), jnp.float32)],
        ),
        compiler_params=pltpu.CompilerParams(
            dimension_semantics=("parallel", "parallel", "arbitrary"),
            vmem_limit_bytes=_VMEM_LIMIT),
    )(xp, wp, bias)
    return out[:M] if m_pad else out


@functools.partial(jax.jit, static_argnames=("relu",))
def scale_shift_act(x, scale, shift, relu=True):
    """y = relu?(x * scale + shift), per-column scale/shift.  x:(M,C) f32."""
    M, C = x.shape
    br = _round_up(M, 8) if M <= 512 else 512
    m_pad = (-M) % br
    xp = jnp.pad(x, ((0, m_pad), (0, 0))) if m_pad else x
    Mp = M + m_pad
    out = pl.pallas_call(
        functools.partial(_scale_shift_kernel, relu=relu),
        out_shape=jax.ShapeDtypeStruct((Mp, C), jnp.float32),
        grid=(Mp // br,),
        in_specs=[
            pl.BlockSpec((br, C), lambda i: (i, 0)),
            pl.BlockSpec((1, C), lambda i: (0, 0)),
            pl.BlockSpec((1, C), lambda i: (0, 0)),
        ],
        out_specs=pl.BlockSpec((br, C), lambda i: (i, 0)),
        compiler_params=pltpu.CompilerParams(
            dimension_semantics=("parallel",),
            vmem_limit_bytes=_VMEM_LIMIT),
    )(xp, scale.reshape(1, C).astype(jnp.float32),
      shift.reshape(1, C).astype(jnp.float32))
    return out[:M] if m_pad else out


@jax.jit
def softmax_rows(x):
    """Row-wise softmax, x:(R,C) with C == 81."""
    R, C = x.shape
    br = 2048 if R > 2048 else _round_up(R, 8)
    r_pad = (-R) % br
    xp = jnp.pad(x, ((0, r_pad), (0, 0))) if r_pad else x
    Rp = R + r_pad
    out = pl.pallas_call(
        _softmax_kernel,
        out_shape=jax.ShapeDtypeStruct((Rp, C), jnp.float32),
        grid=(Rp // br,),
        in_specs=[pl.BlockSpec((br, C), lambda i: (i, 0))],
        out_specs=pl.BlockSpec((br, C), lambda i: (i, 0)),
        compiler_params=pltpu.CompilerParams(
            dimension_semantics=("parallel",),
            vmem_limit_bytes=_VMEM_LIMIT),
    )(xp)
    return out[:R] if r_pad else out


# ----------------------------------------------------------------------------
# Conv / BN / pooling / resize built on the Pallas kernels
# ----------------------------------------------------------------------------

def _im2col(x, kh, kw, stride, padding, dilation):
    n, h, w, c = x.shape
    if padding:
        x = jnp.pad(x, ((0, 0), (padding, padding), (padding, padding), (0, 0)))
    hp, wp = h + 2 * padding, w + 2 * padding
    ho = (hp - dilation * (kh - 1) - 1) // stride + 1
    wo = (wp - dilation * (kw - 1) - 1) // stride + 1
    if kh == 1 and kw == 1 and stride == 1:
        return x.reshape(n * ho * wo, c), (n, ho, wo)
    cols = []
    for ih in range(kh):
        h0 = ih * dilation
        for iw in range(kw):
            w0 = iw * dilation
            cols.append(x[:, h0:h0 + (ho - 1) * stride + 1:stride,
                          w0:w0 + (wo - 1) * stride + 1:stride, :])
    cols = jnp.concatenate(cols, axis=-1)            # (N,Ho,Wo,kh*kw*C)
    return cols.reshape(n * ho * wo, kh * kw * c), (n, ho, wo)


def conv2d(x, w, b, stride=1, padding=0, dilation=1, relu=False,
           out_dtype=jnp.float32):
    """x: NHWC.  w: PyTorch layout (Cout, Cin, KH, KW)."""
    cout, cin, kh, kw = w.shape
    x = x.astype(jnp.bfloat16)                       # bf16 activations for the MXU
    cols, (n, ho, wo) = _im2col(x, kh, kw, stride, padding, dilation)
    w2 = jnp.transpose(w, (2, 3, 1, 0)).reshape(kh * kw * cin, cout)
    bias = b if b is not None else jnp.zeros((cout,), jnp.float32)
    y = matmul_bias_act(cols, w2, bias, relu=relu, out_dtype=out_dtype)
    return y.reshape(n, ho, wo, cout)


def head_conv(x, lp, cp):
    """Fused loc+conf 3x3 head: one im2col + one matmul per scale (N = 24+486)."""
    nl, nc = lp["w"].shape[0], cp["w"].shape[0]
    x = x.astype(jnp.bfloat16)
    cols, (n, ho, wo) = _im2col(x, 3, 3, 1, 1, 1)
    wl = jnp.transpose(lp["w"], (2, 3, 1, 0)).reshape(-1, nl)
    wc = jnp.transpose(cp["w"], (2, 3, 1, 0)).reshape(-1, nc)
    w = jnp.concatenate([wl, wc], axis=1)
    b = jnp.concatenate([lp["b"], cp["b"]])
    y = matmul_bias_act(cols, w, b, relu=False, out_dtype=jnp.float32)
    y = y.reshape(n, ho, wo, nl + nc)
    return y[..., :nl], y[..., nl:]


def batchnorm(x, gamma, beta, relu, eps=1e-5):
    """Train-mode BatchNorm2d (batch statistics over N,H,W), optional ReLU."""
    n, h, w, c = x.shape
    x2 = x.reshape(n * h * w, c).astype(jnp.float32)
    mean = jnp.mean(x2, axis=0)
    var = jnp.var(x2, axis=0)          # biased, as PyTorch uses for normalization
    inv = gamma * jax.lax.rsqrt(var + eps)
    y = scale_shift_act(x2, inv, beta - mean * inv, relu=relu)
    return y.reshape(n, h, w, c)


def cbr(x, p, stride=1, padding=0, dilation=1, relu=True):
    """Conv_Bn_Relu (bias=False conv -> BN(train) -> ReLU)."""
    y = conv2d(x, p["conv"]["w"], None, stride=stride, padding=padding,
               dilation=dilation, relu=False)
    return batchnorm(y, p["gamma"], p["beta"], relu=relu)


def maxpool2x2(x):
    n, h, w, c = x.shape            # all call sites have even H,W (ceil==floor)
    return x.reshape(n, h // 2, 2, w // 2, 2, c).max(axis=(2, 4))


def maxpool3x3_s1_p1(x):
    neg = jnp.finfo(x.dtype).min
    n, h, w, c = x.shape
    xp = jnp.pad(x, ((0, 0), (1, 1), (1, 1), (0, 0)), constant_values=neg)
    out = None
    for dh in range(3):
        for dw in range(3):
            s = xp[:, dh:dh + h, dw:dw + w, :]
            out = s if out is None else jnp.maximum(out, s)
    return out


def upsample_nearest(x, oh, ow):
    """PyTorch F.interpolate(mode='nearest'): src = floor(dst * in/out)."""
    n, h, w, c = x.shape
    hi = (jnp.arange(oh) * h) // oh
    wi = (jnp.arange(ow) * w) // ow
    return x[:, hi][:, :, wi]


# ----------------------------------------------------------------------------
# Parameter construction (deterministic, synthetic)
# ----------------------------------------------------------------------------

class Init:
    def __init__(self, key):
        self.key = key

    def take(self):
        self.key, k = jax.random.split(self.key)
        return k


def conv_params(init, cin, cout, k, bias=True):
    kh, kw = (k, k) if isinstance(k, int) else k
    fan_in = cin * kh * kw
    w = jax.random.normal(init.take(), (cout, cin, kh, kw), jnp.float32)
    w = w * (2.0 / fan_in) ** 0.5
    b = jnp.zeros((cout,), jnp.float32) if bias else None
    return {"w": w, "b": b}


def cbr_params(init, cin, cout, k):
    return {"conv": conv_params(init, cin, cout, k, bias=False),
            "gamma": jnp.ones((cout,), jnp.float32),
            "beta": jnp.zeros((cout,), jnp.float32)}


def vgg_params(init):
    cfg = [(3, 64), (64, 64), (64, 128), (128, 128), (128, 256), (256, 256),
           (256, 256), (256, 512), (512, 512), (512, 512), (512, 512),
           (512, 512), (512, 512)]
    return {"convs": [conv_params(init, a, b, 3) for a, b in cfg],
            "conv6": conv_params(init, 512, 1024, 3),
            "conv7": conv_params(init, 1024, 1024, 1)}


def tum_params(init, in1):
    planes = 256
    layers = [cbr_params(init, in1, planes, 3)] + \
             [cbr_params(init, planes, planes, 3) for _ in range(4)]
    toplayer = cbr_params(init, planes, planes, 1)
    latlayer = [cbr_params(init, planes, planes, 3) for _ in range(4)] + \
               [cbr_params(init, in1, planes, 3)]
    smooth = [cbr_params(init, planes, planes, 1) for _ in range(5)]
    return {"layers": layers, "toplayer": toplayer,
            "latlayer": latlayer, "smooth": smooth}


def build_params(seed=42):
    init = Init(jax.random.PRNGKey(seed))
    p = {"vgg": vgg_params(init),
         "reduce": cbr_params(init, 512, 256, 3),
         "up_reduce": cbr_params(init, 1024, 512, 1),
         # nn.ModuleList([module] * 8) shares one set of weights
         "leach": cbr_params(init, 512 + 256, 128, (1, 1)),
         "tum": [tum_params(init, 128 if i == 0 else 128 + 256)
                 for i in range(8)],
         "norm_gamma": jnp.ones((2048,), jnp.float32),
         "norm_beta": jnp.zeros((2048,), jnp.float32),
         "loc": [conv_params(init, 2048, 4 * 6, 3) for _ in range(6)],
         "conf": [conv_params(init, 2048, 81 * 6, 3) for _ in range(6)]}
    return p


# ----------------------------------------------------------------------------
# Network forward
# ----------------------------------------------------------------------------

def vgg_forward(p, x):
    bf = jnp.bfloat16
    c = p["convs"]
    x = conv2d(x, c[0]["w"], c[0]["b"], padding=1, relu=True, out_dtype=bf)
    x = conv2d(x, c[1]["w"], c[1]["b"], padding=1, relu=True, out_dtype=bf)
    x = maxpool2x2(x)
    x = conv2d(x, c[2]["w"], c[2]["b"], padding=1, relu=True, out_dtype=bf)
    x = conv2d(x, c[3]["w"], c[3]["b"], padding=1, relu=True, out_dtype=bf)
    x = maxpool2x2(x)
    x = conv2d(x, c[4]["w"], c[4]["b"], padding=1, relu=True, out_dtype=bf)
    x = conv2d(x, c[5]["w"], c[5]["b"], padding=1, relu=True, out_dtype=bf)
    x = conv2d(x, c[6]["w"], c[6]["b"], padding=1, relu=True, out_dtype=bf)
    x = maxpool2x2(x)                                   # ceil_mode (even input)
    x = conv2d(x, c[7]["w"], c[7]["b"], padding=1, relu=True, out_dtype=bf)
    x = conv2d(x, c[8]["w"], c[8]["b"], padding=1, relu=True, out_dtype=bf)
    x = conv2d(x, c[9]["w"], c[9]["b"], padding=1, relu=True, out_dtype=bf)
    f1 = x                                              # layer index 22 output
    x = maxpool2x2(x)
    x = conv2d(x, c[10]["w"], c[10]["b"], padding=1, relu=True, out_dtype=bf)
    x = conv2d(x, c[11]["w"], c[11]["b"], padding=1, relu=True, out_dtype=bf)
    x = conv2d(x, c[12]["w"], c[12]["b"], padding=1, relu=True, out_dtype=bf)
    x = maxpool3x3_s1_p1(x)                             # pool5
    x = conv2d(x, p["conv6"]["w"], p["conv6"]["b"], padding=6, dilation=6,
               relu=True, out_dtype=bf)
    x = conv2d(x, p["conv7"]["w"], p["conv7"]["b"], relu=True, out_dtype=bf)
    f2 = x                                              # layer index 34 output
    return f1, f2


def tum_forward(p, feat1, feat2, first_level):
    if not first_level:
        feat1 = jnp.concatenate([feat1, feat2], axis=-1)
    conv_feat = [feat1]
    x = feat1
    specs = [(2, 1), (2, 1), (2, 1), (2, 1), (1, 0)]
    for (s, pd), lp in zip(specs, p["layers"]):
        x = cbr(x, lp, stride=s, padding=pd)
        conv_feat.append(x)
    deconv = [cbr(conv_feat[-1], p["toplayer"])]
    for i in range(5):
        lat = cbr(conv_feat[4 - i], p["latlayer"][i], stride=1, padding=1)
        up = upsample_nearest(deconv[i], lat.shape[1], lat.shape[2]) + lat
        deconv.append(up)
    smooth = [deconv[0]]
    for i in range(5):
        smooth.append(cbr(deconv[i + 1], p["smooth"][i]))
    return smooth


def m2det_forward(params, x_nchw):
    x = jnp.transpose(x_nchw, (0, 2, 3, 1)).astype(jnp.float32)   # NCHW -> NHWC
    n = x.shape[0]

    f1, f2 = vgg_forward(params["vgg"], x)
    meger_f1 = cbr(f1, params["reduce"], stride=1, padding=1)
    up = cbr(f2, params["up_reduce"])
    meger_f2 = upsample_nearest(up, 2 * up.shape[1], 2 * up.shape[2])
    feats = jnp.concatenate([meger_f1, meger_f2], axis=-1)        # 768 channels

    # leach modules share weights and see the same input -> compute once.
    leached = cbr(feats, params["leach"])

    tum_layers = []
    prev = None
    for i in range(8):
        out = tum_forward(params["tum"][i], leached, prev, first_level=(i == 0))
        tum_layers.append(out)
        prev = out[-1]

    scale_feats = [jnp.concatenate([t[i - 1] for t in tum_layers], axis=-1)
                   for i in range(6, 0, -1)]
    scale_feats[0] = batchnorm(scale_feats[0], params["norm_gamma"],
                               params["norm_beta"], relu=False)

    loc_list, conf_list = [], []
    for sf, lp, cp in zip(scale_feats, params["loc"], params["conf"]):
        l, c = head_conv(sf, lp, cp)         # fused loc|conf matmul per scale
        loc_list.append(l.reshape(n, -1))    # NHWC == permute(0,2,3,1)
        conf_list.append(c.reshape(n, -1))

    loc = jnp.concatenate(loc_list, axis=1).reshape(n, -1, 4)
    conf = jnp.concatenate(conf_list, axis=1).reshape(-1, 81)
    conf = softmax_rows(conf)                       # nn.Softmax() -> dim=1 on 2D

    # return scale_feats in PyTorch NCHW convention
    scale_feats_nchw = [jnp.transpose(s, (0, 3, 1, 2)) for s in scale_feats]
    return loc, conf, scale_feats_nchw


# ----------------------------------------------------------------------------
# main
# ----------------------------------------------------------------------------

if __name__ == "__main__":
    # Smallest spatial size the module admits: the TUM pyramid needs the /8 map
    # to be even and >= 34 so the stride-1/pad-0 3x3 layer still sees a 3x3 map
    # (34->17->9->5->3->1); with the three VGG pools that means 272x272 input.
    batch, cin, hw = 1, 3, 272
    x = jax.random.normal(jax.random.PRNGKey(0), (batch, cin, hw, hw),
                          jnp.float32)

    params = build_params(seed=42)
    loc, conf, scale_feats = m2det_forward(params, x)
    jax.block_until_ready((loc, conf, scale_feats))

    n_anchors = 6 * (34 * 34 + 17 * 17 + 9 * 9 + 5 * 5 + 3 * 3 + 1 * 1) * batch
    assert loc.shape == (batch, n_anchors, 4), loc.shape
    assert conf.shape == (n_anchors, 81), conf.shape
    assert scale_feats[0].shape == (batch, 2048, 34, 34), scale_feats[0].shape
    assert bool(jnp.all(jnp.isfinite(loc))) and bool(jnp.all(jnp.isfinite(conf)))

    print("KERNEL_OK")
</pallas_src>

<mosaic_0001>
module attributes {stable_mosaic.version = 11 : i64} {
  func.func @_matmul_kernel(%arg0: i32, %arg1: i32, %arg2: i32, %arg3: memref<2048x27xbf16, #tpu.memory_space<vmem>>, %arg4: memref<27x64xbf16, #tpu.memory_space<vmem>>, %arg5: memref<1x64xf32, #tpu.memory_space<vmem>>, %arg6: memref<2048x64xbf16, #tpu.memory_space<vmem>>, %arg7: memref<2048x64xf32, #tpu.memory_space<vmem>>) attributes {dimension_semantics = [#tpu.dimension_semantics<parallel>, #tpu.dimension_semantics<parallel>, #tpu.dimension_semantics<arbitrary>], iteration_bounds = array<i64: 37, 1, 1>, scalar_prefetch = 0 : i64, scratch_operands = 1 : i64, tpu.core_type = #tpu.core_type<tc>, window_params = [{transform_indices = @transform_0, window_bounds = array<i64: 2048, 27>}, {transform_indices = @transform_1, window_bounds = array<i64: 27, 64>}, {transform_indices = @transform_2, window_bounds = array<i64: 1, 64>}, {transform_indices = @transform_3, window_bounds = array<i64: 2048, 64>}]} {
    %c0_i32 = arith.constant 0 : i32
    %0 = arith.cmpi eq, %arg2, %c0_i32 : i32
    %1 = arith.extui %0 : i1 to i32
    %c0_i32_0 = arith.constant 0 : i32
    %2 = arith.cmpi ne, %1, %c0_i32_0 : i32
    scf.if %2 {
      %cst_10 = arith.constant 0.000000e+00 : f32
      %12 = vector.broadcast %cst_10 : f32 to vector<2048x64xf32>
      %c0_11 = arith.constant 0 : index
      %c0_12 = arith.constant 0 : index
      %13 = vector.load %arg7[%c0_11, %c0_12] : memref<2048x64xf32, #tpu.memory_space<vmem>>, vector<2048x64xf32>
      tpu.vector_store %arg7[%c0_11, %c0_12], %12 {strides = array<i32>} : memref<2048x64xf32, #tpu.memory_space<vmem>>, vector<2048x64xf32>,
    } else {
    }
    %c0 = arith.constant 0 : index
    %c0_1 = arith.constant 0 : index
    %3 = vector.load %arg7[%c0, %c0_1] : memref<2048x64xf32, #tpu.memory_space<vmem>>, vector<2048x64xf32>
    %c0_2 = arith.constant 0 : index
    %c0_3 = arith.constant 0 : index
    %4 = vector.load %arg3[%c0_2, %c0_3] : memref<2048x27xbf16, #tpu.memory_space<vmem>>, vector<2048x27xbf16>
    %c0_4 = arith.constant 0 : index
    %c0_5 = arith.constant 0 : index
    %5 = vector.load %arg4[%c0_4, %c0_5] : memref<27x64xbf16, #tpu.memory_space<vmem>>, vector<27x64xbf16>
    %cst = arith.constant dense<0.000000e+00> : vector<2048x64xf32>
    %6 = tpu.matmul %4, %5, %cst {dimension_numbers = #tpu.dot_dimension_numbers<[1], [0], [0], [1], [0, 0, 1, 1], [], []>} : vector<2048x27xbf16>, vector<27x64xbf16>, vector<2048x64xf32> -> vector<2048x64xf32>
    %7 = arith.addf %3, %6 : vector<2048x64xf32>
    %c0_6 = arith.constant 0 : index
    %c0_7 = arith.constant 0 : index
    %8 = vector.load %arg7[%c0_6, %c0_7] : memref<2048x64xf32, #tpu.memory_space<vmem>>, vector<2048x64xf32>
    tpu.vector_store %arg7[%c0_6, %c0_7], %7 {strides = array<i32>} : memref<2048x64xf32, #tpu.memory_space<vmem>>, vector<2048x64xf32>,
    %c0_i32_8 = arith.constant 0 : i32
    %9 = arith.cmpi eq, %arg2, %c0_i32_8 : i32
    %10 = arith.extui %9 : i1 to i32
    %c0_i32_9 = arith.constant 0 : i32
    %11 = arith.cmpi ne, %10, %c0_i32_9 : i32
    scf.if %11 {
      %c0_10 = arith.constant 0 : index
      %c0_11 = arith.constant 0 : index
      %12 = vector.load %arg7[%c0_10, %c0_11] : memref<2048x64xf32, #tpu.memory_space<vmem>>, vector<2048x64xf32>
      %c0_12 = arith.constant 0 : index
      %c0_13 = arith.constant 0 : index
      %13 = vector.load %arg5[%c0_12, %c0_13] : memref<1x64xf32, #tpu.memory_space<vmem>>, vector<1x64xf32>
      %14 = vector.broadcast %13 : vector<1x64xf32> to vector<2048x64xf32>
      %15 = arith.addf %12, %14 : vector<2048x64xf32>
      %cst_14 = arith.constant 0.000000e+00 : f32
      %16 = vector.broadcast %cst_14 : f32 to vector<2048x64xf32>
      %17 = arith.maximumf %15, %16 : vector<2048x64xf32>
      %18 = arith.truncf %17 : vector<2048x64xf32> to vector<2048x64xbf16>
      %c0_15 = arith.constant 0 : index
      %c0_16 = arith.constant 0 : index
      %19 = vector.load %arg6[%c0_15, %c0_16] : memref<2048x64xbf16, #tpu.memory_space<vmem>>, vector<2048x64xbf16>
      tpu.vector_store %arg6[%c0_15, %c0_16], %18 {strides = array<i32>} : memref<2048x64xbf16, #tpu.memory_space<vmem>>, vector<2048x64xbf16>,
    } else {
    }
    return
  }
  func.func @transform_0(%arg0: i32, %arg1: i32, %arg2: i32) -> (i32, i32) {
    %c0_i32 = arith.constant 0 : i32
    return %arg0, %arg2 : i32, i32
  }
  func.func @transform_1(%arg0: i32, %arg1: i32, %arg2: i32) -> (i32, i32) {
    %c0_i32 = arith.constant 0 : i32
    return %arg2, %arg1 : i32, i32
  }
  func.func @transform_2(%arg0: i32, %arg1: i32, %arg2: i32) -> (i32, i32) {
    %c0_i32 = arith.constant 0 : i32
    %c0_i32_0 = arith.constant 0 : i32
    return %c0_i32, %arg1 : i32, i32
  }
  func.func @transform_3(%arg0: i32, %arg1: i32, %arg2: i32) -> (i32, i32) {
    %c0_i32 = arith.constant 0 : i32
    return %arg0, %arg1 : i32, i32
  }
}

</mosaic_0001>

<bundles_post_ra>
// kernel: matmul_bias_act.1
= control target key start
LH: loop header
LB: loop body
LE: loop exit
PB: predicated region body
PF: predicated region fallthrough
CT: control target
= control target key end

     0   :  { %s7204_s12 = smov 0   ;;  %s7206_s13 = smov 0   ;;  %s9443_s0 = inlined_call_operand.vmem [shape: bf16[75776,27], index: 0, kind: input, shape index: {}]   ;;  %s9444_s1 = inlined_call_operand.vmem [shape: bf16[27,64], index: 1, kind: input, shape index: {}]   ;;  %s9445_s2 = inlined_call_operand.vmem [shape: f32[1,64], index: 2, kind: input, shape index: {}]   ;;  %s9446_s3 = inlined_call_operand.vmem [shape: bf16[75776,64], index: 3, kind: output, shape index: {}]  }
   0x1   :  { %s7208_s14 = smov 0  }
   0x2 LB: > { %s32_s15 = sadd.s32 1, %s7176_s13  ;;  %p5826_p0 = scmp.ge.s32.totalorder %s7180_s14, 1  ;;  %s7180_s14 = sphi %s7208_s14, %s13_s14   ;;  %s7176_s13 = sphi %s7206_s13, %s9448_s13   ;;  %s7172_s12 = sphi %s7204_s12, %s9447_s12  }
   0x3   : > { %p34_p1 = scmp.ge.s32.totalorder %s32_s15, 37  ;;  %p188_p2 = scmp.lt.s32.totalorder %s7180_s14, 38 }
   0x5   : > { %s9450_s15 = smov (%p34_p1, %s32_s15), 0  ;;  %p189_p3 = pnand %p5826_p0, %p188_p2 }
   0x6   : > { %s5827_s18 = sshll.u32 (!%p189_p3), %s7172_s12, 8 }
   0x7   : > { %192 = sbr.rel (%p189_p3) target bundleno = 533 (0x215), region = 32  ;;  %p230_p4 = scmp.lt.s32.totalorder (!%p189_p3), %s5827_s18, 9471 }
   0xc   : > { %v7024_v0 = vld [vmem:[%s9444_s1 + $0x8] sm:$0x3f]   ;;  %vm2073_vm0 = vcmask 1044480   ;;  %vm2074_vm1 = vcmask 1045504   ;;  %v7182_v1 = vmov 65535   ;;  %v7025_v5 = vld [vmem:[%s9444_s1] sm:$0xff]  }
   0xd   : > { %v2075_v2 = vsel %vm2073_vm0, 4294967295, %v7182_v1  ;;  %s9452_s18 = smov (!%p230_p4, %s5827_s18), 9471  ;;  %vm1688_vm2 = vcmask 220160   ;;  %vm264_vm3 = vcmask 523264   ;;  %v7183_v41 = vmov 0.0  }
   0xe   : > { %v2076_v3 = vsel %vm2074_vm1, %v2075_v2, 0  ;;  %s5828_s21 = sshll.u32 %s9452_s18, 2  ;;  %267 = vst.msk [vmem:[#allocation2 + $0x10] sm:$0xff] %vm264_vm3, %v7183_v41  ;;  %265 = vst.msk [vmem:[#allocation2] sm:$0xff] %vm264_vm3, %v7183_v41  ;;  %vm5452_vm4 = vcmask 519168  }
   0xf   : > { %v2078_v4 = vand.u32 %v7024_v0, %v2076_v3  ;;  %s7236_s24 = scalar_lea.vmem %s9443_s0, %s5828_s21  ;;  %266 = vst.msk [vmem:[#allocation2 + $0x8] sm:$0xff] %vm264_vm3, %v7183_v41  ;;  %268 = vst.msk [vmem:[#allocation2 + $0x18] sm:$0xff] %vm264_vm3, %v7183_v41  ;;  %s7994_s29 = scalar_lea.vmem %s9446_s3, %s5828_s21 }
  0x10   : > { %v7026_v6 = vld [vmem:[%s7236_s24] sm:$0xff]   ;;  %v7028_v8 = vld [vmem:[%s7236_s24 + $0x8] sm:$0xff]   ;;  %v7030_v10 = vld [vmem:[%s7236_s24 + $0x10] sm:$0xff]   ;;  %269 = vst.msk [vmem:[#allocation2 + $0x20] sm:$0xff] %vm264_vm3, %v7183_v41 }
  0x11   : > { %6734 = vmatprep.subr.bf16.mxu0 %v2078_v4  ;;  %6994 = vmatprep.subr.bf16.mxu1 %v2078_v4  ;;  %v7027_v7 = vld [vmem:[%s7236_s24 + $0x200] sm:$0xff]   ;;  %v7029_v9 = vld [vmem:[%s7236_s24 + $0x208] sm:$0xff]   ;;  %v7031_v11 = vld [vmem:[%s7236_s24 + $0x210] sm:$0xff]   ;;  %270 = vst.msk [vmem:[#allocation2 + $0x28] sm:$0xff] %vm264_vm3, %v7183_v41 }
  0x12   : > { %6735 = vmatpush3.bf16.msra.mxu0 %v2078_v4  ;;  %6996 = vmatpush3.bf16.msra.mxu1 %v2078_v4  ;;  %v7032_v12 = vld [vmem:[%s7236_s24 + $0x18] sm:$0xff]   ;;  %v7034_v14 = vld [vmem:[%s7236_s24 + $0x20] sm:$0xff]   ;;  %v7036_v16 = vld [vmem:[%s7236_s24 + $0x28] sm:$0xff]   ;;  %271 = vst.msk [vmem:[#allocation2 + $0x30] sm:$0xff] %vm264_vm3, %v7183_v41 }
  0x13   : > { %6736 = vmatprep.subr.bf16.mxu0 %v7025_v5  ;;  %6995 = vmatprep.subr.bf16.mxu1 %v7025_v5  ;;  %v7033_v13 = vld [vmem:[%s7236_s24 + $0x218] sm:$0xff]   ;;  %v7035_v15 = vld [vmem:[%s7236_s24 + $0x220] sm:$0xff]   ;;  %v7037_v17 = vld [vmem:[%s7236_s24 + $0x228] sm:$0xff]   ;;  %272 = vst.msk [vmem:[#allocation2 + $0x38] sm:$0xff] %vm264_vm3, %v7183_v41 }
  0x14   : > { %6738 = vmatprep.mubr.msk.bf16.mxu0 %vm1688_vm2, %v7026_v6  ;;  %6866 = vmatprep.mubr.msk.bf16.mxu1 %vm1688_vm2, %v7027_v7  ;;  %v7038_v18 = vld [vmem:[%s7236_s24 + $0x30] sm:$0xff]   ;;  %v7040_v20 = vld [vmem:[%s7236_s24 + $0x38] sm:$0xff]   ;;  %v7042_v22 = vld [vmem:[%s7236_s24 + $0x40] sm:$0xff]   ;;  %273 = vst.msk [vmem:[#allocation2 + $0x40] sm:$0xff] %vm264_vm3, %v7183_v41 }
  0x15   : > { %v7039_v19 = vld [vmem:[%s7236_s24 + $0x230] sm:$0xff]   ;;  %v7041_v21 = vld [vmem:[%s7236_s24 + $0x238] sm:$0xff]   ;;  %v7043_v23 = vld [vmem:[%s7236_s24 + $0x240] sm:$0xff]   ;;  %274 = vst.msk [vmem:[#allocation2 + $0x48] sm:$0xff] %vm264_vm3, %v7183_v41 }
  0x16   : > { %6737 = vmatpush3.bf16.msra.mxu0 %v7025_v5  ;;  %6997 = vmatpush3.bf16.msra.mxu1 %v7025_v5  ;;  %v7044_v24 = vld [vmem:[%s7236_s24 + $0x48] sm:$0xff]   ;;  %v7046_v26 = vld [vmem:[%s7236_s24 + $0x50] sm:$0xff]   ;;  %v7048_v28 = vld [vmem:[%s7236_s24 + $0x58] sm:$0xff]   ;;  %275 = vst.msk [vmem:[#allocation2 + $0x50] sm:$0xff] %vm264_vm3, %v7183_v41 }
  0x17   : > { %v7045_v25 = vld [vmem:[%s7236_s24 + $0x248] sm:$0xff]   ;;  %v7047_v27 = vld [vmem:[%s7236_s24 + $0x250] sm:$0xff]   ;;  %v7049_v29 = vld [vmem:[%s7236_s24 + $0x258] sm:$0xff]   ;;  %276 = vst.msk [vmem:[#allocation2 + $0x58] sm:$0xff] %vm264_vm3, %v7183_v41 }
  0x18   : > { %v7050_v30 = vld [vmem:[%s7236_s24 + $0x60] sm:$0xff]   ;;  %v7052_v32 = vld [vmem:[%s7236_s24 + $0x68] sm:$0xff]   ;;  %v7054_v34 = vld [vmem:[%s7236_s24 + $0x70] sm:$0xff]   ;;  %277 = vst.msk [vmem:[#allocation2 + $0x60] sm:$0xff] %vm264_vm3, %v7183_v41 }
  0x19   : > { %6739 = vmatmul.mubr.msk.bf16.vlgmr.msra.gmra.mxu0 %vm1688_vm2, %v7028_v8  ;;  %6867 = vmatmul.mubr.msk.bf16.vlgmr.msra.gmra.mxu1 %vm1688_vm2, %v7029_v9  ;;  %v7051_v31 = vld [vmem:[%s7236_s24 + $0x260] sm:$0xff]   ;;  %v7053_v33 = vld [vmem:[%s7236_s24 + $0x268] sm:$0xff]   ;;  %v7055_v35 = vld [vmem:[%s7236_s24 + $0x270] sm:$0xff]   ;;  %278 = vst.msk [vmem:[#allocation2 + $0x68] sm:$0xff] %vm264_vm3, %v7183_v41 }
  0x1a   : > { %6742 = vmatprep.mubr.msk.bf16.mxu0 %vm1688_vm2, %v7030_v10  ;;  %6870 = vmatprep.mubr.msk.bf16.mxu1 %vm1688_vm2, %v7031_v11  ;;  %v7056_v36 = vld [vmem:[%s7236_s24 + $0x78] sm:$0xff]   ;;  %v7058_v38 = vld [vmem:[%s7236_s24 + $0x80] sm:$0xff]   ;;  %v7307_v40 = vld [vmem:[%s7236_s24 + $0x88] sm:$0xff]   ;;  %279 = vst.msk [vmem:[#allocation2 + $0x70] sm:$0xff] %vm264_vm3, %v7183_v41 }
  0x1b   : > { %v7057_v37 = vld [vmem:[%s7236_s24 + $0x278] sm:$0xff]   ;;  %v7059_v39 = vld [vmem:[%s7236_s24 + $0x280] sm:$0xff]   ;;  %280 = vst.msk [vmem:[#allocation2 + $0x78] sm:$0xff] %vm264_vm3, %v7183_v41  ;;  %281 = vst.msk [vmem:[#allocation2 + $0x80] sm:$0xff] %vm264_vm3, %v7183_v41 }
  0x1c   : > { %282 = vst.msk [vmem:[#allocation2 + $0x88] sm:$0xff] %vm264_vm3, %v7183_v41  ;;  %283 = vst.msk [vmem:[#allocation2 + $0x90] sm:$0xff] %vm264_vm3, %v7183_v41  ;;  %v7061_v42 = vld [vmem:[%s7236_s24 + $0x288] sm:$0xff]   ;;  %v7062_v43 = vld [vmem:[%s7236_s24 + $0x90] sm:$0xff]  }
  0x1d   : > { %284 = vst.msk [vmem:[#allocation2 + $0x98] sm:$0xff] %vm264_vm3, %v7183_v41  ;;  %285 = vst.msk [vmem:[#allocation2 + $0xa0] sm:$0xff] %vm264_vm3, %v7183_v41  ;;  %v7063_v44 = vld [vmem:[%s7236_s24 + $0x290] sm:$0xff]   ;;  %v7064_v45 = vld [vmem:[%s7236_s24 + $0x98] sm:$0xff]  }
  0x1e   : > { %286 = vst.msk [vmem:[#allocation2 + $0xa8] sm:$0xff] %vm264_vm3, %v7183_v41  ;;  %287 = vst.msk [vmem:[#allocation2 + $0xb0] sm:$0xff] %vm264_vm3, %v7183_v41  ;;  %v7065_v46 = vld [vmem:[%s7236_s24 + $0x298] sm:$0xff]   ;;  %v7066_v47 = vld [vmem:[%s7236_s24 + $0xa0] sm:$0xff]  }
  0x1f   : > { %288 = vst.msk [vmem:[#allocation2 + $0xb8] sm:$0xff] %vm264_vm3, %v7183_v41  ;;  %289 = vst.msk [vmem:[#allocation2 + $0xc0] sm:$0xff] %vm264_vm3, %v7183_v41  ;;  %v7067_v48 = vld [vmem:[%s7236_s24 + $0x2a0] sm:$0xff]   ;;  %v7068_v49 = vld [vmem:[%s7236_s24 + $0xa8] sm:$0xff]  }
  0x20   : > { %290 = vst.msk [vmem:[#allocation2 + $0xc8] sm:$0xff] %vm264_vm3, %v7183_v41  ;;  %291 = vst.msk [vmem:[#allocation2 + $0xd0] sm:$0xff] %vm264_vm3, %v7183_v41  ;;  %v7069_v50 = vld [vmem:[%s7236_s24 + $0x2a8] sm:$0xff]   ;;  %v7070_v51 = vld [vmem:[%s7236_s24 + $0xb0] sm:$0xff]  }
  0x21   : > { %6743 = vmatmul.mubr.msk.bf16.gmra.mxu0 %vm1688_vm2, %v7032_v12  ;;  %6871 = vmatmul.mubr.msk.bf16.gmra.mxu1 %vm1688_vm2, %v7033_v13  ;;  %292 = vst.msk [vmem:[#allocation2 + $0xd8] sm:$0xff] %vm264_vm3, %v7183_v41  ;;  %293 = vst.msk [vmem:[#allocation2 + $0xe0] sm:$0xff] %vm264_vm3, %v7183_v41  ;;  %v7071_v52 = vld [vmem:[%s7236_s24 + $0x2b0] sm:$0xff]   ;;  %v7072_v53 = vld [vmem:[%s7236_s24 + $0xb8] sm:$0xff]  }
  0x22   : > { %6746 = vmatprep.mubr.msk.bf16.mxu0 %vm1688_vm2, %v7034_v14  ;;  %6874 = vmatprep.mubr.msk.bf16.mxu1 %vm1688_vm2, %v7035_v15  ;;  %294 = vst.msk [vmem:[#allocation2 + $0xe8] sm:$0xff] %vm264_vm3, %v7183_v41  ;;  %295 = vst.msk [vmem:[#allocation2 + $0xf0] sm:$0xff] %vm264_vm3, %v7183_v41  ;;  %v7073_v54 = vld [vmem:[%s7236_s24 + $0x2b8] sm:$0xff]   ;;  %v7074_v55 = vld [vmem:[%s7236_s24 + $0xc0] sm:$0xff]  }
  0x23   : > { %296 = vst.msk [vmem:[#allocation2 + $0xf8] sm:$0xff] %vm264_vm3, %v7183_v41  ;;  %297 = vst.msk [vmem:[#allocation2 + $0x100] sm:$0xff] %vm264_vm3, %v7183_v41  ;;  %v7075_v56 = vld [vmem:[%s7236_s24 + $0x2c0] sm:$0xff]   ;;  %v7076_v57 = vld [vmem:[%s7236_s24 + $0xc8] sm:$0xff]  }
  0x24   : > { %298 = vst.msk [vmem:[#allocation2 + $0x108] sm:$0xff] %vm264_vm3, %v7183_v41  ;;  %299 = vst.msk [vmem:[#allocation2 + $0x110] sm:$0xff] %vm264_vm3, %v7183_v41  ;;  %v7077_v58 = vld [vmem:[%s7236_s24 + $0x2c8] sm:$0xff]   ;;  %v7078_v59 = vld [vmem:[%s7236_s24 + $0xd0] sm:$0xff]  }
  0x25   : > { %300 = vst.msk [vmem:[#allocation2 + $0x118] sm:$0xff] %vm264_vm3, %v7183_v41  ;;  %301 = vst.msk [vmem:[#allocation2 + $0x120] sm:$0xff] %vm264_vm3, %v7183_v41  ;;  %v7079_v60 = vld [vmem:[%s7236_s24 + $0x2d0] sm:$0xff]   ;;  %v7080_v61 = vld [vmem:[%s7236_s24 + $0xd8] sm:$0xff]  }
  0x26   : > { %302 = vst.msk [vmem:[#allocation2 + $0x128] sm:$0xff] %vm264_vm3, %v7183_v41  ;;  %303 = vst.msk [vmem:[#allocation2 + $0x130] sm:$0xff] %vm264_vm3, %v7183_v41  ;;  %v7081_v62 = vld [vmem:[%s7236_s24 + $0x2d8] sm:$0xff]   ;;  %v7082_v63 = vld [vmem:[%s7236_s24 + $0xe0] sm:$0xff]  }
  0x27   : > { %304 = vst.msk [vmem:[#allocation2 + $0x138] sm:$0xff] %vm264_vm3, %v7183_v41  ;;  %305 = vst.msk [vmem:[#allocation2 + $0x140] sm:$0xff] %vm264_vm3, %v7183_v41  ;;  %v7083_v0 = vld [vmem:[%s7236_s24 + $0x2e0] sm:$0xff]   ;;  %v7084_v1 = vld [vmem:[%s7236_s24 + $0xe8] sm:$0xff]  }
  0x28   : > { %306 = vst.msk [vmem:[#allocation2 + $0x148] sm:$0xff] %vm264_vm3, %v7183_v41  ;;  %307 = vst.msk [vmem:[#allocation2 + $0x150] sm:$0xff] %vm264_vm3, %v7183_v41  ;;  %v7085_v2 = vld [vmem:[%s7236_s24 + $0x2e8] sm:$0xff]   ;;  %v7086_v3 = vld [vmem:[%s7236_s24 + $0xf0] sm:$0xff]  }
  0x29   : > { %6747 = vmatmul.mubr.msk.bf16.gmra.mxu0 %vm1688_vm2, %v7036_v16  ;;  %6875 = vmatmul.mubr.msk.bf16.gmra.mxu1 %vm1688_vm2, %v7037_v17  ;;  %308 = vst.msk [vmem:[#allocation2 + $0x158] sm:$0xff] %vm264_vm3, %v7183_v41  ;;  %309 = vst.msk [vmem:[#allocation2 + $0x160] sm:$0xff] %vm264_vm3, %v7183_v41  ;;  %v7087_v4 = vld [vmem:[%s7236_s24 + $0x2f0] sm:$0xff]   ;;  %v7088_v5 = vld [vmem:[%s7236_s24 + $0xf8] sm:$0xff]  }
  0x2a   : > { %6750 = vmatprep.mubr.msk.bf16.mxu0 %vm1688_vm2, %v7038_v18  ;;  %6878 = vmatprep.mubr.msk.bf16.mxu1 %vm1688_vm2, %v7039_v19  ;;  %310 = vst.msk [vmem:[#allocation2 + $0x168] sm:$0xff] %vm264_vm3, %v7183_v41  ;;  %311 = vst.msk [vmem:[#allocation2 + $0x170] sm:$0xff] %vm264_vm3, %v7183_v41  ;;  %v7089_v6 = vld [vmem:[%s7236_s24 + $0x2f8] sm:$0xff]   ;;  %v7090_v7 = vld [vmem:[%s7236_s24 + $0x100] sm:$0xff]  }
  0x2b   : > { %312 = vst.msk [vmem:[#allocation2 + $0x178] sm:$0xff] %vm264_vm3, %v7183_v41  ;;  %313 = vst.msk [vmem:[#allocation2 + $0x180] sm:$0xff] %vm264_vm3, %v7183_v41  ;;  %v7091_v8 = vld [vmem:[%s7236_s24 + $0x300] sm:$0xff]   ;;  %v7092_v9 = vld [vmem:[%s7236_s24 + $0x108] sm:$0xff]  }
  0x2c   : > { %314 = vst.msk [vmem:[#allocation2 + $0x188] sm:$0xff] %vm264_vm3, %v7183_v41  ;;  %315 = vst.msk [vmem:[#allocation2 + $0x190] sm:$0xff] %vm264_vm3, %v7183_v41  ;;  %v7093_v10 = vld [vmem:[%s7236_s24 + $0x308] sm:$0xff]   ;;  %v7094_v11 = vld [vmem:[%s7236_s24 + $0x110] sm:$0xff]  }
  0x2d   : > { %316 = vst.msk [vmem:[#allocation2 + $0x198] sm:$0xff] %vm264_vm3, %v7183_v41  ;;  %317 = vst.msk [vmem:[#allocation2 + $0x1a0] sm:$0xff] %vm264_vm3, %v7183_v41  ;;  %v7095_v12 = vld [vmem:[%s7236_s24 + $0x310] sm:$0xff]   ;;  %v7096_v13 = vld [vmem:[%s7236_s24 + $0x118] sm:$0xff]  }
  0x2e   : > { %318 = vst.msk [vmem:[#allocation2 + $0x1a8] sm:$0xff] %vm264_vm3, %v7183_v41  ;;  %319 = vst.msk [vmem:[#allocation2 + $0x1b0] sm:$0xff] %vm264_vm3, %v7183_v41  ;;  %v7097_v14 = vld [vmem:[%s7236_s24 + $0x318] sm:$0xff]   ;;  %v7098_v15 = vld [vmem:[%s7236_s24 + $0x120] sm:$0xff]  }
  0x2f   : > { %320 = vst.msk [vmem:[#allocation2 + $0x1b8] sm:$0xff] %vm264_vm3, %v7183_v41  ;;  %321 = vst.msk [vmem:[#allocation2 + $0x1c0] sm:$0xff] %vm264_vm3, %v7183_v41  ;;  %v7099_v16 = vld [vmem:[%s7236_s24 + $0x320] sm:$0xff]   ;;  %v7100_v17 = vld [vmem:[%s7236_s24 + $0x128] sm:$0xff]  }
  0x30   : > { %322 = vst.msk [vmem:[#allocation2 + $0x1c8] sm:$0xff] %vm264_vm3, %v7183_v41  ;;  %323 = vst.msk [vmem:[#allocation2 + $0x1d0] sm:$0xff] %vm264_vm3, %v7183_v41  ;;  %v7101_v18 = vld [vmem:[%s7236_s24 + $0x328] sm:$0xff]   ;;  %v7102_v19 = vld [vmem:[%s7236_s24 + $0x130] sm:$0xff]  }
  0x31   : > { %6751 = vmatmul.mubr.msk.bf16.gmra.mxu0 %vm1688_vm2, %v7040_v20  ;;  %6879 = vmatmul.mubr.msk.bf16.gmra.mxu1 %vm1688_vm2, %v7041_v21  ;;  %324 = vst.msk [vmem:[#allocation2 + $0x1d8] sm:$0xff] %vm264_vm3, %v7183_v41  ;;  %325 = vst.msk [vmem:[#allocation2 + $0x1e0] sm:$0xff] %vm264_vm3, %v7183_v41  ;;  %v7103_v20 = vld [vmem:[%s7236_s24 + $0x330] sm:$0xff]   ;;  %v7104_v21 = vld [vmem:[%s7236_s24 + $0x138] sm:$0xff]  }
  0x32   : > { %6754 = vmatprep.mubr.msk.bf16.mxu0 %vm1688_vm2, %v7042_v22  ;;  %6882 = vmatprep.mubr.msk.bf16.mxu1 %vm1688_vm2, %v7043_v23  ;;  %326 = vst.msk [vmem:[#allocation2 + $0x1e8] sm:$0xff] %vm264_vm3, %v7183_v41  ;;  %327 = vst.msk [vmem:[#allocation2 + $0x1f0] sm:$0xff] %vm264_vm3, %v7183_v41  ;;  %v7105_v22 = vld [vmem:[%s7236_s24 + $0x338] sm:$0xff]   ;;  %v7106_v23 = vld [vmem:[%s7236_s24 + $0x140] sm:$0xff]  }
  0x33   : > { %328 = vst.msk [vmem:[#allocation2 + $0x1f8] sm:$0xff] %vm264_vm3, %v7183_v41  ;;  %329 = vst.msk [vmem:[#allocation2 + $0x200] sm:$0xff] %vm264_vm3, %v7183_v41 }
  0x34   : > { %330 = vst.msk [vmem:[#allocation2 + $0x208] sm:$0xff] %vm264_vm3, %v7183_v41  ;;  %331 = vst.msk [vmem:[#allocation2 + $0x210] sm:$0xff] %vm264_vm3, %v7183_v41 }
  0x35   : > { %332 = vst.msk [vmem:[#allocation2 + $0x218] sm:$0xff] %vm264_vm3, %v7183_v41  ;;  %333 = vst.msk [vmem:[#allocation2 + $0x220] sm:$0xff] %vm264_vm3, %v7183_v41 }
  0x36   : > { %334 = vst.msk [vmem:[#allocation2 + $0x228] sm:$0xff] %vm264_vm3, %v7183_v41  ;;  %335 = vst.msk [vmem:[#allocation2 + $0x230] sm:$0xff] %vm264_vm3, %v7183_v41 }
  0x37   : > { %336 = vst.msk [vmem:[#allocation2 + $0x238] sm:$0xff] %vm264_vm3, %v7183_v41  ;;  %337 = vst.msk [vmem:[#allocation2 + $0x240] sm:$0xff] %vm264_vm3, %v7183_v41 }
  0x38   : > { %338 = vst.msk [vmem:[#allocation2 + $0x248] sm:$0xff] %vm264_vm3, %v7183_v41  ;;  %339 = vst.msk [vmem:[#allocation2 + $0x250] sm:$0xff] %vm264_vm3, %v7183_v41 }
  0x39   : > { %6755 = vmatmul.mubr.msk.bf16.gmra.mxu0 %vm1688_vm2, %v7044_v24  ;;  %6883 = vmatmul.mubr.msk.bf16.gmra.mxu1 %vm1688_vm2, %v7045_v25  ;;  %340 = vst.msk [vmem:[#allocation2 + $0x258] sm:$0xff] %vm264_vm3, %v7183_v41  ;;  %341 = vst.msk [vmem:[#allocation2 + $0x260] sm:$0xff] %vm264_vm3, %v7183_v41  ;;  %v7107_v24 = vld [vmem:[%s7236_s24 + $0x340] sm:$0xff]   ;;  %v7108_v25 = vld [vmem:[%s7236_s24 + $0x148] sm:$0xff]  }
  0x3a   : > { %6758 = vmatprep.mubr.msk.bf16.mxu0 %vm1688_vm2, %v7046_v26  ;;  %6886 = vmatprep.mubr.msk.bf16.mxu1 %vm1688_vm2, %v7047_v27  ;;  %342 = vst.msk [vmem:[#allocation2 + $0x268] sm:$0xff] %vm264_vm3, %v7183_v41  ;;  %343 = vst.msk [vmem:[#allocation2 + $0x270] sm:$0xff] %vm264_vm3, %v7183_v41  ;;  %v7109_v26 = vld [vmem:[%s7236_s24 + $0x348] sm:$0xff]   ;;  %v7110_v27 = vld [vmem:[%s7236_s24 + $0x150] sm:$0xff]  }
  0x3b   : > { %344 = vst.msk [vmem:[#allocation2 + $0x278] sm:$0xff] %vm264_vm3, %v7183_v41  ;;  %345 = vst.msk [vmem:[#allocation2 + $0x280] sm:$0xff] %vm264_vm3, %v7183_v41 }
  0x3c   : > { %346 = vst.msk [vmem:[#allocation2 + $0x288] sm:$0xff] %vm264_vm3, %v7183_v41  ;;  %347 = vst.msk [vmem:[#allocation2 + $0x290] sm:$0xff] %vm264_vm3, %v7183_v41 }
  0x3d   : > { %348 = vst.msk [vmem:[#allocation2 + $0x298] sm:$0xff] %vm264_vm3, %v7183_v41  ;;  %349 = vst.msk [vmem:[#allocation2 + $0x2a0] sm:$0xff] %vm264_vm3, %v7183_v41 }
  0x3e   : > { %350 = vst.msk [vmem:[#allocation2 + $0x2a8] sm:$0xff] %vm264_vm3, %v7183_v41  ;;  %351 = vst.msk [vmem:[#allocation2 + $0x2b0] sm:$0xff] %vm264_vm3, %v7183_v41 }
  0x3f   : > { %352 = vst.msk [vmem:[#allocation2 + $0x2b8] sm:$0xff] %vm264_vm3, %v7183_v41  ;;  %353 = vst.msk [vmem:[#allocation2 + $0x2c0] sm:$0xff] %vm264_vm3, %v7183_v41 }
  0x40   : > { %354 = vst.msk [vmem:[#allocation2 + $0x2c8] sm:$0xff] %vm264_vm3, %v7183_v41  ;;  %355 = vst.msk [vmem:[#allocation2 + $0x2d0] sm:$0xff] %vm264_vm3, %v7183_v41 }
  0x41   : > { %6759 = vmatmul.mubr.msk.bf16.gmra.mxu0 %vm1688_vm2, %v7048_v28  ;;  %6887 = vmatmul.mubr.msk.bf16.gmra.mxu1 %vm1688_vm2, %v7049_v29  ;;  %356 = vst.msk [vmem:[#allocation2 + $0x2d8] sm:$0xff] %vm264_vm3, %v7183_v41  ;;  %357 = vst.msk [vmem:[#allocation2 + $0x2e0] sm:$0xff] %vm264_vm3, %v7183_v41  ;;  %v7111_v28 = vld [vmem:[%s7236_s24 + $0x350] sm:$0xff]   ;;  %v7112_v29 = vld [vmem:[%s7236_s24 + $0x158] sm:$0xff]  }
  0x42   : > { %6762 = vmatprep.mubr.msk.bf16.mxu0 %vm1688_vm2, %v7050_v30  ;;  %6890 = vmatprep.mubr.msk.bf16.mxu1 %vm1688_vm2, %v7051_v31  ;;  %358 = vst.msk [vmem:[#allocation2 + $0x2e8] sm:$0xff] %vm264_vm3, %v7183_v41  ;;  %359 = vst.msk [vmem:[#allocation2 + $0x2f0] sm:$0xff] %vm264_vm3, %v7183_v41  ;;  %v7113_v30 = vld [vmem:[%s7236_s24 + $0x358] sm:$0xff]   ;;  %v7114_v31 = vld [vmem:[%s7236_s24 + $0x160] sm:$0xff]  }
  0x43   : > { %360 = vst.msk [vmem:[#allocation2 + $0x2f8] sm:$0xff] %vm264_vm3, %v7183_v41  ;;  %361 = vst.msk [vmem:[#allocation2 + $0x300] sm:$0xff] %vm264_vm3, %v7183_v41 }
  0x44   : > { %362 = vst.msk [vmem:[#allocation2 + $0x308] sm:$0xff] %vm264_vm3, %v7183_v41  ;;  %363 = vst.msk [vmem:[#allocation2 + $0x310] sm:$0xff] %vm264_vm3, %v7183_v41 }
  0x45   : > { %364 = vst.msk [vmem:[#allocation2 + $0x318] sm:$0xff] %vm264_vm3, %v7183_v41  ;;  %365 = vst.msk [vmem:[#allocation2 + $0x320] sm:$0xff] %vm264_vm3, %v7183_v41 }
  0x46   : > { %366 = vst.msk [vmem:[#allocation2 + $0x328] sm:$0xff] %vm264_vm3, %v7183_v41  ;;  %367 = vst.msk [vmem:[#allocation2 + $0x330] sm:$0xff] %vm264_vm3, %v7183_v41 }
  0x47   : > { %368 = vst.msk [vmem:[#allocation2 + $0x338] sm:$0xff] %vm264_vm3, %v7183_v41  ;;  %369 = vst.msk [vmem:[#allocation2 + $0x340] sm:$0xff] %vm264_vm3, %v7183_v41 }
  0x48   : > { %370 = vst.msk [vmem:[#allocation2 + $0x348] sm:$0xff] %vm264_vm3, %v7183_v41  ;;  %371 = vst.msk [vmem:[#allocation2 + $0x350] sm:$0xff] %vm264_vm3, %v7183_v41 }
  0x49   : > { %6763 = vmatmul.mubr.msk.bf16.gmra.mxu0 %vm1688_vm2, %v7052_v32  ;;  %6891 = vmatmul.mubr.msk.bf16.gmra.mxu1 %vm1688_vm2, %v7053_v33  ;;  %372 = vst.msk [vmem:[#allocation2 + $0x358] sm:$0xff] %vm264_vm3, %v7183_v41  ;;  %373 = vst.msk [vmem:[#allocation2 + $0x360] sm:$0xff] %vm264_vm3, %v7183_v41  ;;  %v7115_v32 = vld [vmem:[%s7236_s24 + $0x360] sm:$0xff]   ;;  %v7116_v33 = vld [vmem:[%s7236_s24 + $0x168] sm:$0xff]  }
  0x4a   : > { %6766 = vmatprep.mubr.msk.bf16.mxu0 %vm1688_vm2, %v7054_v34  ;;  %6894 = vmatprep.mubr.msk.bf16.mxu1 %vm1688_vm2, %v7055_v35  ;;  %374 = vst.msk [vmem:[#allocation2 + $0x368] sm:$0xff] %vm264_vm3, %v7183_v41  ;;  %375 = vst.msk [vmem:[#allocation2 + $0x370] sm:$0xff] %vm264_vm3, %v7183_v41  ;;  %v7117_v34 = vld [vmem:[%s7236_s24 + $0x368] sm:$0xff]   ;;  %v7118_v35 = vld [vmem:[%s7236_s24 + $0x170] sm:$0xff]  }
  0x4b   : > { %376 = vst.msk [vmem:[#allocation2 + $0x378] sm:$0xff] %vm264_vm3, %v7183_v41  ;;  %377 = vst.msk [vmem:[#allocation2 + $0x380] sm:$0xff] %vm264_vm3, %v7183_v41 }
  0x4c   : > { %378 = vst.msk [vmem:[#allocation2 + $0x388] sm:$0xff] %vm264_vm3, %v7183_v41  ;;  %379 = vst.msk [vmem:[#allocation2 + $0x390] sm:$0xff] %vm264_vm3, %v7183_v41 }
  0x4d   : > { %380 = vst.msk [vmem:[#allocation2 + $0x398] sm:$0xff] %vm264_vm3, %v7183_v41  ;;  %381 = vst.msk [vmem:[#allocation2 + $0x3a0] sm:$0xff] %vm264_vm3, %v7183_v41 }
  0x4e   : > { %382 = vst.msk [vmem:[#allocation2 + $0x3a8] sm:$0xff] %vm264_vm3, %v7183_v41  ;;  %383 = vst.msk [vmem:[#allocation2 + $0x3b0] sm:$0xff] %vm264_vm3, %v7183_v41 }
  0x4f   : > { %384 = vst.msk [vmem:[#allocation2 + $0x3b8] sm:$0xff] %vm264_vm3, %v7183_v41  ;;  %385 = vst.msk [vmem:[#allocation2 + $0x3c0] sm:$0xff] %vm264_vm3, %v7183_v41 }
  0x50   : > { %386 = vst.msk [vmem:[#allocation2 + $0x3c8] sm:$0xff] %vm264_vm3, %v7183_v41  ;;  %387 = vst.msk [vmem:[#allocation2 + $0x3d0] sm:$0xff] %vm264_vm3, %v7183_v41 }
  0x51   : > { %6767 = vmatmul.mubr.msk.bf16.gmra.mxu0 %vm1688_vm2, %v7056_v36  ;;  %6895 = vmatmul.mubr.msk.bf16.gmra.mxu1 %vm1688_vm2, %v7057_v37  ;;  %388 = vst.msk [vmem:[#allocation2 + $0x3d8] sm:$0xff] %vm264_vm3, %v7183_v41  ;;  %389 = vst.msk [vmem:[#allocation2 + $0x3e0] sm:$0xff] %vm264_vm3, %v7183_v41  ;;  %v7119_v36 = vld [vmem:[%s7236_s24 + $0x370] sm:$0xff]   ;;  %v7120_v37 = vld [vmem:[%s7236_s24 + $0x178] sm:$0xff]  }
  0x52   : > { %6770 = vmatprep.mubr.msk.bf16.mxu0 %vm1688_vm2, %v7058_v38  ;;  %6898 = vmatprep.mubr.msk.bf16.mxu1 %vm1688_vm2, %v7059_v39  ;;  %390 = vst.msk [vmem:[#allocation2 + $0x3e8] sm:$0xff] %vm264_vm3, %v7183_v41  ;;  %391 = vst.msk [vmem:[#allocation2 + $0x3f0] sm:$0xff] %vm264_vm3, %v7183_v41  ;;  %v7121_v38 = vld [vmem:[%s7236_s24 + $0x378] sm:$0xff]   ;;  %v7122_v39 = vld [vmem:[%s7236_s24 + $0x180] sm:$0xff]  }
  0x53   : > { %392 = vst.msk [vmem:[#allocation2 + $0x3f8] sm:$0xff] %vm264_vm3, %v7183_v41  ;;  %393 = vst.msk [vmem:[#allocation2 + $0x400] sm:$0xff] %vm264_vm3, %v7183_v41 }
  0x54   : > { %394 = vst.msk [vmem:[#allocation2 + $0x408] sm:$0xff] %vm264_vm3, %v7183_v41  ;;  %395 = vst.msk [vmem:[#allocation2 + $0x410] sm:$0xff] %vm264_vm3, %v7183_v41 }
  0x55   : > { %396 = vst.msk [vmem:[#allocation2 + $0x418] sm:$0xff] %vm264_vm3, %v7183_v41  ;;  %397 = vst.msk [vmem:[#allocation2 + $0x420] sm:$0xff] %vm264_vm3, %v7183_v41 }
  0x56   : > { %398 = vst.msk [vmem:[#allocation2 + $0x428] sm:$0xff] %vm264_vm3, %v7183_v41  ;;  %399 = vst.msk [vmem:[#allocation2 + $0x430] sm:$0xff] %vm264_vm3, %v7183_v41 }
  0x57   : > { %400 = vst.msk [vmem:[#allocation2 + $0x438] sm:$0xff] %vm264_vm3, %v7183_v41  ;;  %401 = vst.msk [vmem:[#allocation2 + $0x440] sm:$0xff] %vm264_vm3, %v7183_v41 }
  0x58   : > { %402 = vst.msk [vmem:[#allocation2 + $0x448] sm:$0xff] %vm264_vm3, %v7183_v41  ;;  %403 = vst.msk [vmem:[#allocation2 + $0x450] sm:$0xff] %vm264_vm3, %v7183_v41 }
  0x59   : > { %404 = vst.msk [vmem:[#allocation2 + $0x458] sm:$0xff] %vm264_vm3, %v7183_v41  ;;  %405 = vst.msk [vmem:[#allocation2 + $0x460] sm:$0xff] %vm264_vm3, %v7183_v41  ;;  %6771 = vmatmul.mubr.msk.bf16.gmra.mxu0 %vm1688_vm2, %v7307_v40  ;;  %6899 = vmatmul.mubr.msk.bf16.gmra.mxu1 %vm1688_vm2, %v7061_v42  ;;  %v7123_v40 = vld [vmem:[%s7236_s24 + $0x380] sm:$0xff]   ;;  %v7125_v42 = vld [vmem:[%s7236_s24 + $0x388] sm:$0xff]  }
  0x5a   : > { %406 = vst.msk [vmem:[#allocation2 + $0x468] sm:$0xff] %vm264_vm3, %v7183_v41  ;;  %407 = vst.msk [vmem:[#allocation2 + $0x470] sm:$0xff] %vm264_vm3, %v7183_v41  ;;  %6774 = vmatprep.mubr.msk.bf16.mxu0 %vm1688_vm2, %v7062_v43  ;;  %6902 = vmatprep.mubr.msk.bf16.mxu1 %vm1688_vm2, %v7063_v44  ;;  %v7126_v43 = vld [vmem:[%s7236_s24 + $0x190] sm:$0xff]  }
  0x5b   : > { %408 = vst.msk [vmem:[#allocation2 + $0x478] sm:$0xff] %vm264_vm3, %v7183_v41  ;;  %409 = vst.msk [vmem:[#allocation2 + $0x480] sm:$0xff] %vm264_vm3, %v7183_v41  ;;  %v7127_v44 = vld [vmem:[%s7236_s24 + $0x390] sm:$0xff]  }
  0x5c   : > { %410 = vst.msk [vmem:[#allocation2 + $0x488] sm:$0xff] %vm264_vm3, %v7183_v41  ;;  %411 = vst.msk [vmem:[#allocation2 + $0x490] sm:$0xff] %vm264_vm3, %v7183_v41 }
  0x5d   : > { %412 = vst.msk [vmem:[#allocation2 + $0x498] sm:$0xff] %vm264_vm3, %v7183_v41  ;;  %413 = vst.msk [vmem:[#allocation2 + $0x4a0] sm:$0xff] %vm264_vm3, %v7183_v41 }
  0x5e   : > { %414 = vst.msk [vmem:[#allocation2 + $0x4a8] sm:$0xff] %vm264_vm3, %v7183_v41  ;;  %415 = vst.msk [vmem:[#allocation2 + $0x4b0] sm:$0xff] %vm264_vm3, %v7183_v41 }
  0x5f   : > { %416 = vst.msk [vmem:[#allocation2 + $0x4b8] sm:$0xff] %vm264_vm3, %v7183_v41  ;;  %417 = vst.msk [vmem:[#allocation2 + $0x4c0] sm:$0xff] %vm264_vm3, %v7183_v41 }
  0x60   : > { %418 = vst.msk [vmem:[#allocation2 + $0x4c8] sm:$0xff] %vm264_vm3, %v7183_v41  ;;  %419 = vst.msk [vmem:[#allocation2 + $0x4d0] sm:$0xff] %vm264_vm3, %v7183_v41 }
  0x61   : > { %420 = vst.msk [vmem:[#allocation2 + $0x4d8] sm:$0xff] %vm264_vm3, %v7183_v41  ;;  %421 = vst.msk [vmem:[#allocation2 + $0x4e0] sm:$0xff] %vm264_vm3, %v7183_v41  ;;  %6775 = vmatmul.mubr.msk.bf16.gmra.mxu0 %vm1688_vm2, %v7064_v45  ;;  %6903 = vmatmul.mubr.msk.bf16.gmra.mxu1 %vm1688_vm2, %v7065_v46  ;;  %v523_v45 = vld [vmem:[#allocation2 + $0x10] sm:$0xff] }
  0x62   : > { %422 = vst.msk [vmem:[#allocation2 + $0x4e8] sm:$0xff] %vm264_vm3, %v7183_v41  ;;  %423 = vst.msk [vmem:[#allocation2 + $0x4f0] sm:$0xff] %vm264_vm3, %v7183_v41  ;;  %6778 = vmatprep.mubr.msk.bf16.mxu0 %vm1688_vm2, %v7066_v47  ;;  %6906 = vmatprep.mubr.msk.bf16.mxu1 %vm1688_vm2, %v7067_v48  ;;  %v651_v46 = vld [vmem:[#allocation2 + $0x410] sm:$0xff] }
  0x63   : > { %424 = vst.msk [vmem:[#allocation2 + $0x4f8] sm:$0xff] %vm264_vm3, %v7183_v41  ;;  %425 = vst.msk [vmem:[#allocation2 + $0x500] sm:$0xff] %vm264_vm3, %v7183_v41 }
  0x64   : > { %426 = vst.msk [vmem:[#allocation2 + $0x508] sm:$0xff] %vm264_vm3, %v7183_v41  ;;  %427 = vst.msk [vmem:[#allocation2 + $0x510] sm:$0xff] %vm264_vm3, %v7183_v41 }
  0x65   : > { %428 = vst.msk [vmem:[#allocation2 + $0x518] sm:$0xff] %vm264_vm3, %v7183_v41  ;;  %429 = vst.msk [vmem:[#allocation2 + $0x520] sm:$0xff] %vm264_vm3, %v7183_v41 }
  0x66   : > { %430 = vst.msk [vmem:[#allocation2 + $0x528] sm:$0xff] %vm264_vm3, %v7183_v41  ;;  %431 = vst.msk [vmem:[#allocation2 + $0x530] sm:$0xff] %vm264_vm3, %v7183_v41 }
  0x67   : > { %432 = vst.msk [vmem:[#allocation2 + $0x538] sm:$0xff] %vm264_vm3, %v7183_v41  ;;  %433 = vst.msk [vmem:[#allocation2 + $0x540] sm:$0xff] %vm264_vm3, %v7183_v41 }
  0x68   : > { %434 = vst.msk [vmem:[#allocation2 + $0x548] sm:$0xff] %vm264_vm3, %v7183_v41  ;;  %435 = vst.msk [vmem:[#allocation2 + $0x550] sm:$0xff] %vm264_vm3, %v7183_v41 }
  0x69   : > { %436 = vst.msk [vmem:[#allocation2 + $0x558] sm:$0xff] %vm264_vm3, %v7183_v41  ;;  %437 = vst.msk [vmem:[#allocation2 + $0x560] sm:$0xff] %vm264_vm3, %v7183_v41  ;;  %6779 = vmatmul.mubr.msk.bf16.gmra.mxu0 %vm1688_vm2, %v7068_v49  ;;  %6907 = vmatmul.mubr.msk.bf16.gmra.mxu1 %vm1688_vm2, %v7069_v50  ;;  %v521_v49 = vld [vmem:[#allocation2] sm:$0xff] }
  0x6a   : > { %438 = vst.msk [vmem:[#allocation2 + $0x568] sm:$0xff] %vm264_vm3, %v7183_v41  ;;  %439 = vst.msk [vmem:[#allocation2 + $0x570] sm:$0xff] %vm264_vm3, %v7183_v41  ;;  %6782 = vmatprep.mubr.msk.bf16.mxu0 %vm1688_vm2, %v7070_v51  ;;  %6910 = vmatprep.mubr.msk.bf16.mxu1 %vm1688_vm2, %v7071_v52  ;;  %v649_v50 = vld [vmem:[#allocation2 + $0x400] sm:$0xff] }
  0x6b   : > { %440 = vst.msk [vmem:[#allocation2 + $0x578] sm:$0xff] %vm264_vm3, %v7183_v41  ;;  %441 = vst.msk [vmem:[#allocation2 + $0x580] sm:$0xff] %vm264_vm3, %v7183_v41 }
  0x6c   : > { %442 = vst.msk [vmem:[#allocation2 + $0x588] sm:$0xff] %vm264_vm3, %v7183_v41  ;;  %443 = vst.msk [vmem:[#allocation2 + $0x590] sm:$0xff] %vm264_vm3, %v7183_v41 }
  0x6d   : > { %444 = vst.msk [vmem:[#allocation2 + $0x598] sm:$0xff] %vm264_vm3, %v7183_v41  ;;  %445 = vst.msk [vmem:[#allocation2 + $0x5a0] sm:$0xff] %vm264_vm3, %v7183_v41 }
  0x6e   : > { %446 = vst.msk [vmem:[#allocation2 + $0x5a8] sm:$0xff] %vm264_vm3, %v7183_v41  ;;  %447 = vst.msk [vmem:[#allocation2 + $0x5b0] sm:$0xff] %vm264_vm3, %v7183_v41 }
  0x6f   : > { %448 = vst.msk [vmem:[#allocation2 + $0x5b8] sm:$0xff] %vm264_vm3, %v7183_v41  ;;  %449 = vst.msk [vmem:[#allocation2 + $0x5c0] sm:$0xff] %vm264_vm3, %v7183_v41 }
  0x70   : > { %450 = vst.msk [vmem:[#allocation2 + $0x5c8] sm:$0xff] %vm264_vm3, %v7183_v41  ;;  %451 = vst.msk [vmem:[#allocation2 + $0x5d0] sm:$0xff] %vm264_vm3, %v7183_v41 }
  0x71   : > { %452 = vst.msk [vmem:[#allocation2 + $0x5d8] sm:$0xff] %vm264_vm3, %v7183_v41  ;;  %453 = vst.msk [vmem:[#allocation2 + $0x5e0] sm:$0xff] %vm264_vm3, %v7183_v41  ;;  %6783 = vmatmul.mubr.msk.bf16.gmra.mxu0 %vm1688_vm2, %v7072_v53  ;;  %6911 = vmatmul.mubr.msk.bf16.gmra.mxu1 %vm1688_vm2, %v7073_v54 }
  0x72   : > { %454 = vst.msk [vmem:[#allocation2 + $0x5e8] sm:$0xff] %vm264_vm3, %v7183_v41  ;;  %455 = vst.msk [vmem:[#allocation2 + $0x5f0] sm:$0xff] %vm264_vm3, %v7183_v41  ;;  %6786 = vmatprep.mubr.msk.bf16.mxu0 %vm1688_vm2, %v7074_v55  ;;  %6914 = vmatprep.mubr.msk.bf16.mxu1 %vm1688_vm2, %v7075_v56  ;;  %v524_v55 = vld [vmem:[#allocation2 + $0x18] sm:$0xff] }
  0x73   : > { %456 = vst.msk [vmem:[#allocation2 + $0x5f8] sm:$0xff] %vm264_vm3, %v7183_v41  ;;  %457 = vst.msk [vmem:[#allocation2 + $0x600] sm:$0xff] %vm264_vm3, %v7183_v41  ;;  %v652_v56 = vld [vmem:[#allocation2 + $0x418] sm:$0xff] }
  0x74   : > { %458 = vst.msk [vmem:[#allocation2 + $0x608] sm:$0xff] %vm264_vm3, %v7183_v41  ;;  %459 = vst.msk [vmem:[#allocation2 + $0x610] sm:$0xff] %vm264_vm3, %v7183_v41 }
  0x75   : > { %460 = vst.msk [vmem:[#allocation2 + $0x618] sm:$0xff] %vm264_vm3, %v7183_v41  ;;  %461 = vst.msk [vmem:[#allocation2 + $0x620] sm:$0xff] %vm264_vm3, %v7183_v41 }
  0x76   : > { %462 = vst.msk [vmem:[#allocation2 + $0x628] sm:$0xff] %vm264_vm3, %v7183_v41  ;;  %463 = vst.msk [vmem:[#allocation2 + $0x630] sm:$0xff] %vm264_vm3, %v7183_v41 }
  0x77   : > { %464 = vst.msk [vmem:[#allocation2 + $0x638] sm:$0xff] %vm264_vm3, %v7183_v41  ;;  %465 = vst.msk [vmem:[#allocation2 + $0x640] sm:$0xff] %vm264_vm3, %v7183_v41 }
  0x78   : > { %466 = vst.msk [vmem:[#allocation2 + $0x648] sm:$0xff] %vm264_vm3, %v7183_v41  ;;  %467 = vst.msk [vmem:[#allocation2 + $0x650] sm:$0xff] %vm264_vm3, %v7183_v41 }
  0x79   : > { %468 = vst.msk [vmem:[#allocation2 + $0x658] sm:$0xff] %vm264_vm3, %v7183_v41  ;;  %469 = vst.msk [vmem:[#allocation2 + $0x660] sm:$0xff] %vm264_vm3, %v7183_v41  ;;  %6787 = vmatmul.mubr.msk.bf16.gmra.mxu0 %vm1688_vm2, %v7076_v57  ;;  %6915 = vmatmul.mubr.msk.bf16.gmra.mxu1 %vm1688_vm2, %v7077_v58 }
  0x7a   : > { %470 = vst.msk [vmem:[#allocation2 + $0x668] sm:$0xff] %vm264_vm3, %v7183_v41  ;;  %471 = vst.msk [vmem:[#allocation2 + $0x670] sm:$0xff] %vm264_vm3, %v7183_v41  ;;  %6790 = vmatprep.mubr.msk.bf16.mxu0 %vm1688_vm2, %v7078_v59  ;;  %6918 = vmatprep.mubr.msk.bf16.mxu1 %vm1688_vm2, %v7079_v60  ;;  %v522_v59 = vld [vmem:[#allocation2 + $0x8] sm:$0xff] }
  0x7b   : > { %472 = vst.msk [vmem:[#allocation2 + $0x678] sm:$0xff] %vm264_vm3, %v7183_v41  ;;  %473 = vst.msk [vmem:[#allocation2 + $0x680] sm:$0xff] %vm264_vm3, %v7183_v41 }
  0x7c   : > { %474 = vst.msk [vmem:[#allocation2 + $0x688] sm:$0xff] %vm264_vm3, %v7183_v41  ;;  %475 = vst.msk [vmem:[#allocation2 + $0x690] sm:$0xff] %vm264_vm3, %v7183_v41 }
  0x7d   : > { %476 = vst.msk [vmem:[#allocation2 + $0x698] sm:$0xff] %vm264_vm3, %v7183_v41  ;;  %477 = vst.msk [vmem:[#allocation2 + $0x6a0] sm:$0xff] %vm264_vm3, %v7183_v41 }
  0x7e   : > { %478 = vst.msk [vmem:[#allocation2 + $0x6a8] sm:$0xff] %vm264_vm3, %v7183_v41  ;;  %479 = vst.msk [vmem:[#allocation2 + $0x6b0] sm:$0xff] %vm264_vm3, %v7183_v41 }
  0x7f   : > { %480 = vst.msk [vmem:[#allocation2 + $0x6b8] sm:$0xff] %vm264_vm3, %v7183_v41  ;;  %481 = vst.msk [vmem:[#allocation2 + $0x6c0] sm:$0xff] %vm264_vm3, %v7183_v41 }
  0x80   : > { %482 = vst.msk [vmem:[#allocation2 + $0x6c8] sm:$0xff] %vm264_vm3, %v7183_v41  ;;  %483 = vst.msk [vmem:[#allocation2 + $0x6d0] sm:$0xff] %vm264_vm3, %v7183_v41 }
  0x81   : > { %484 = vst.msk [vmem:[#allocation2 + $0x6d8] sm:$0xff] %vm264_vm3, %v7183_v41  ;;  %485 = vst.msk [vmem:[#allocation2 + $0x6e0] sm:$0xff] %vm264_vm3, %v7183_v41  ;;  %6791 = vmatmul.mubr.msk.bf16.gmra.mxu0 %vm1688_vm2, %v7080_v61  ;;  %6919 = vmatmul.mubr.msk.bf16.gmra.mxu1 %vm1688_vm2, %v7081_v62  ;;  %v650_v62 = vld [vmem:[#allocation2 + $0x408] sm:$0xff] }
  0x82   : > { %486 = vst.msk [vmem:[#allocation2 + $0x6e8] sm:$0xff] %vm264_vm3, %v7183_v41  ;;  %487 = vst.msk [vmem:[#allocation2 + $0x6f0] sm:$0xff] %vm264_vm3, %v7183_v41  ;;  %6794 = vmatprep.mubr.msk.bf16.mxu0 %vm1688_vm2, %v7082_v63  ;;  %6922 = vmatprep.mubr.msk.bf16.mxu1 %vm1688_vm2, %v7083_v0  ;;  %v7128_v63 = vld [vmem:[%s7236_s24 + $0x198] sm:$0xff]  }
  0x83   : > { %488 = vst.msk [vmem:[#allocation2 + $0x6f8] sm:$0xff] %vm264_vm3, %v7183_v41  ;;  %489 = vst.msk [vmem:[#allocation2 + $0x700] sm:$0xff] %vm264_vm3, %v7183_v41  ;;  %v7129_v0 = vld [vmem:[%s7236_s24 + $0x398] sm:$0xff]  }
  0x84   : > { %490 = vst.msk [vmem:[#allocation2 + $0x708] sm:$0xff] %vm264_vm3, %v7183_v41  ;;  %491 = vst.msk [vmem:[#allocation2 + $0x710] sm:$0xff] %vm264_vm3, %v7183_v41 }
  0x85   : > { %492 = vst.msk [vmem:[#allocation2 + $0x718] sm:$0xff] %vm264_vm3, %v7183_v41  ;;  %493 = vst.msk [vmem:[#allocation2 + $0x720] sm:$0xff] %vm264_vm3, %v7183_v41 }
  0x86   : > { %494 = vst.msk [vmem:[#allocation2 + $0x728] sm:$0xff] %vm264_vm3, %v7183_v41  ;;  %495 = vst.msk [vmem:[#allocation2 + $0x730] sm:$0xff] %vm264_vm3, %v7183_v41 }
  0x87   : > { %496 = vst.msk [vmem:[#allocation2 + $0x738] sm:$0xff] %vm264_vm3, %v7183_v41  ;;  %497 = vst.msk [vmem:[#allocation2 + $0x740] sm:$0xff] %vm264_vm3, %v7183_v41 }
  0x88   : > { %498 = vst.msk [vmem:[#allocation2 + $0x748] sm:$0xff] %vm264_vm3, %v7183_v41  ;;  %499 = vst.msk [vmem:[#allocation2 + $0x750] sm:$0xff] %vm264_vm3, %v7183_v41 }
  0x89   : > { %500 = vst.msk [vmem:[#allocation2 + $0x758] sm:$0xff] %vm264_vm3, %v7183_v41  ;;  %501 = vst.msk [vmem:[#allocation2 + $0x760] sm:$0xff] %vm264_vm3, %v7183_v41  ;;  %6795 = vmatmul.mubr.msk.bf16.gmra.mxu0 %vm1688_vm2, %v7084_v1  ;;  %6923 = vmatmul.mubr.msk.bf16.gmra.mxu1 %vm1688_vm2, %v7085_v2 }
  0x8a   : > { %502 = vst.msk [vmem:[#allocation2 + $0x768] sm:$0xff] %vm264_vm3, %v7183_v41  ;;  %503 = vst.msk [vmem:[#allocation2 + $0x770] sm:$0xff] %vm264_vm3, %v7183_v41  ;;  %6798 = vmatprep.mubr.msk.bf16.mxu0 %vm1688_vm2, %v7086_v3  ;;  %6926 = vmatprep.mubr.msk.bf16.mxu1 %vm1688_vm2, %v7087_v4  ;;  %v7130_v3 = vld [vmem:[%s7236_s24 + $0x1a0] sm:$0xff]  }
  0x8b   : > { %504 = vst.msk [vmem:[#allocation2 + $0x778] sm:$0xff] %vm264_vm3, %v7183_v41  ;;  %505 = vst.msk [vmem:[#allocation2 + $0x780] sm:$0xff] %vm264_vm3, %v7183_v41  ;;  %v7131_v4 = vld [vmem:[%s7236_s24 + $0x3a0] sm:$0xff]  }
  0x8c   : > { %506 = vst.msk [vmem:[#allocation2 + $0x788] sm:$0xff] %vm264_vm3, %v7183_v41  ;;  %507 = vst.msk [vmem:[#allocation2 + $0x790] sm:$0xff] %vm264_vm3, %v7183_v41 }
  0x8d   : > { %508 = vst.msk [vmem:[#allocation2 + $0x798] sm:$0xff] %vm264_vm3, %v7183_v41  ;;  %509 = vst.msk [vmem:[#allocation2 + $0x7a0] sm:$0xff] %vm264_vm3, %v7183_v41 }
  0x8e   : > { %510 = vst.msk [vmem:[#allocation2 + $0x7a8] sm:$0xff] %vm264_vm3, %v7183_v41  ;;  %511 = vst.msk [vmem:[#allocation2 + $0x7b0] sm:$0xff] %vm264_vm3, %v7183_v41 }
  0x8f   : > { %512 = vst.msk [vmem:[#allocation2 + $0x7b8] sm:$0xff] %vm264_vm3, %v7183_v41  ;;  %513 = vst.msk [vmem:[#allocation2 + $0x7c0] sm:$0xff] %vm264_vm3, %v7183_v41 }
  0x90   : > { %514 = vst.msk [vmem:[#allocation2 + $0x7c8] sm:$0xff] %vm264_vm3, %v7183_v41  ;;  %515 = vst.msk [vmem:[#allocation2 + $0x7d0] sm:$0xff] %vm264_vm3, %v7183_v41 }
  0x91   : > { %516 = vst.msk [vmem:[#allocation2 + $0x7d8] sm:$0xff] %vm264_vm3, %v7183_v41  ;;  %517 = vst.msk [vmem:[#allocation2 + $0x7e0] sm:$0xff] %vm264_vm3, %v7183_v41  ;;  %6799 = vmatmul.mubr.msk.bf16.gmra.mxu0 %vm1688_vm2, %v7088_v5  ;;  %6927 = vmatmul.mubr.msk.bf16.gmra.mxu1 %vm1688_vm2, %v7089_v6 }
  0x92   : > { %518 = vst.msk [vmem:[#allocation2 + $0x7e8] sm:$0xff] %vm264_vm3, %v7183_v41  ;;  %519 = vst.msk [vmem:[#allocation2 + $0x7f0] sm:$0xff] %vm264_vm3, %v7183_v41  ;;  %6802 = vmatprep.mubr.msk.bf16.mxu0 %vm1688_vm2, %v7090_v7  ;;  %6930 = vmatprep.mubr.msk.bf16.mxu1 %vm1688_vm2, %v7091_v8  ;;  %v527_v7 = vld [vmem:[#allocation2 + $0x30] sm:$0xff] }
  0x93   : > { %520 = vst.msk [vmem:[#allocation2 + $0x7f8] sm:$0xff] %vm264_vm3, %v7183_v41  ;;  %v7124_v41 = vld [vmem:[%s7236_s24 + $0x188] sm:$0xff]   ;;  %v655_v8 = vld [vmem:[#allocation2 + $0x430] sm:$0xff] }
  0x99   : > { %6803 = vmatmul.mubr.msk.bf16.gmra.mxu0 %vm1688_vm2, %v7092_v9  ;;  %6931 = vmatmul.mubr.msk.bf16.gmra.mxu1 %vm1688_vm2, %v7093_v10 }
  0x9a   : > { %6806 = vmatprep.mubr.msk.bf16.mxu0 %vm1688_vm2, %v7094_v11  ;;  %6934 = vmatprep.mubr.msk.bf16.mxu1 %vm1688_vm2, %v7095_v12  ;;  %v7970_v11 = vld [vmem:[%s9445_s2] ss:$0 sm:$0xff] }
  0xa1   : > { %6807 = vmatmul.mubr.msk.bf16.gmra.mxu0 %vm1688_vm2, %v7096_v13  ;;  %6935 = vmatmul.mubr.msk.bf16.gmra.mxu1 %vm1688_vm2, %v7097_v14  ;;  %v525_v14 = vld [vmem:[#allocation2 + $0x20] sm:$0xff] }
  0xa2   : > { %6810 = vmatprep.mubr.msk.bf16.mxu0 %vm1688_vm2, %v7098_v15  ;;  %6938 = vmatprep.mubr.msk.bf16.mxu1 %vm1688_vm2, %v7099_v16  ;;  %v653_v15 = vld [vmem:[#allocation2 + $0x420] sm:$0xff] }
  0xa9   : > { %6811 = vmatmul.mubr.msk.bf16.gmra.mxu0 %vm1688_vm2, %v7100_v17  ;;  %6939 = vmatmul.mubr.msk.bf16.gmra.mxu1 %vm1688_vm2, %v7101_v18 }
  0xaa   : > { %6814 = vmatprep.mubr.msk.bf16.mxu0 %vm1688_vm2, %v7102_v19  ;;  %6942 = vmatprep.mubr.msk.bf16.mxu1 %vm1688_vm2, %v7103_v20 }
  0xb1   : > { %6815 = vmatmul.mubr.msk.bf16.gmra.mxu0 %vm1688_vm2, %v7104_v21  ;;  %6943 = vmatmul.mubr.msk.bf16.gmra.mxu1 %vm1688_vm2, %v7105_v22 }
  0xb2   : > { %6818 = vmatprep.mubr.msk.bf16.mxu0 %vm1688_vm2, %v7106_v23  ;;  %6946 = vmatprep.mubr.msk.bf16.mxu1 %vm1688_vm2, %v7107_v24 }
  0xb9   : > { %6819 = vmatmul.mubr.msk.bf16.gmra.mxu0 %vm1688_vm2, %v7108_v25  ;;  %6947 = vmatmul.mubr.msk.bf16.gmra.mxu1 %vm1688_vm2, %v7109_v26  ;;  %v528_v26 = vld [vmem:[#allocation2 + $0x38] sm:$0xff] }
  0xba   : > { %6822 = vmatprep.mubr.msk.bf16.mxu0 %vm1688_vm2, %v7110_v27  ;;  %6950 = vmatprep.mubr.msk.bf16.mxu1 %vm1688_vm2, %v7111_v28  ;;  %v656_v27 = vld [vmem:[#allocation2 + $0x438] sm:$0xff]  ;;  %v526_v28 = vld [vmem:[#allocation2 + $0x28] sm:$0xff] }
  0xc1   : > { %6823 = vmatmul.mubr.msk.bf16.gmra.mxu0 %vm1688_vm2, %v7112_v29  ;;  %6951 = vmatmul.mubr.msk.bf16.gmra.mxu1 %vm1688_vm2, %v7113_v30 }
  0xc2   : > { %6826 = vmatprep.mubr.msk.bf16.mxu0 %vm1688_vm2, %v7114_v31  ;;  %6954 = vmatprep.mubr.msk.bf16.mxu1 %vm1688_vm2, %v7115_v32 }
  0xc9   : > { %6827 = vmatmul.mubr.msk.bf16.gmra.mxu0 %vm1688_vm2, %v7116_v33  ;;  %6955 = vmatmul.mubr.msk.bf16.gmra.mxu1 %vm1688_vm2, %v7117_v34  ;;  %v7132_v33 = vld [vmem:[%s7236_s24 + $0x1a8] sm:$0xff]  }
  0xca   : > { %6830 = vmatprep.mubr.msk.bf16.mxu0 %vm1688_vm2, %v7118_v35  ;;  %6958 = vmatprep.mubr.msk.bf16.mxu1 %vm1688_vm2, %v7119_v36 }
  0xd1   : > { %6831 = vmatmul.mubr.msk.bf16.gmra.mxu0 %vm1688_vm2, %v7120_v37  ;;  %6959 = vmatmul.mubr.msk.bf16.gmra.mxu1 %vm1688_vm2, %v7121_v38  ;;  %v654_v38 = vld [vmem:[#allocation2 + $0x428] sm:$0xff] }
  0xd2   : > { %6834 = vmatprep.mubr.msk.bf16.mxu0 %vm1688_vm2, %v7122_v39  ;;  %6962 = vmatprep.mubr.msk.bf16.mxu1 %vm1688_vm2, %v7123_v40  ;;  %v7133_v39 = vld [vmem:[%s7236_s24 + $0x3a8] sm:$0xff]   ;;  %v7134_v40 = vld [vmem:[%s7236_s24 + $0x1b0] sm:$0xff]  }
  0xd9   : > { %v6740_v47 = vpop.f32.mrf.mxu0  ;;  %6835 = vmatmul.mubr.msk.bf16.gmra.mxu0 %vm1688_vm2, %v7124_v41  ;;  %v6868_v48 = vpop.f32.mrf.mxu1  ;;  %6963 = vmatmul.mubr.msk.bf16.gmra.mxu1 %vm1688_vm2, %v7125_v42 }
  0xda   : > { %v3139_v51 = vadd.f32 %v6740_v47, %v523_v45  ;;  %v3267_v52 = vadd.f32 %v6868_v48, %v651_v46  ;;  %6838 = vmatprep.mubr.msk.bf16.mxu0 %vm1688_vm2, %v7126_v43  ;;  %6966 = vmatprep.mubr.msk.bf16.mxu1 %vm1688_vm2, %v7127_v44  ;;  %v7135_v47 = vld [vmem:[%s7236_s24 + $0x3b0] sm:$0xff]  }
  0xdb   : > { %v2114_v53 = vpop.f32.mrf.mxu0  ;;  %v2626_v54 = vpop.f32.mrf.mxu1 }
  0xdc   : > { %3396 = vst.msk [vmem:[#allocation2 + $0x10] sm:$0xff] %vm264_vm3, %v3139_v51  ;;  %3524 = vst.msk [vmem:[#allocation2 + $0x410] sm:$0xff] %vm264_vm3, %v3267_v52  ;;  %v3137_v57 = vadd.f32 %v2114_v53, %v521_v49  ;;  %v3265_v58 = vadd.f32 %v2626_v54, %v649_v50  ;;  %v531_v52 = vld [vmem:[#allocation2 + $0x50] sm:$0xff] }
  0xdd   : > { %v6741_v60 = vpop.f32.mrf.mxu0  ;;  %v6869_v61 = vpop.f32.mrf.mxu1  ;;  %v659_v53 = vld [vmem:[#allocation2 + $0x450] sm:$0xff] }
  0xde   : > { %3394 = vst.msk [vmem:[#allocation2] sm:$0xff] %vm264_vm3, %v3137_v57  ;;  %3522 = vst.msk [vmem:[#allocation2 + $0x400] sm:$0xff] %vm264_vm3, %v3265_v58  ;;  %v3140_v1 = vadd.f32 %v6741_v60, %v524_v55  ;;  %v3268_v2 = vadd.f32 %v6869_v61, %v652_v56 }
  0xdf   : > { %v2117_v5 = vpop.f32.mrf.mxu0  ;;  %v2629_v6 = vpop.f32.mrf.mxu1 }
  0xe0   : > { %3397 = vst.msk [vmem:[#allocation2 + $0x18] sm:$0xff] %vm264_vm3, %v3140_v1  ;;  %3525 = vst.msk [vmem:[#allocation2 + $0x418] sm:$0xff] %vm264_vm3, %v3268_v2  ;;  %v3138_v9 = vadd.f32 %v2117_v5, %v522_v59  ;;  %v3266_v10 = vadd.f32 %v2629_v6, %v650_v62  ;;  %v529_v2 = vld [vmem:[#allocation2 + $0x40] sm:$0xff] }
  0xe1   : > { %v6744_v12 = vpop.f32.mrf.mxu0  ;;  %6839 = vmatmul.mubr.msk.bf16.gmra.mxu0 %vm1688_vm2, %v7128_v63  ;;  %v6872_v13 = vpop.f32.mrf.mxu1  ;;  %6967 = vmatmul.mubr.msk.bf16.gmra.mxu1 %vm1688_vm2, %v7129_v0 }
  0xe2   : > { %3395 = vst.msk [vmem:[#allocation2 + $0x8] sm:$0xff] %vm264_vm3, %v3138_v9  ;;  %3523 = vst.msk [vmem:[#allocation2 + $0x408] sm:$0xff] %vm264_vm3, %v3266_v10  ;;  %v3143_v16 = vadd.f32 %v6744_v12, %v527_v7  ;;  %v3271_v17 = vadd.f32 %v6872_v13, %v655_v8  ;;  %6842 = vmatprep.mubr.msk.bf16.mxu0 %vm1688_vm2, %v7130_v3  ;;  %6970 = vmatprep.mubr.msk.bf16.mxu1 %vm1688_vm2, %v7131_v4  ;;  %v657_v3 = vld [vmem:[#allocation2 + $0x440] sm:$0xff]  ;;  %v532_v13 = vld [vmem:[#allocation2 + $0x58] sm:$0xff] }
  0xe3   : > { %v3655_v18 = vld [vmem:[#allocation2 + $0x10] sm:$0xff]  ;;  %v2130_v20 = vpop.f32.mrf.mxu0  ;;  %v2642_v21 = vpop.f32.mrf.mxu1 }
  0xe4   : > { %v3783_v19 = vld [vmem:[#allocation2 + $0x410] sm:$0xff]  ;;  %v3918_v22 = vadd.f32 %v7970_v11, %v3655_v18  ;;  %3400 = vst.msk [vmem:[#allocation2 + $0x30] sm:$0xff] %vm264_vm3, %v3143_v16  ;;  %3528 = vst.msk [vmem:[#allocation2 + $0x430] sm:$0xff] %vm264_vm3, %v3271_v17  ;;  %v3141_v24 = vadd.f32 %v2130_v20, %v525_v14  ;;  %v3269_v25 = vadd.f32 %v2642_v21, %v653_v15  ;;  %v660_v18 = vld [vmem:[#allocation2 + $0x458] sm:$0xff] }
  0xe5   : > { %v4046_v23 = vadd.f32 %v7970_v11, %v3783_v19  ;;  %v3653_v29 = vld [vmem:[#allocation2] sm:$0xff]  ;;  %v6745_v31 = vpop.f32.mrf.mxu0  ;;  %v6873_v32 = vpop.f32.mrf.mxu1  ;;  %v530_v19 = vld [vmem:[#allocation2 + $0x48] sm:$0xff] }
  0xe6   : > { %v3781_v30 = vld [vmem:[#allocation2 + $0x400] sm:$0xff]  ;;  %v4174_v34 = vmax.f32 %v3918_v22, 0.0  ;;  %v3916_v36 = vadd.f32 %v7970_v11, %v3653_v29  ;;  %3398 = vst.msk [vmem:[#allocation2 + $0x20] sm:$0xff] %vm264_vm3, %v3141_v24  ;;  %3526 = vst.msk [vmem:[#allocation2 + $0x420] sm:$0xff] %vm264_vm3, %v3269_v25  ;;  %v3144_v43 = vadd.f32 %v6745_v31, %v528_v26  ;;  %v3272_v44 = vadd.f32 %v6873_v32, %v656_v27  ;;  %v658_v20 = vld [vmem:[#allocation2 + $0x448] sm:$0xff] }
  0xe7   : > { %v4302_v35 = vmax.f32 %v4046_v23, 0.0  ;;  %v4044_v37 = vadd.f32 %v7970_v11, %v3781_v30  ;;  %v3656_v41 = vld [vmem:[#allocation2 + $0x18] sm:$0xff]  ;;  %v2133_v45 = vpop.f32.mrf.mxu0  ;;  %v2645_v46 = vpop.f32.mrf.mxu1 }
  0xe8   : > { %v3784_v42 = vld [vmem:[#allocation2 + $0x418] sm:$0xff]  ;;  %v6350_v48 = vpack.c.bf16 %v4174_v34, %v4174_v34  ;;  %v4172_v50 = vmax.f32 %v3916_v36, 0.0  ;;  %v3919_v54 = vadd.f32 %v7970_v11, %v3656_v41  ;;  %3401 = vst.msk [vmem:[#allocation2 + $0x38] sm:$0xff] %vm264_vm3, %v3144_v43  ;;  %3529 = vst.msk [vmem:[#allocation2 + $0x438] sm:$0xff] %vm264_vm3, %v3272_v44  ;;  %v3142_v58 = vadd.f32 %v2133_v45, %v526_v28  ;;  %v663_v43 = vld [vmem:[#allocation2 + $0x470] sm:$0xff] }
  0xe9   : > { %v6478_v49 = vpack.c.bf16 %v4302_v35, %v4302_v35  ;;  %v4300_v51 = vmax.f32 %v4044_v37, 0.0  ;;  %v4047_v55 = vadd.f32 %v7970_v11, %v3784_v42  ;;  %v3654_v56 = vld [vmem:[#allocation2 + $0x8] sm:$0xff]  ;;  %v3270_v59 = vadd.f32 %v2645_v46, %v654_v38  ;;  %v6748_v60 = vpop.f32.mrf.mxu0  ;;  %6843 = vmatmul.mubr.msk.bf16.gmra.mxu0 %vm1688_vm2, %v7132_v33  ;;  %v6876_v61 = vpop.f32.mrf.mxu1  ;;  %6971 = vmatmul.mubr.msk.bf16.gmra.mxu1 %vm1688_vm2, %v7133_v39  ;;  %v7136_v29 = vld [vmem:[%s7236_s24 + $0x1b8] sm:$0xff]   ;;  %v7138_v35 = vld [vmem:[%s7236_s24 + $0x1c0] sm:$0xff]  }
  0xea   : > { %v3782_v57 = vld [vmem:[#allocation2 + $0x408] sm:$0xff]  ;;  %5455 = vst.msk [vmem:[%s7994_s29 + $0x8] sm:$0xf] %vm5452_vm4, %v6350_v48  ;;  %v6348_v62 = vpack.c.bf16 %v4172_v50, %v4172_v50  ;;  %v3917_v0 = vadd.f32 %v7970_v11, %v3654_v56  ;;  %v4175_v4 = vmax.f32 %v3919_v54, 0.0  ;;  %v3147_v8 = vadd.f32 %v6748_v60, %v531_v52  ;;  %6846 = vmatprep.mubr.msk.bf16.mxu0 %vm1688_vm2, %v7134_v40  ;;  %v7137_v34 = vld [vmem:[%s7236_s24 + $0x3b8] sm:$0xff]   ;;  %v535_v42 = vld [vmem:[#allocation2 + $0x70] sm:$0xff] }
  0xeb   : > { %5583 = vst.msk [vmem:[%s7994_s29 + $0x208] sm:$0xf] %vm5452_vm4, %v6478_v49  ;;  %v6476_v63 = vpack.c.bf16 %v4300_v51, %v4300_v51  ;;  %v4045_v1 = vadd.f32 %v7970_v11, %v3782_v57  ;;  %v4303_v5 = vmax.f32 %v4047_v55, 0.0  ;;  %v3659_v6 = vld [vmem:[#allocation2 + $0x30] sm:$0xff]  ;;  %v3275_v9 = vadd.f32 %v6876_v61, %v659_v53  ;;  %v2146_v10 = vpop.f32.mrf.mxu0  ;;  %v2658_v12 = vpop.f32.mrf.mxu1  ;;  %6974 = vmatprep.mubr.msk.bf16.mxu1 %vm1688_vm2, %v7135_v47  ;;  %v7139_v44 = vld [vmem:[%s7236_s24 + $0x3c0] sm:$0xff]  }
  0xec   : > { %v3787_v7 = vld [vmem:[#allocation2 + $0x430] sm:$0xff]  ;;  %3399 = vst.msk [vmem:[#allocation2 + $0x28] sm:$0xff] %vm264_vm3, %v3142_v58  ;;  %3527 = vst.msk [vmem:[#allocation2 + $0x428] sm:$0xff] %vm264_vm3, %v3270_v59  ;;  %v4173_v14 = vmax.f32 %v3917_v0, 0.0  ;;  %v3922_v16 = vadd.f32 %v7970_v11, %v3659_v6  ;;  %v6351_v21 = vpack.c.bf16 %v4175_v4, %v4175_v4  ;;  %v3145_v25 = vadd.f32 %v2146_v10, %v529_v2  ;;  %v533_v57 = vld [vmem:[#allocation2 + $0x60] sm:$0xff] }
  0xed   : > { %5453 = vst.msk [vmem:[%s7994_s29] sm:$0xf] %vm5452_vm4, %v6348_v62  ;;  %5581 = vst.msk [vmem:[%s7994_s29 + $0x200] sm:$0xf] %vm5452_vm4, %v6476_v63  ;;  %v4301_v15 = vmax.f32 %v4045_v1, 0.0  ;;  %v4050_v17 = vadd.f32 %v7970_v11, %v3787_v7  ;;  %v6479_v22 = vpack.c.bf16 %v4303_v5, %v4303_v5  ;;  %v3657_v23 = vld [vmem:[#allocation2 + $0x20] sm:$0xff]  ;;  %v3273_v26 = vadd.f32 %v2658_v12, %v657_v3  ;;  %v6749_v27 = vpop.f32.mrf.mxu0  ;;  %v6877_v28 = vpop.f32.mrf.mxu1 }
  0xee   : > { %v3785_v24 = vld [vmem:[#allocation2 + $0x420] sm:$0xff]  ;;  %3404 = vst.msk [vmem:[#allocation2 + $0x50] sm:$0xff] %vm264_vm3, %v3147_v8  ;;  %3532 = vst.msk [vmem:[#allocation2 + $0x450] sm:$0xff] %vm264_vm3, %v3275_v9  ;;  %v6349_v30 = vpack.c.bf16 %v4173_v14, %v4173_v14  ;;  %v4178_v32 = vmax.f32 %v3922_v16, 0.0  ;;  %v3920_v36 = vadd.f32 %v7970_v11, %v3657_v23  ;;  %v3148_v38 = vadd.f32 %v6749_v27, %v532_v13  ;;  %v536_v5 = vld [vmem:[#allocation2 + $0x78] sm:$0xff] }
  0xef   : > { %v6477_v31 = vpack.c.bf16 %v4301_v15, %v4301_v15  ;;  %v4306_v33 = vmax.f32 %v4050_v17, 0.0  ;;  %5456 = vst.msk [vmem:[%s7994_s29 + $0xc] sm:$0xf] %vm5452_vm4, %v6351_v21  ;;  %5584 = vst.msk [vmem:[%s7994_s29 + $0x20c] sm:$0xf] %vm5452_vm4, %v6479_v22  ;;  %v4048_v37 = vadd.f32 %v7970_v11, %v3785_v24  ;;  %v3276_v39 = vadd.f32 %v6877_v28, %v660_v18  ;;  %v2149_v40 = vpop.f32.mrf.mxu0  ;;  %v2661_v41 = vpop.f32.mrf.mxu1  ;;  %v3660_v47 = vld [vmem:[#allocation2 + $0x38] sm:$0xff] }
  0xf0   : > { %3402 = vst.msk [vmem:[#allocation2 + $0x40] sm:$0xff] %vm264_vm3, %v3145_v25  ;;  %3530 = vst.msk [vmem:[#allocation2 + $0x440] sm:$0xff] %vm264_vm3, %v3273_v26  ;;  %v6354_v45 = vpack.c.bf16 %v4178_v32, %v4178_v32  ;;  %v3788_v48 = vld [vmem:[#allocation2 + $0x438] sm:$0xff]  ;;  %v3146_v49 = vadd.f32 %v2149_v40, %v530_v19  ;;  %v3274_v50 = vadd.f32 %v2661_v41, %v658_v20  ;;  %v4176_v51 = vmax.f32 %v3920_v36, 0.0  ;;  %v661_v58 = vld [vmem:[#allocation2 + $0x460] sm:$0xff] }
  0xf1   : > { %5454 = vst.msk [vmem:[%s7994_s29 + $0x4] sm:$0xf] %vm5452_vm4, %v6349_v30  ;;  %5582 = vst.msk [vmem:[%s7994_s29 + $0x204] sm:$0xf] %vm5452_vm4, %v6477_v31  ;;  %v6482_v46 = vpack.c.bf16 %v4306_v33, %v4306_v33  ;;  %v4304_v52 = vmax.f32 %v4048_v37, 0.0  ;;  %v3923_v53 = vadd.f32 %v7970_v11, %v3660_v47  ;;  %v4051_v54 = vadd.f32 %v7970_v11, %v3788_v48  ;;  %v6752_v55 = vpop.f32.mrf.mxu0  ;;  %v6880_v56 = vpop.f32.mrf.mxu1  ;;  %v664_v6 = vld [vmem:[#allocation2 + $0x478] sm:$0xff] }
  0xf2   : > { %3405 = vst.msk [vmem:[#allocation2 + $0x58] sm:$0xff] %vm264_vm3, %v3148_v38  ;;  %3533 = vst.msk [vmem:[#allocation2 + $0x458] sm:$0xff] %vm264_vm3, %v3276_v39  ;;  %6847 = vmatmul.mubr.msk.bf16.gmra.mxu0 %vm1688_vm2, %v7136_v29  ;;  %v3151_v61 = vadd.f32 %v6752_v55, %v535_v42  ;;  %v3279_v62 = vadd.f32 %v6880_v56, %v663_v43  ;;  %6975 = vmatmul.mubr.msk.bf16.gmra.mxu1 %vm1688_vm2, %v7137_v34  ;;  %v534_v20 = vld [vmem:[#allocation2 + $0x68] sm:$0xff]  ;;  %v539_v36 = vld [vmem:[#allocation2 + $0x90] sm:$0xff] }
  0xf3   : > { %5459 = vst.msk [vmem:[%s7994_s29 + $0x18] sm:$0xf] %vm5452_vm4, %v6354_v45  ;;  %5587 = vst.msk [vmem:[%s7994_s29 + $0x218] sm:$0xf] %vm5452_vm4, %v6482_v46  ;;  %v3658_v59 = vld [vmem:[#allocation2 + $0x28] sm:$0xff]  ;;  %6850 = vmatprep.mubr.msk.bf16.mxu0 %vm1688_vm2, %v7138_v35  ;;  %v6352_v63 = vpack.c.bf16 %v4176_v51, %v4176_v51  ;;  %v6480_v0 = vpack.c.bf16 %v4304_v52, %v4304_v52  ;;  %v4179_v1 = vmax.f32 %v3923_v53, 0.0  ;;  %v2162_v3 = vpop.f32.mrf.mxu0  ;;  %v2674_v4 = vpop.f32.mrf.mxu1  ;;  %6978 = vmatprep.mubr.msk.bf16.mxu1 %vm1688_vm2, %v7139_v44 }
  0xf4   : > { %v3786_v60 = vld [vmem:[#allocation2 + $0x428] sm:$0xff]  ;;  %3403 = vst.msk [vmem:[#allocation2 + $0x48] sm:$0xff] %vm264_vm3, %v3146_v49  ;;  %3531 = vst.msk [vmem:[#allocation2 + $0x448] sm:$0xff] %vm264_vm3, %v3274_v50  ;;  %v4307_v2 = vmax.f32 %v4051_v54, 0.0  ;;  %v3921_v7 = vadd.f32 %v7970_v11, %v3658_v59  ;;  %v3149_v12 = vadd.f32 %v2162_v3, %v533_v57  ;;  %v3277_v13 = vadd.f32 %v2674_v4, %v661_v58  ;;  %v667_v37 = vld [vmem:[#allocation2 + $0x490] sm:$0xff] }
  0xf5   : > { %v4049_v8 = vadd.f32 %v7970_v11, %v3786_v60  ;;  %v3663_v9 = vld [vmem:[#allocation2 + $0x50] sm:$0xff]  ;;  %3408 = vst.msk [vmem:[#allocation2 + $0x70] sm:$0xff] %vm264_vm3, %v3151_v61  ;;  %3536 = vst.msk [vmem:[#allocation2 + $0x470] sm:$0xff] %vm264_vm3, %v3279_v62  ;;  %v6355_v14 = vpack.c.bf16 %v4179_v1, %v4179_v1  ;;  %v6753_v18 = vpop.f32.mrf.mxu0  ;;  %v6881_v19 = vpop.f32.mrf.mxu1  ;;  %v662_v21 = vld [vmem:[#allocation2 + $0x468] sm:$0xff] }
  0xf6   : > { %v3791_v10 = vld [vmem:[#allocation2 + $0x450] sm:$0xff]  ;;  %5457 = vst.msk [vmem:[%s7994_s29 + $0x10] sm:$0xf] %vm5452_vm4, %v6352_v63  ;;  %5585 = vst.msk [vmem:[%s7994_s29 + $0x210] sm:$0xf] %vm5452_vm4, %v6480_v0  ;;  %v6483_v15 = vpack.c.bf16 %v4307_v2, %v4307_v2  ;;  %v3926_v16 = vadd.f32 %v7970_v11, %v3663_v9  ;;  %v7140_v22 = vld [vmem:[%s7236_s24 + $0x1c8] sm:$0xff]   ;;  %v3152_v27 = vadd.f32 %v6753_v18, %v536_v5 }
  0xf7   : > { %v4054_v17 = vadd.f32 %v7970_v11, %v3791_v10  ;;  %v4177_v23 = vmax.f32 %v3921_v7, 0.0  ;;  %v4305_v24 = vmax.f32 %v4049_v8, 0.0  ;;  %v3661_v25 = vld [vmem:[#allocation2 + $0x40] sm:$0xff]  ;;  %3406 = vst.msk [vmem:[#allocation2 + $0x60] sm:$0xff] %vm264_vm3, %v3149_v12  ;;  %3534 = vst.msk [vmem:[#allocation2 + $0x460] sm:$0xff] %vm264_vm3, %v3277_v13  ;;  %v3280_v28 = vadd.f32 %v6881_v19, %v664_v6  ;;  %v7141_v29 = vld [vmem:[%s7236_s24 + $0x3c8] sm:$0xff]   ;;  %v2165_v34 = vpop.f32.mrf.mxu0  ;;  %v2677_v35 = vpop.f32.mrf.mxu1 }
  0xf8   : > { %v3789_v26 = vld [vmem:[#allocation2 + $0x440] sm:$0xff]  ;;  %5460 = vst.msk [vmem:[%s7994_s29 + $0x1c] sm:$0xf] %vm5452_vm4, %v6355_v14  ;;  %5588 = vst.msk [vmem:[%s7994_s29 + $0x21c] sm:$0xf] %vm5452_vm4, %v6483_v15  ;;  %v4182_v30 = vmax.f32 %v3926_v16, 0.0  ;;  %v3924_v32 = vadd.f32 %v7970_v11, %v3661_v25  ;;  %v3150_v43 = vadd.f32 %v2165_v34, %v534_v20  ;;  %v3278_v44 = vadd.f32 %v2677_v35, %v662_v21 }
  0xf9   : > { %v4310_v31 = vmax.f32 %v4054_v17, 0.0  ;;  %v4052_v33 = vadd.f32 %v7970_v11, %v3789_v26  ;;  %v7142_v38 = vld [vmem:[%s7236_s24 + $0x1d0] sm:$0xff]   ;;  %v6353_v39 = vpack.c.bf16 %v4177_v23, %v4177_v23  ;;  %v6481_v40 = vpack.c.bf16 %v4305_v24, %v4305_v24  ;;  %v3664_v41 = vld [vmem:[#allocation2 + $0x58] sm:$0xff]  ;;  %3409 = vst.msk [vmem:[#allocation2 + $0x78] sm:$0xff] %vm264_vm3, %v3152_v27  ;;  %3537 = vst.msk [vmem:[#allocation2 + $0x478] sm:$0xff] %vm264_vm3, %v3280_v28  ;;  %v6756_v52 = vpop.f32.mrf.mxu0  ;;  %v6884_v53 = vpop.f32.mrf.mxu1 }
  0xfa   : > { %v3792_v42 = vld [vmem:[#allocation2 + $0x458] sm:$0xff]  ;;  %v7143_v45 = vld [vmem:[%s7236_s24 + $0x3d0] sm:$0xff]   ;;  %v6358_v46 = vpack.c.bf16 %v4182_v30, %v4182_v30  ;;  %v4180_v48 = vmax.f32 %v3924_v32, 0.0  ;;  %6851 = vmatmul.mubr.msk.bf16.gmra.mxu0 %vm1688_vm2, %v7140_v22  ;;  %v3927_v54 = vadd.f32 %v7970_v11, %v3664_v41  ;;  %3407 = vst.msk [vmem:[#allocation2 + $0x68] sm:$0xff] %vm264_vm3, %v3150_v43  ;;  %3535 = vst.msk [vmem:[#allocation2 + $0x468] sm:$0xff] %vm264_vm3, %v3278_v44  ;;  %6979 = vmatmul.mubr.msk.bf16.gmra.mxu1 %vm1688_vm2, %v7141_v29 }
  0xfb   : > { %v6486_v47 = vpack.c.bf16 %v4310_v31, %v4310_v31  ;;  %v4308_v49 = vmax.f32 %v4052_v33, 0.0  ;;  %v3662_v50 = vld [vmem:[#allocation2 + $0x48] sm:$0xff]  ;;  %5458 = vst.msk [vmem:[%s7994_s29 + $0x14] sm:$0xf] %vm5452_vm4, %v6353_v39  ;;  %5586 = vst.msk [vmem:[%s7994_s29 + $0x214] sm:$0xf] %vm5452_vm4, %v6481_v40  ;;  %v4055_v55 = vadd.f32 %v7970_v11, %v3792_v42  ;;  %v3155_v0 = vadd.f32 %v6756_v52, %v539_v36  ;;  %v2178_v2 = vpop.f32.mrf.mxu0  ;;  %v2690_v3 = vpop.f32.mrf.mxu1 }
  0xfc   : > { %v3790_v51 = vld [vmem:[#allocation2 + $0x448] sm:$0xff]  ;;  %v3925_v56 = vadd.f32 %v7970_v11, %v3662_v50  ;;  %v537_v58 = vld [vmem:[#allocation2 + $0x80] sm:$0xff]  ;;  %5463 = vst.msk [vmem:[%s7994_s29 + $0x28] sm:$0xf] %vm5452_vm4, %v6358_v46  ;;  %v6356_v60 = vpack.c.bf16 %v4180_v48, %v4180_v48  ;;  %v3667_v62 = vld [vmem:[#allocation2 + $0x70] sm:$0xff]  ;;  %v3283_v1 = vadd.f32 %v6884_v53, %v667_v37  ;;  %6854 = vmatprep.mubr.msk.bf16.mxu0 %vm1688_vm2, %v7142_v38  ;;  %v4183_v4 = vmax.f32 %v3927_v54, 0.0 }
  0xfd   : > { %v4053_v57 = vadd.f32 %v7970_v11, %v3790_v51  ;;  %v665_v59 = vld [vmem:[#allocation2 + $0x480] sm:$0xff]  ;;  %5591 = vst.msk [vmem:[%s7994_s29 + $0x228] sm:$0xf] %vm5452_vm4, %v6486_v47  ;;  %v6484_v61 = vpack.c.bf16 %v4308_v49, %v4308_v49  ;;  %v3795_v63 = vld [vmem:[#allocation2 + $0x470] sm:$0xff]  ;;  %v4311_v5 = vmax.f32 %v4055_v55, 0.0  ;;  %v540_v8 = vld [vmem:[#allocation2 + $0x98] sm:$0xff]  ;;  %6982 = vmatprep.mubr.msk.bf16.mxu1 %vm1688_vm2, %v7143_v45  ;;  %v3930_v10 = vadd.f32 %v7970_v11, %v3667_v62  ;;  %v6757_v17 = vpop.f32.mrf.mxu0  ;;  %v6885_v18 = vpop.f32.mrf.mxu1 }
  0xfe   : > { %v4181_v6 = vmax.f32 %v3925_v56, 0.0  ;;  %v668_v9 = vld [vmem:[#allocation2 + $0x498] sm:$0xff]  ;;  %5461 = vst.msk [vmem:[%s7994_s29 + $0x20] sm:$0xf] %vm5452_vm4, %v6356_v60  ;;  %v4058_v12 = vadd.f32 %v7970_v11, %v3795_v63  ;;  %v3665_v13 = vld [vmem:[#allocation2 + $0x60] sm:$0xff]  ;;  %v3153_v15 = vadd.f32 %v2178_v2, %v537_v58  ;;  %v3281_v16 = vadd.f32 %v2690_v3, %v665_v59  ;;  %v538_v39 = vld [vmem:[#allocation2 + $0x88] sm:$0xff] }
  0xff   : > { %v4309_v7 = vmax.f32 %v4053_v57, 0.0  ;;  %5589 = vst.msk [vmem:[%s7994_s29 + $0x220] sm:$0xf] %vm5452_vm4, %v6484_v61  ;;  %v3793_v14 = vld [vmem:[#allocation2 + $0x460] sm:$0xff]  ;;  %v7144_v19 = vld [vmem:[%s7236_s24 + $0x1d8] sm:$0xff]   ;;  %v6359_v20 = vpack.c.bf16 %v4183_v4, %v4183_v4  ;;  %v6487_v21 = vpack.c.bf16 %v4311_v5, %v4311_v5  ;;  %v4186_v26 = vmax.f32 %v3930_v10, 0.0  ;;  %v2181_v32 = vpop.f32.mrf.mxu0  ;;  %v2693_v33 = vpop.f32.mrf.mxu1 }
 0x100   : > { %3412 = vst.msk [vmem:[#allocation2 + $0x90] sm:$0xff] %vm264_vm3, %v3155_v0  ;;  %3540 = vst.msk [vmem:[#allocation2 + $0x490] sm:$0xff] %vm264_vm3, %v3283_v1  ;;  %v6357_v22 = vpack.c.bf16 %v4181_v6, %v4181_v6  ;;  %v7145_v24 = vld [vmem:[%s7236_s24 + $0x3d8] sm:$0xff]   ;;  %v7146_v25 = vld [vmem:[%s7236_s24 + $0x1e0] sm:$0xff]   ;;  %v4314_v27 = vmax.f32 %v4058_v12, 0.0  ;;  %v3928_v28 = vadd.f32 %v7970_v11, %v3665_v13  ;;  %v4056_v29 = vadd.f32 %v7970_v11, %v3793_v14 }
 0x101   : > { %v6485_v23 = vpack.c.bf16 %v4309_v7, %v4309_v7  ;;  %v3668_v30 = vld [vmem:[#allocation2 + $0x78] sm:$0xff]  ;;  %3410 = vst.msk [vmem:[#allocation2 + $0x80] sm:$0xff] %vm264_vm3, %v3153_v15  ;;  %3538 = vst.msk [vmem:[#allocation2 + $0x480] sm:$0xff] %vm264_vm3, %v3281_v16  ;;  %v7147_v34 = vld [vmem:[%s7236_s24 + $0x3e0] sm:$0xff]   ;;  %v3156_v37 = vadd.f32 %v6757_v17, %v540_v8  ;;  %v3284_v38 = vadd.f32 %v6885_v18, %v668_v9  ;;  %v6760_v47 = vpop.f32.mrf.mxu0  ;;  %v6888_v48 = vpop.f32.mrf.mxu1 }
 0x102   : > { %v3796_v31 = vld [vmem:[#allocation2 + $0x478] sm:$0xff]  ;;  %5464 = vst.msk [vmem:[%s7994_s29 + $0x2c] sm:$0xf] %vm5452_vm4, %v6359_v20  ;;  %5592 = vst.msk [vmem:[%s7994_s29 + $0x22c] sm:$0xf] %vm5452_vm4, %v6487_v21  ;;  %v3931_v35 = vadd.f32 %v7970_v11, %v3668_v30  ;;  %v666_v40 = vld [vmem:[#allocation2 + $0x488] sm:$0xff]  ;;  %v6362_v41 = vpack.c.bf16 %v4186_v26, %v4186_v26  ;;  %v6490_v42 = vpack.c.bf16 %v4314_v27, %v4314_v27  ;;  %6855 = vmatmul.mubr.msk.bf16.gmra.mxu0 %vm1688_vm2, %v7144_v19 }
 0x103   : > { %5462 = vst.msk [vmem:[%s7994_s29 + $0x24] sm:$0xf] %vm5452_vm4, %v6357_v22  ;;  %5590 = vst.msk [vmem:[%s7994_s29 + $0x224] sm:$0xf] %vm5452_vm4, %v6485_v23  ;;  %v4059_v36 = vadd.f32 %v7970_v11, %v3796_v31  ;;  %v4184_v43 = vmax.f32 %v3928_v28, 0.0  ;;  %v4312_v44 = vmax.f32 %v4056_v29, 0.0  ;;  %6983 = vmatmul.mubr.msk.bf16.gmra.mxu1 %vm1688_vm2, %v7145_v24  ;;  %6858 = vmatprep.mubr.msk.bf16.mxu0 %vm1688_vm2, %v7146_v25  ;;  %v2194_v60 = vpop.f32.mrf.mxu0  ;;  %v2706_v62 = vpop.f32.mrf.mxu1 }
 0x104   : > { %v3666_v45 = vld [vmem:[#allocation2 + $0x68] sm:$0xff]  ;;  %v4187_v49 = vmax.f32 %v3931_v35, 0.0  ;;  %3413 = vst.msk [vmem:[#allocation2 + $0x98] sm:$0xff] %vm264_vm3, %v3156_v37  ;;  %3541 = vst.msk [vmem:[#allocation2 + $0x498] sm:$0xff] %vm264_vm3, %v3284_v38  ;;  %v543_v53 = vld [vmem:[#allocation2 + $0xb0] sm:$0xff]  ;;  %v3154_v58 = vadd.f32 %v2181_v32, %v538_v39  ;;  %v3282_v59 = vadd.f32 %v2693_v33, %v666_v40  ;;  %6986 = vmatprep.mubr.msk.bf16.mxu1 %vm1688_vm2, %v7147_v34 }
 0x105   : > { %v3794_v46 = vld [vmem:[#allocation2 + $0x468] sm:$0xff]  ;;  %v4315_v50 = vmax.f32 %v4059_v36, 0.0  ;;  %v3929_v51 = vadd.f32 %v7970_v11, %v3666_v45  ;;  %v671_v54 = vld [vmem:[#allocation2 + $0x4b0] sm:$0xff]  ;;  %v541_v55 = vld [vmem:[#allocation2 + $0xa0] sm:$0xff]  ;;  %5467 = vst.msk [vmem:[%s7994_s29 + $0x38] sm:$0xf] %vm5452_vm4, %v6362_v41  ;;  %v6360_v56 = vpack.c.bf16 %v4184_v43, %v4184_v43  ;;  %v6488_v57 = vpack.c.bf16 %v4312_v44, %v4312_v44  ;;  %v6761_v13 = vpop.f32.mrf.mxu0  ;;  %v6889_v14 = vpop.f32.mrf.mxu1 }
 0x106   : > { %v4057_v52 = vadd.f32 %v7970_v11, %v3794_v46  ;;  %5595 = vst.msk [vmem:[%s7994_s29 + $0x238] sm:$0xf] %vm5452_vm4, %v6490_v42  ;;  %v669_v61 = vld [vmem:[#allocation2 + $0x4a0] sm:$0xff]  ;;  %v544_v63 = vld [vmem:[#allocation2 + $0xb8] sm:$0xff]  ;;  %v6363_v1 = vpack.c.bf16 %v4187_v49, %v4187_v49  ;;  %v542_v7 = vld [vmem:[#allocation2 + $0xa8] sm:$0xff]  ;;  %v3159_v10 = vadd.f32 %v6760_v47, %v543_v53  ;;  %v3287_v12 = vadd.f32 %v6888_v48, %v671_v54 }
 0x107   : > { %v672_v0 = vld [vmem:[#allocation2 + $0x4b8] sm:$0xff]  ;;  %v6491_v2 = vpack.c.bf16 %v4315_v50, %v4315_v50  ;;  %v4185_v3 = vmax.f32 %v3929_v51, 0.0  ;;  %v3671_v5 = vld [vmem:[#allocation2 + $0x90] sm:$0xff]  ;;  %5465 = vst.msk [vmem:[%s7994_s29 + $0x30] sm:$0xf] %vm5452_vm4, %v6360_v56  ;;  %v670_v15 = vld [vmem:[#allocation2 + $0x4a8] sm:$0xff]  ;;  %v3157_v22 = vadd.f32 %v2194_v60, %v541_v55  ;;  %v3285_v23 = vadd.f32 %v2706_v62, %v669_v61  ;;  %v2197_v29 = vpop.f32.mrf.mxu0  ;;  %v2709_v30 = vpop.f32.mrf.mxu1 }
 0x108   : > { %v4313_v4 = vmax.f32 %v4057_v52, 0.0  ;;  %v3799_v6 = vld [vmem:[#allocation2 + $0x490] sm:$0xff]  ;;  %5593 = vst.msk [vmem:[%s7994_s29 + $0x230] sm:$0xf] %vm5452_vm4, %v6488_v57  ;;  %v3934_v8 = vadd.f32 %v7970_v11, %v3671_v5  ;;  %v7148_v17 = vld [vmem:[%s7236_s24 + $0x1e8] sm:$0xff]   ;;  %v3669_v20 = vld [vmem:[#allocation2 + $0x80] sm:$0xff]  ;;  %v3160_v34 = vadd.f32 %v6761_v13, %v544_v63  ;;  %v3288_v35 = vadd.f32 %v6889_v14, %v672_v0 }
 0x109   : > { %v4062_v9 = vadd.f32 %v7970_v11, %v3799_v6  ;;  %3411 = vst.msk [vmem:[#allocation2 + $0x88] sm:$0xff] %vm264_vm3, %v3154_v58  ;;  %3539 = vst.msk [vmem:[#allocation2 + $0x488] sm:$0xff] %vm264_vm3, %v3282_v59  ;;  %v547_v16 = vld [vmem:[#allocation2 + $0xd0] sm:$0xff]  ;;  %v6361_v18 = vpack.c.bf16 %v4185_v3, %v4185_v3  ;;  %v3797_v21 = vld [vmem:[#allocation2 + $0x480] sm:$0xff]  ;;  %v3932_v27 = vadd.f32 %v7970_v11, %v3669_v20  ;;  %v6764_v45 = vpop.f32.mrf.mxu0  ;;  %v6892_v46 = vpop.f32.mrf.mxu1 }
 0x10a   : > { %5468 = vst.msk [vmem:[%s7994_s29 + $0x3c] sm:$0xf] %vm5452_vm4, %v6363_v1  ;;  %5596 = vst.msk [vmem:[%s7994_s29 + $0x23c] sm:$0xf] %vm5452_vm4, %v6491_v2  ;;  %v6489_v19 = vpack.c.bf16 %v4313_v4, %v4313_v4  ;;  %v7149_v24 = vld [vmem:[%s7236_s24 + $0x3e8] sm:$0xff]   ;;  %v4190_v25 = vmax.f32 %v3934_v8, 0.0  ;;  %v4060_v28 = vadd.f32 %v7970_v11, %v3797_v21  ;;  %v3158_v36 = vadd.f32 %v2197_v29, %v542_v7 }
 0x10b   : > { %v4318_v26 = vmax.f32 %v4062_v9, 0.0  ;;  %3416 = vst.msk [vmem:[#allocation2 + $0xb0] sm:$0xff] %vm264_vm3, %v3159_v10  ;;  %3544 = vst.msk [vmem:[#allocation2 + $0x4b0] sm:$0xff] %vm264_vm3, %v3287_v12  ;;  %v675_v31 = vld [vmem:[#allocation2 + $0x4d0] sm:$0xff]  ;;  %v3286_v37 = vadd.f32 %v2709_v30, %v670_v15  ;;  %v545_v38 = vld [vmem:[#allocation2 + $0xc0] sm:$0xff]  ;;  %v4188_v41 = vmax.f32 %v3932_v27, 0.0  ;;  %6859 = vmatmul.mubr.msk.bf16.gmra.mxu0 %vm1688_vm2, %v7148_v17  ;;  %v3163_v50 = vadd.f32 %v6764_v45, %v547_v16  ;;  %v2210_v54 = vpop.f32.mrf.mxu0  ;;  %v2722_v55 = vpop.f32.mrf.mxu1 }
 0x10c   : > { %v7150_v32 = vld [vmem:[%s7236_s24 + $0x1f0] sm:$0xff]   ;;  %5466 = vst.msk [vmem:[%s7994_s29 + $0x34] sm:$0xf] %vm5452_vm4, %v6361_v18  ;;  %5594 = vst.msk [vmem:[%s7994_s29 + $0x234] sm:$0xf] %vm5452_vm4, %v6489_v19  ;;  %v6366_v39 = vpack.c.bf16 %v4190_v25, %v4190_v25  ;;  %v4316_v42 = vmax.f32 %v4060_v28, 0.0  ;;  %v3291_v51 = vadd.f32 %v6892_v46, %v675_v31  ;;  %6987 = vmatmul.mubr.msk.bf16.gmra.mxu1 %vm1688_vm2, %v7149_v24 }
 0x10d   : > { %v7151_v33 = vld [vmem:[%s7236_s24 + $0x3f0] sm:$0xff]   ;;  %3414 = vst.msk [vmem:[#allocation2 + $0xa0] sm:$0xff] %vm264_vm3, %v3157_v22  ;;  %3542 = vst.msk [vmem:[#allocation2 + $0x4a0] sm:$0xff] %vm264_vm3, %v3285_v23  ;;  %v6494_v40 = vpack.c.bf16 %v4318_v26, %v4318_v26  ;;  %v3672_v43 = vld [vmem:[#allocation2 + $0x98] sm:$0xff]  ;;  %v6364_v52 = vpack.c.bf16 %v4188_v41, %v4188_v41  ;;  %6862 = vmatprep.mubr.msk.bf16.mxu0 %vm1688_vm2, %v7150_v32  ;;  %v3161_v62 = vadd.f32 %v2210_v54, %v545_v38  ;;  %v6765_v2 = vpop.f32.mrf.mxu0  ;;  %v6893_v3 = vpop.f32.mrf.mxu1 }
 0x10e   : > { %v3800_v44 = vld [vmem:[#allocation2 + $0x498] sm:$0xff]  ;;  %v673_v47 = vld [vmem:[#allocation2 + $0x4c0] sm:$0xff]  ;;  %v3935_v48 = vadd.f32 %v7970_v11, %v3672_v43  ;;  %3417 = vst.msk [vmem:[#allocation2 + $0xb8] sm:$0xff] %vm264_vm3, %v3160_v34  ;;  %3545 = vst.msk [vmem:[#allocation2 + $0x4b8] sm:$0xff] %vm264_vm3, %v3288_v35  ;;  %v6492_v53 = vpack.c.bf16 %v4316_v42, %v4316_v42  ;;  %6990 = vmatprep.mubr.msk.bf16.mxu1 %vm1688_vm2, %v7151_v33 }
 0x10f   : > { %v4063_v49 = vadd.f32 %v7970_v11, %v3800_v44  ;;  %3415 = vst.msk [vmem:[#allocation2 + $0xa8] sm:$0xff] %vm264_vm3, %v3158_v36  ;;  %3543 = vst.msk [vmem:[#allocation2 + $0x4a8] sm:$0xff] %vm264_vm3, %v3286_v37  ;;  %v548_v56 = vld [vmem:[#allocation2 + $0xd8] sm:$0xff]  ;;  %v3289_v63 = vadd.f32 %v2722_v55, %v673_v47  ;;  %v546_v4 = vld [vmem:[#allocation2 + $0xc8] sm:$0xff]  ;;  %v2213_v21 = vpop.f32.mrf.mxu0  ;;  %v2725_v22 = vpop.f32.mrf.mxu1 }
 0x110   : > { %5471 = vst.msk [vmem:[%s7994_s29 + $0x48] sm:$0xf] %vm5452_vm4, %v6366_v39  ;;  %5599 = vst.msk [vmem:[%s7994_s29 + $0x248] sm:$0xf] %vm5452_vm4, %v6494_v40  ;;  %v676_v57 = vld [vmem:[#allocation2 + $0x4d8] sm:$0xff]  ;;  %v4191_v58 = vmax.f32 %v3935_v48, 0.0  ;;  %v3164_v12 = vadd.f32 %v6765_v2, %v548_v56  ;;  %v3162_v25 = vadd.f32 %v2213_v21, %v546_v4 }
 0x111   : > { %v4319_v59 = vmax.f32 %v4063_v49, 0.0  ;;  %v3670_v60 = vld [vmem:[#allocation2 + $0x88] sm:$0xff]  ;;  %3420 = vst.msk [vmem:[#allocation2 + $0xd0] sm:$0xff] %vm264_vm3, %v3163_v50  ;;  %3548 = vst.msk [vmem:[#allocation2 + $0x4d0] sm:$0xff] %vm264_vm3, %v3291_v51  ;;  %v7152_v6 = vld [vmem:[%s7236_s24 + $0x1f8] sm:$0xff]   ;;  %v3292_v13 = vadd.f32 %v6893_v3, %v676_v57  ;;  %v8193_v34 = vpop.f32.mrf.mxu0  ;;  %v8196_v35 = vpop.f32.mrf.mxu1 }
 0x112   : > { %v3798_v61 = vld [vmem:[#allocation2 + $0x488] sm:$0xff]  ;;  %5469 = vst.msk [vmem:[%s7994_s29 + $0x40] sm:$0xf] %vm5452_vm4, %v6364_v52  ;;  %5597 = vst.msk [vmem:[%s7994_s29 + $0x240] sm:$0xf] %vm5452_vm4, %v6492_v53  ;;  %v3933_v0 = vadd.f32 %v7970_v11, %v3670_v60  ;;  %v6367_v7 = vpack.c.bf16 %v4191_v58, %v4191_v58  ;;  %v3675_v9 = vld [vmem:[#allocation2 + $0xb0] sm:$0xff] }
 0x113   : > { %v4061_v1 = vadd.f32 %v7970_v11, %v3798_v61  ;;  %v674_v5 = vld [vmem:[#allocation2 + $0x4c8] sm:$0xff]  ;;  %v6495_v8 = vpack.c.bf16 %v4319_v59, %v4319_v59  ;;  %v3803_v10 = vld [vmem:[#allocation2 + $0x4b0] sm:$0xff]  ;;  %3418 = vst.msk [vmem:[#allocation2 + $0xc0] sm:$0xff] %vm264_vm3, %v3161_v62  ;;  %3546 = vst.msk [vmem:[#allocation2 + $0x4c0] sm:$0xff] %vm264_vm3, %v3289_v63  ;;  %v3938_v17 = vadd.f32 %v7970_v11, %v3675_v9  ;;  %6863 = vmatmul.mubr.msk.bf16.gmra.mxu0 %vm1688_vm2, %v7152_v6  ;;  %v8209_v47 = vpop.f32.mrf.mxu0  ;;  %v8211_v48 = vpop.f32.mrf.mxu1 }
 0x114   : > { %v7153_v14 = vld [vmem:[%s7236_s24 + $0x3f8] sm:$0xff]   ;;  %v4189_v15 = vmax.f32 %v3933_v0, 0.0  ;;  %v4066_v18 = vadd.f32 %v7970_v11, %v3803_v10  ;;  %v3673_v19 = vld [vmem:[#allocation2 + $0xa0] sm:$0xff]  ;;  %5472 = vst.msk [vmem:[%s7994_s29 + $0x4c] sm:$0xf] %vm5452_vm4, %v6367_v7  ;;  %v3290_v26 = vadd.f32 %v2725_v22, %v674_v5  ;;  %v679_v2 = vld [vmem:[#allocation2 + $0x4f0] sm:$0xff] }
 0x115   : > { %v4317_v16 = vmax.f32 %v4061_v1, 0.0  ;;  %v3801_v20 = vld [vmem:[#allocation2 + $0x4a0] sm:$0xff]  ;;  %5600 = vst.msk [vmem:[%s7994_s29 + $0x24c] sm:$0xf] %vm5452_vm4, %v6495_v8  ;;  %v3936_v23 = vadd.f32 %v7970_v11, %v3673_v19  ;;  %v4194_v29 = vmax.f32 %v3938_v17, 0.0  ;;  %v3676_v31 = vld [vmem:[#allocation2 + $0xb8] sm:$0xff]  ;;  %6991 = vmatmul.mubr.msk.bf16.gmra.mxu1 %vm1688_vm2, %v7153_v14  ;;  %v8219_v59 = vpop.f32.mrf.mxu0  ;;  %v8221_v60 = vpop.f32.mrf.mxu1 }
 0x116   : > { %v4064_v24 = vadd.f32 %v7970_v11, %v3801_v20  ;;  %3421 = vst.msk [vmem:[#allocation2 + $0xd8] sm:$0xff] %vm264_vm3, %v3164_v12  ;;  %3549 = vst.msk [vmem:[#allocation2 + $0x4d8] sm:$0xff] %vm264_vm3, %v3292_v13  ;;  %v6365_v27 = vpack.c.bf16 %v4189_v15, %v4189_v15  ;;  %v4322_v30 = vmax.f32 %v4066_v18, 0.0  ;;  %v3804_v32 = vld [vmem:[#allocation2 + $0x4b8] sm:$0xff]  ;;  %v3674_v33 = vld [vmem:[#allocation2 + $0xa8] sm:$0xff]  ;;  %v3939_v38 = vadd.f32 %v7970_v11, %v3676_v31 }
 0x117   : > { %v6493_v28 = vpack.c.bf16 %v4317_v16, %v4317_v16  ;;  %v4192_v36 = vmax.f32 %v3936_v23, 0.0  ;;  %v4067_v39 = vadd.f32 %v7970_v11, %v3804_v32  ;;  %v3802_v40 = vld [vmem:[#allocation2 + $0x4a8] sm:$0xff]  ;;  %3419 = vst.msk [vmem:[#allocation2 + $0xc8] sm:$0xff] %vm264_vm3, %v3162_v25  ;;  %3547 = vst.msk [vmem:[#allocation2 + $0x4c8] sm:$0xff] %vm264_vm3, %v3290_v26  ;;  %v6370_v41 = vpack.c.bf16 %v4194_v29, %v4194_v29  ;;  %v551_v1 = vld [vmem:[#allocation2 + $0xf0] sm:$0xff]  ;;  %v2229_v9 = vpop.f32.mrf.mxu0  ;;  %v2741_v10 = vpop.f32.mrf.mxu1 }
 0x118   : > { %v4320_v37 = vmax.f32 %v4064_v24, 0.0  ;;  %5470 = vst.msk [vmem:[%s7994_s29 + $0x44] sm:$0xf] %vm5452_vm4, %v6365_v27  ;;  %v6498_v42 = vpack.c.bf16 %v4322_v30, %v4322_v30  ;;  %v3937_v43 = vadd.f32 %v7970_v11, %v3674_v33  ;;  %v4065_v44 = vadd.f32 %v7970_v11, %v3802_v40  ;;  %v3679_v45 = vld [vmem:[#allocation2 + $0xd0] sm:$0xff]  ;;  %v549_v16 = vld [vmem:[#allocation2 + $0xe0] sm:$0xff]  ;;  %v552_v18 = vld [vmem:[#allocation2 + $0xf8] sm:$0xff] }
 0x119   : > { %5598 = vst.msk [vmem:[%s7994_s29 + $0x244] sm:$0xf] %vm5452_vm4, %v6493_v28  ;;  %v3807_v46 = vld [vmem:[#allocation2 + $0x4d0] sm:$0xff]  ;;  %v6368_v49 = vpack.c.bf16 %v4192_v36, %v4192_v36  ;;  %v4195_v51 = vmax.f32 %v3939_v38, 0.0  ;;  %v4323_v52 = vmax.f32 %v4067_v39, 0.0  ;;  %v3942_v55 = vadd.f32 %v7970_v11, %v3679_v45  ;;  %v677_v17 = vld [vmem:[#allocation2 + $0x4e0] sm:$0xff]  ;;  %v6772_v26 = vpop.f32.mrf.mxu0 }
 0x11a   : > { %v6496_v50 = vpack.c.bf16 %v4320_v37, %v4320_v37  ;;  %5475 = vst.msk [vmem:[%s7994_s29 + $0x58] sm:$0xf] %vm5452_vm4, %v6370_v41  ;;  %5603 = vst.msk [vmem:[%s7994_s29 + $0x258] sm:$0xf] %vm5452_vm4, %v6498_v42  ;;  %v4193_v53 = vmax.f32 %v3937_v43, 0.0  ;;  %v4321_v54 = vmax.f32 %v4065_v44, 0.0  ;;  %v4070_v56 = vadd.f32 %v7970_v11, %v3807_v46 }
 0x11b   : > { %v3677_v57 = vld [vmem:[#allocation2 + $0xc0] sm:$0xff]  ;;  %5473 = vst.msk [vmem:[%s7994_s29 + $0x50] sm:$0xf] %vm5452_vm4, %v6368_v49  ;;  %v6371_v61 = vpack.c.bf16 %v4195_v51, %v4195_v51  ;;  %v6499_v62 = vpack.c.bf16 %v4323_v52, %v4323_v52  ;;  %v4198_v5 = vmax.f32 %v3942_v55, 0.0  ;;  %v3167_v23 = vadd.f32 %v8193_v34, %v551_v1  ;;  %v680_v25 = vld [vmem:[#allocation2 + $0x4f8] sm:$0xff]  ;;  %v550_v31 = vld [vmem:[#allocation2 + $0xe8] sm:$0xff]  ;;  %v2242_v41 = vpop.f32.mrf.mxu0 }
 0x11c   : > { %v3805_v58 = vld [vmem:[#allocation2 + $0x4c0] sm:$0xff]  ;;  %5601 = vst.msk [vmem:[%s7994_s29 + $0x250] sm:$0xf] %vm5452_vm4, %v6496_v50  ;;  %v3940_v63 = vadd.f32 %v7970_v11, %v3677_v57  ;;  %v6369_v3 = vpack.c.bf16 %v4193_v53, %v4193_v53  ;;  %v6497_v4 = vpack.c.bf16 %v4321_v54, %v4321_v54  ;;  %v4326_v6 = vmax.f32 %v4070_v56, 0.0  ;;  %v678_v32 = vld [vmem:[#allocation2 + $0x4e8] sm:$0xff]  ;;  %v555_v33 = vld [vmem:[#allocation2 + $0x110] sm:$0xff] }
 0x11d   : > { %v4068_v0 = vadd.f32 %v7970_v11, %v3805_v58  ;;  %v3680_v7 = vld [vmem:[#allocation2 + $0xd8] sm:$0xff]  ;;  %5476 = vst.msk [vmem:[%s7994_s29 + $0x5c] sm:$0xf] %vm5452_vm4, %v6371_v61  ;;  %5604 = vst.msk [vmem:[%s7994_s29 + $0x25c] sm:$0xf] %vm5452_vm4, %v6499_v62  ;;  %v6374_v19 = vpack.c.bf16 %v4198_v5, %v4198_v5  ;;  %v3295_v24 = vadd.f32 %v8196_v35, %v679_v2  ;;  %v683_v39 = vld [vmem:[#allocation2 + $0x510] sm:$0xff]  ;;  %v6773_v54 = vpop.f32.mrf.mxu0 }
 0x11e   : > { %v3808_v8 = vld [vmem:[#allocation2 + $0x4d8] sm:$0xff]  ;;  %v4196_v12 = vmax.f32 %v3940_v63, 0.0  ;;  %v3943_v14 = vadd.f32 %v7970_v11, %v3680_v7  ;;  %5474 = vst.msk [vmem:[%s7994_s29 + $0x54] sm:$0xf] %vm5452_vm4, %v6369_v3  ;;  %5602 = vst.msk [vmem:[%s7994_s29 + $0x254] sm:$0xf] %vm5452_vm4, %v6497_v4  ;;  %v6502_v20 = vpack.c.bf16 %v4326_v6, %v4326_v6  ;;  %v3165_v37 = vadd.f32 %v8209_v47, %v549_v16 }
 0x11f   : > { %v4324_v13 = vmax.f32 %v4068_v0, 0.0  ;;  %v4071_v15 = vadd.f32 %v7970_v11, %v3808_v8  ;;  %v3678_v21 = vld [vmem:[#allocation2 + $0xc8] sm:$0xff]  ;;  %v6900_v11 = vpop.f32.mrf.mxu1  ;;  %5479 = vst.msk [vmem:[%s7994_s29 + $0x68] sm:$0xf] %vm5452_vm4, %v6374_v19  ;;  %v8248_v34 = vld [vmem:[%s9445_s2] ss:$0 sm:$0xff]  ;;  %v3293_v38 = vadd.f32 %v8211_v48, %v677_v17  ;;  %v3168_v46 = vadd.f32 %v8219_v59, %v552_v18  ;;  %v2245_v2 = vpop.f32.mrf.mxu0 }
 0x120   : > { %v3806_v22 = vld [vmem:[#allocation2 + $0x4c8] sm:$0xff]  ;;  %v6372_v27 = vpack.c.bf16 %v4196_v12, %v4196_v12  ;;  %v4199_v29 = vmax.f32 %v3943_v14, 0.0  ;;  %5607 = vst.msk [vmem:[%s7994_s29 + $0x268] sm:$0xf] %vm5452_vm4, %v6502_v20  ;;  %v3941_v35 = vadd.f32 %v8248_v34, %v3678_v21  ;;  %v553_v40 = vld [vmem:[#allocation2 + $0x100] sm:$0xff]  ;;  %v3296_v49 = vadd.f32 %v8221_v60, %v680_v25  ;;  %v556_v47 = vld [vmem:[#allocation2 + $0x118] sm:$0xff] }
 0x121   : > { %v6500_v28 = vpack.c.bf16 %v4324_v13, %v4324_v13  ;;  %v4327_v30 = vmax.f32 %v4071_v15, 0.0  ;;  %v4069_v36 = vadd.f32 %v8248_v34, %v3806_v22  ;;  %3424 = vst.msk [vmem:[#allocation2 + $0xf0] sm:$0xff] %vm264_vm3, %v3167_v23  ;;  %3552 = vst.msk [vmem:[#allocation2 + $0x4f0] sm:$0xff] %vm264_vm3, %v3295_v24  ;;  %v681_v42 = vld [vmem:[#allocation2 + $0x500] sm:$0xff]  ;;  %v2754_v43 = vpop.f32.mrf.mxu1  ;;  %v684_v50 = vld [vmem:[#allocation2 + $0x518] sm:$0xff]  ;;  %v3166_v52 = vadd.f32 %v2229_v9, %v550_v31  ;;  %v6776_v8 = vpop.f32.mrf.mxu0 }
 0x122   : > { %5477 = vst.msk [vmem:[%s7994_s29 + $0x60] sm:$0xf] %vm5452_vm4, %v6372_v27  ;;  %v6375_v44 = vpack.c.bf16 %v4199_v29, %v4199_v29  ;;  %v4197_v48 = vmax.f32 %v3941_v35, 0.0  ;;  %v3294_v53 = vadd.f32 %v2741_v10, %v678_v32  ;;  %v554_v56 = vld [vmem:[#allocation2 + $0x108] sm:$0xff]  ;;  %v3171_v58 = vadd.f32 %v6772_v26, %v555_v33  ;;  %v559_v4 = vld [vmem:[#allocation2 + $0x130] sm:$0xff]  ;;  %v557_v10 = vld [vmem:[#allocation2 + $0x120] sm:$0xff] }
 0x123   : > { %5605 = vst.msk [vmem:[%s7994_s29 + $0x260] sm:$0xf] %vm5452_vm4, %v6500_v28  ;;  %v6503_v45 = vpack.c.bf16 %v4327_v30, %v4327_v30  ;;  %v4325_v51 = vmax.f32 %v4069_v36, 0.0  ;;  %v6901_v55 = vpop.f32.mrf.mxu1  ;;  %v682_v57 = vld [vmem:[#allocation2 + $0x508] sm:$0xff]  ;;  %v3299_v59 = vadd.f32 %v6900_v11, %v683_v39  ;;  %v3169_v60 = vadd.f32 %v2242_v41, %v553_v40  ;;  %v687_v5 = vld [vmem:[#allocation2 + $0x530] sm:$0xff]  ;;  %v685_v12 = vld [vmem:[#allocation2 + $0x520] sm:$0xff]  ;;  %v2258_v19 = vpop.f32.mrf.mxu0 }
 0x124   : > { %3422 = vst.msk [vmem:[#allocation2 + $0xe0] sm:$0xff] %vm264_vm3, %v3165_v37  ;;  %3550 = vst.msk [vmem:[#allocation2 + $0x4e0] sm:$0xff] %vm264_vm3, %v3293_v38  ;;  %v3297_v61 = vadd.f32 %v2754_v43, %v681_v42  ;;  %v6373_v62 = vpack.c.bf16 %v4197_v48, %v4197_v48  ;;  %v3172_v0 = vadd.f32 %v6773_v54, %v556_v47  ;;  %v560_v21 = vld [vmem:[#allocation2 + $0x138] sm:$0xff] }
 0x125   : > { %5480 = vst.msk [vmem:[%s7994_s29 + $0x6c] sm:$0xf] %vm5452_vm4, %v6375_v44  ;;  %5608 = vst.msk [vmem:[%s7994_s29 + $0x26c] sm:$0xf] %vm5452_vm4, %v6503_v45  ;;  %v6501_v63 = vpack.c.bf16 %v4325_v51, %v4325_v51  ;;  %v3300_v1 = vadd.f32 %v6901_v55, %v684_v50  ;;  %v2757_v3 = vpop.f32.mrf.mxu1  ;;  %v3170_v6 = vadd.f32 %v2245_v2, %v554_v56  ;;  %v688_v22 = vld [vmem:[#allocation2 + $0x538] sm:$0xff]  ;;  %v6777_v32 = vpop.f32.mrf.mxu0 }
 0x126   : > { %3425 = vst.msk [vmem:[#allocation2 + $0xf8] sm:$0xff] %vm264_vm3, %v3168_v46  ;;  %3553 = vst.msk [vmem:[#allocation2 + $0x4f8] sm:$0xff] %vm264_vm3, %v3296_v49  ;;  %v3298_v7 = vadd.f32 %v2757_v3, %v682_v57  ;;  %v3175_v15 = vadd.f32 %v6776_v8, %v559_v4  ;;  %v3173_v25 = vadd.f32 %v2258_v19, %v557_v10 }
 0x127   : > { %3423 = vst.msk [vmem:[#allocation2 + $0xe8] sm:$0xff] %vm264_vm3, %v3166_v52  ;;  %3551 = vst.msk [vmem:[#allocation2 + $0x4e8] sm:$0xff] %vm264_vm3, %v3294_v53  ;;  %v6904_v9 = vpop.f32.mrf.mxu1  ;;  %v3176_v39 = vadd.f32 %v6777_v32, %v560_v21  ;;  %v8294_v49 = vpop.f32.mrf.mxu0 }
 0x128   : > { %3428 = vst.msk [vmem:[#allocation2 + $0x110] sm:$0xff] %vm264_vm3, %v3171_v58  ;;  %3556 = vst.msk [vmem:[#allocation2 + $0x510] sm:$0xff] %vm264_vm3, %v3299_v59  ;;  %v3683_v13 = vld [vmem:[#allocation2 + $0xf0] sm:$0xff]  ;;  %v3303_v16 = vadd.f32 %v6904_v9, %v687_v5 }
 0x129   : > { %3426 = vst.msk [vmem:[#allocation2 + $0x100] sm:$0xff] %vm264_vm3, %v3169_v60  ;;  %3554 = vst.msk [vmem:[#allocation2 + $0x500] sm:$0xff] %vm264_vm3, %v3297_v61  ;;  %v3811_v14 = vld [vmem:[#allocation2 + $0x4f0] sm:$0xff]  ;;  %v3946_v17 = vadd.f32 %v8248_v34, %v3683_v13  ;;  %v2770_v20 = vpop.f32.mrf.mxu1  ;;  %v8308_v61 = vpop.f32.mrf.mxu0 }
 0x12a   : > { %5478 = vst.msk [vmem:[%s7994_s29 + $0x64] sm:$0xf] %vm5452_vm4, %v6373_v62  ;;  %5606 = vst.msk [vmem:[%s7994_s29 + $0x264] sm:$0xf] %vm5452_vm4, %v6501_v63  ;;  %v4074_v18 = vadd.f32 %v8248_v34, %v3811_v14  ;;  %v3301_v26 = vadd.f32 %v2770_v20, %v685_v12 }
 0x12b   : > { %3429 = vst.msk [vmem:[#allocation2 + $0x118] sm:$0xff] %vm264_vm3, %v3172_v0  ;;  %3557 = vst.msk [vmem:[#allocation2 + $0x518] sm:$0xff] %vm264_vm3, %v3300_v1  ;;  %v3681_v23 = vld [vmem:[#allocation2 + $0xe0] sm:$0xff]  ;;  %v4202_v11 = vmax.f32 %v3946_v17, 0.0  ;;  %v6905_v33 = vpop.f32.mrf.mxu1  ;;  %v8318_v9 = vpop.f32.mrf.mxu0 }
 0x12c   : > { %3427 = vst.msk [vmem:[#allocation2 + $0x108] sm:$0xff] %vm264_vm3, %v3170_v6  ;;  %3555 = vst.msk [vmem:[#allocation2 + $0x508] sm:$0xff] %vm264_vm3, %v3298_v7  ;;  %v3809_v24 = vld [vmem:[#allocation2 + $0x4e0] sm:$0xff]  ;;  %v4330_v27 = vmax.f32 %v4074_v18, 0.0  ;;  %v3944_v28 = vadd.f32 %v8248_v34, %v3681_v23  ;;  %v3304_v40 = vadd.f32 %v6905_v33, %v688_v22 }
 0x12d   : > { %3432 = vst.msk [vmem:[#allocation2 + $0x130] sm:$0xff] %vm264_vm3, %v3175_v15  ;;  %3560 = vst.msk [vmem:[#allocation2 + $0x530] sm:$0xff] %vm264_vm3, %v3303_v16  ;;  %v4072_v29 = vadd.f32 %v8248_v34, %v3809_v24  ;;  %v3684_v30 = vld [vmem:[#allocation2 + $0xf8] sm:$0xff]  ;;  %v6378_v41 = vpack.c.bf16 %v4202_v11, %v4202_v11  ;;  %v8296_v47 = vpop.f32.mrf.mxu1  ;;  %v8328_v22 = vpop.f32.mrf.mxu0 }
 0x12e   : > { %v3812_v31 = vld [vmem:[#allocation2 + $0x4f8] sm:$0xff]  ;;  %v3947_v35 = vadd.f32 %v8248_v34, %v3684_v30  ;;  %v3682_v37 = vld [vmem:[#allocation2 + $0xe8] sm:$0xff]  ;;  %3430 = vst.msk [vmem:[#allocation2 + $0x120] sm:$0xff] %vm264_vm3, %v3173_v25  ;;  %3558 = vst.msk [vmem:[#allocation2 + $0x520] sm:$0xff] %vm264_vm3, %v3301_v26  ;;  %v6506_v42 = vpack.c.bf16 %v4330_v27, %v4330_v27  ;;  %v4200_v43 = vmax.f32 %v3944_v28, 0.0 }
 0x12f   : > { %v4075_v36 = vadd.f32 %v8248_v34, %v3812_v31  ;;  %v3810_v38 = vld [vmem:[#allocation2 + $0x4e8] sm:$0xff]  ;;  %v4328_v44 = vmax.f32 %v4072_v29, 0.0  ;;  %v3687_v45 = vld [vmem:[#allocation2 + $0x110] sm:$0xff]  ;;  %v3945_v51 = vadd.f32 %v8248_v34, %v3682_v37  ;;  %3433 = vst.msk [vmem:[#allocation2 + $0x138] sm:$0xff] %vm264_vm3, %v3176_v39  ;;  %3561 = vst.msk [vmem:[#allocation2 + $0x538] sm:$0xff] %vm264_vm3, %v3304_v40  ;;  %v8310_v62 = vpop.f32.mrf.mxu1 }
 0x130   : > { %v3815_v46 = vld [vmem:[#allocation2 + $0x510] sm:$0xff]  ;;  %v4203_v50 = vmax.f32 %v3947_v35, 0.0  ;;  %v4073_v52 = vadd.f32 %v8248_v34, %v3810_v38  ;;  %v3685_v53 = vld [vmem:[#allocation2 + $0x100] sm:$0xff]  ;;  %5483 = vst.msk [vmem:[%s7994_s29 + $0x78] sm:$0xf] %vm5452_vm4, %v6378_v41  ;;  %v6376_v55 = vpack.c.bf16 %v4200_v43, %v4200_v43  ;;  %v3950_v57 = vadd.f32 %v8248_v34, %v3687_v45 }
 0x131   : > { %v4331_v48 = vmax.f32 %v4075_v36, 0.0  ;;  %v3813_v54 = vld [vmem:[#allocation2 + $0x500] sm:$0xff]  ;;  %5611 = vst.msk [vmem:[%s7994_s29 + $0x278] sm:$0xf] %vm5452_vm4, %v6506_v42  ;;  %v6504_v56 = vpack.c.bf16 %v4328_v44, %v4328_v44  ;;  %v4078_v58 = vadd.f32 %v8248_v34, %v3815_v46  ;;  %v4201_v1 = vmax.f32 %v3945_v51, 0.0  ;;  %v8320_v10 = vpop.f32.mrf.mxu1  ;;  %v8344_v36 = vpop.f32.mrf.mxu0  ;;  %v558_v46 = vld [vmem:[#allocation2 + $0x128] sm:$0xff] }
 0x132   : > { %v3688_v59 = vld [vmem:[#allocation2 + $0x118] sm:$0xff]  ;;  %v6379_v63 = vpack.c.bf16 %v4203_v50, %v4203_v50  ;;  %v4329_v2 = vmax.f32 %v4073_v52, 0.0  ;;  %5481 = vst.msk [vmem:[%s7994_s29 + $0x70] sm:$0xf] %vm5452_vm4, %v6376_v55  ;;  %v4206_v3 = vmax.f32 %v3950_v57, 0.0  ;;  %v3948_v5 = vadd.f32 %v8248_v34, %v3685_v53  ;;  %v686_v50 = vld [vmem:[#allocation2 + $0x528] sm:$0xff] }
 0x133   : > { %v3816_v60 = vld [vmem:[#allocation2 + $0x518] sm:$0xff]  ;;  %v6507_v0 = vpack.c.bf16 %v4331_v48, %v4331_v48  ;;  %5609 = vst.msk [vmem:[%s7994_s29 + $0x270] sm:$0xf] %vm5452_vm4, %v6504_v56  ;;  %v4334_v4 = vmax.f32 %v4078_v58, 0.0  ;;  %v4076_v6 = vadd.f32 %v8248_v34, %v3813_v54  ;;  %v3686_v7 = vld [vmem:[#allocation2 + $0x108] sm:$0xff]  ;;  %v6377_v12 = vpack.c.bf16 %v4201_v1, %v4201_v1  ;;  %v8330_v23 = vpop.f32.mrf.mxu1  ;;  %v563_v48 = vld [vmem:[#allocation2 + $0x150] sm:$0xff]  ;;  %v8354_v51 = vpop.f32.mrf.mxu0 }
 0x134   : > { %v3814_v8 = vld [vmem:[#allocation2 + $0x508] sm:$0xff]  ;;  %5484 = vst.msk [vmem:[%s7994_s29 + $0x7c] sm:$0xf] %vm5452_vm4, %v6379_v63  ;;  %v6505_v13 = vpack.c.bf16 %v4329_v2, %v4329_v2  ;;  %v3951_v14 = vadd.f32 %v8248_v34, %v3688_v59  ;;  %v4079_v15 = vadd.f32 %v8248_v34, %v3816_v60  ;;  %v3691_v16 = vld [vmem:[#allocation2 + $0x130] sm:$0xff]  ;;  %v6382_v18 = vpack.c.bf16 %v4206_v3, %v4206_v3  ;;  %v561_v58 = vld [vmem:[#allocation2 + $0x140] sm:$0xff] }
 0x135   : > { %5612 = vst.msk [vmem:[%s7994_s29 + $0x27c] sm:$0xf] %vm5452_vm4, %v6507_v0  ;;  %v3819_v17 = vld [vmem:[#allocation2 + $0x530] sm:$0xff]  ;;  %v6510_v19 = vpack.c.bf16 %v4334_v4, %v4334_v4  ;;  %v4204_v20 = vmax.f32 %v3948_v5, 0.0  ;;  %v4332_v21 = vmax.f32 %v4076_v6, 0.0  ;;  %v3949_v26 = vadd.f32 %v8248_v34, %v3686_v7  ;;  %v3689_v27 = vld [vmem:[#allocation2 + $0x120] sm:$0xff]  ;;  %v8346_v37 = vpop.f32.mrf.mxu1  ;;  %v2290_v5 = vpop.f32.mrf.mxu0 }
 0x136   : > { %5482 = vst.msk [vmem:[%s7994_s29 + $0x74] sm:$0xf] %vm5452_vm4, %v6377_v12  ;;  %5610 = vst.msk [vmem:[%s7994_s29 + $0x274] sm:$0xf] %vm5452_vm4, %v6505_v13  ;;  %v4207_v24 = vmax.f32 %v3951_v14, 0.0  ;;  %v4335_v25 = vmax.f32 %v4079_v15, 0.0  ;;  %v4077_v11 = vadd.f32 %v8248_v34, %v3814_v8  ;;  %v3954_v31 = vadd.f32 %v8248_v34, %v3691_v16 }
 0x137   : > { %v3817_v28 = vld [vmem:[#allocation2 + $0x520] sm:$0xff]  ;;  %5487 = vst.msk [vmem:[%s7994_s29 + $0x88] sm:$0xf] %vm5452_vm4, %v6382_v18  ;;  %5615 = vst.msk [vmem:[%s7994_s29 + $0x288] sm:$0xf] %vm5452_vm4, %v6510_v19  ;;  %v6380_v29 = vpack.c.bf16 %v4204_v20, %v4204_v20  ;;  %v6508_v30 = vpack.c.bf16 %v4332_v21, %v4332_v21  ;;  %v4082_v32 = vadd.f32 %v8248_v34, %v3819_v17  ;;  %v3692_v33 = vld [vmem:[#allocation2 + $0x138] sm:$0xff]  ;;  %v8356_v52 = vpop.f32.mrf.mxu1 }
 0x138   : > { %v3820_v35 = vld [vmem:[#allocation2 + $0x538] sm:$0xff]  ;;  %v6383_v38 = vpack.c.bf16 %v4207_v24, %v4207_v24  ;;  %v6511_v39 = vpack.c.bf16 %v4335_v25, %v4335_v25  ;;  %v4205_v40 = vmax.f32 %v3949_v26, 0.0  ;;  %v4333_v41 = vmax.f32 %v4077_v11, 0.0  ;;  %v691_v57 = vld [vmem:[#allocation2 + $0x550] sm:$0xff]  ;;  %v689_v59 = vld [vmem:[#allocation2 + $0x540] sm:$0xff]  ;;  %v6785_v25 = vpop.f32.mrf.mxu0 }
 0x139   : > { %5485 = vst.msk [vmem:[%s7994_s29 + $0x80] sm:$0xf] %vm5452_vm4, %v6380_v29  ;;  %5613 = vst.msk [vmem:[%s7994_s29 + $0x280] sm:$0xf] %vm5452_vm4, %v6508_v30  ;;  %v4210_v42 = vmax.f32 %v3954_v31, 0.0  ;;  %v4338_v43 = vmax.f32 %v4082_v32, 0.0  ;;  %v3952_v44 = vadd.f32 %v8248_v34, %v3689_v27  ;;  %v4080_v45 = vadd.f32 %v8248_v34, %v3817_v28  ;;  %v2802_v6 = vpop.f32.mrf.mxu1 }
 0x13a   : > { %5488 = vst.msk [vmem:[%s7994_s29 + $0x8c] sm:$0xf] %vm5452_vm4, %v6383_v38  ;;  %5616 = vst.msk [vmem:[%s7994_s29 + $0x28c] sm:$0xf] %vm5452_vm4, %v6511_v39  ;;  %v6381_v53 = vpack.c.bf16 %v4205_v40, %v4205_v40  ;;  %v6509_v54 = vpack.c.bf16 %v4333_v41, %v4333_v41  ;;  %v3955_v55 = vadd.f32 %v8248_v34, %v3692_v33  ;;  %v564_v2 = vld [vmem:[#allocation2 + $0x158] sm:$0xff]  ;;  %v562_v4 = vld [vmem:[#allocation2 + $0x148] sm:$0xff]  ;;  %v2293_v32 = vpop.f32.mrf.mxu0 }
 0x13b   : > { %v4083_v56 = vadd.f32 %v8248_v34, %v3820_v35  ;;  %v6386_v60 = vpack.c.bf16 %v4210_v42, %v4210_v42  ;;  %v6514_v63 = vpack.c.bf16 %v4338_v43, %v4338_v43  ;;  %v4208_v0 = vmax.f32 %v3952_v44, 0.0  ;;  %v692_v3 = vld [vmem:[#allocation2 + $0x558] sm:$0xff]  ;;  %v690_v14 = vld [vmem:[#allocation2 + $0x548] sm:$0xff]  ;;  %v567_v15 = vld [vmem:[#allocation2 + $0x170] sm:$0xff] }
 0x13c   : > { %v4336_v1 = vmax.f32 %v4080_v45, 0.0  ;;  %5486 = vst.msk [vmem:[%s7994_s29 + $0x84] sm:$0xf] %vm5452_vm4, %v6381_v53  ;;  %5614 = vst.msk [vmem:[%s7994_s29 + $0x284] sm:$0xf] %vm5452_vm4, %v6509_v54  ;;  %v4211_v7 = vmax.f32 %v3955_v55, 0.0  ;;  %v3174_v12 = vadd.f32 %v8294_v49, %v558_v46  ;;  %v3302_v13 = vadd.f32 %v8296_v47, %v686_v50  ;;  %v6913_v47 = vpop.f32.mrf.mxu1  ;;  %v6788_v43 = vpop.f32.mrf.mxu0 }
 0x13d   : > { %v4339_v8 = vmax.f32 %v4083_v56, 0.0  ;;  %v695_v16 = vld [vmem:[#allocation2 + $0x570] sm:$0xff]  ;;  %5491 = vst.msk [vmem:[%s7994_s29 + $0x98] sm:$0xf] %vm5452_vm4, %v6386_v60  ;;  %5619 = vst.msk [vmem:[%s7994_s29 + $0x298] sm:$0xf] %vm5452_vm4, %v6514_v63  ;;  %v6384_v17 = vpack.c.bf16 %v4208_v0, %v4208_v0  ;;  %v3179_v19 = vadd.f32 %v8308_v61, %v563_v48  ;;  %v3307_v20 = vadd.f32 %v8310_v62, %v691_v57 }
 0x13e   : > { %v6512_v18 = vpack.c.bf16 %v4336_v1, %v4336_v1  ;;  %v565_v21 = vld [vmem:[#allocation2 + $0x160] sm:$0xff]  ;;  %v568_v49 = vld [vmem:[#allocation2 + $0x178] sm:$0xff]  ;;  %v6387_v26 = vpack.c.bf16 %v4211_v7, %v4211_v7  ;;  %3431 = vst.msk [vmem:[#allocation2 + $0x128] sm:$0xff] %vm264_vm3, %v3174_v12  ;;  %3559 = vst.msk [vmem:[#allocation2 + $0x528] sm:$0xff] %vm264_vm3, %v3302_v13  ;;  %v3177_v27 = vadd.f32 %v8318_v9, %v561_v58  ;;  %v2805_v33 = vpop.f32.mrf.mxu1 }
 0x13f   : > { %v693_v24 = vld [vmem:[#allocation2 + $0x560] sm:$0xff]  ;;  %v6515_v11 = vpack.c.bf16 %v4339_v8, %v4339_v8  ;;  %v3305_v28 = vadd.f32 %v8320_v10, %v689_v59  ;;  %v696_v61 = vld [vmem:[#allocation2 + $0x578] sm:$0xff]  ;;  %v566_v62 = vld [vmem:[#allocation2 + $0x168] sm:$0xff]  ;;  %5489 = vst.msk [vmem:[%s7994_s29 + $0x90] sm:$0xf] %vm5452_vm4, %v6384_v17  ;;  %v3180_v30 = vadd.f32 %v8328_v22, %v564_v2  ;;  %v3308_v31 = vadd.f32 %v8330_v23, %v692_v3 }
 0x140   : > { %v694_v29 = vld [vmem:[#allocation2 + $0x568] sm:$0xff]  ;;  %5617 = vst.msk [vmem:[%s7994_s29 + $0x290] sm:$0xf] %vm5452_vm4, %v6512_v18  ;;  %v3178_v9 = vadd.f32 %v8344_v36, %v562_v4  ;;  %v3306_v10 = vadd.f32 %v8346_v37, %v690_v14  ;;  %v571_v35 = vld [vmem:[#allocation2 + $0x190] sm:$0xff]  ;;  %5492 = vst.msk [vmem:[%s7994_s29 + $0x9c] sm:$0xf] %vm5452_vm4, %v6387_v26  ;;  %v3183_v22 = vadd.f32 %v8354_v51, %v567_v15  ;;  %v6916_v44 = vpop.f32.mrf.mxu1  ;;  %v2306_v51 = vpop.f32.mrf.mxu0 }
 0x141   : > { %3436 = vst.msk [vmem:[#allocation2 + $0x150] sm:$0xff] %vm264_vm3, %v3179_v19  ;;  %3564 = vst.msk [vmem:[#allocation2 + $0x550] sm:$0xff] %vm264_vm3, %v3307_v20  ;;  %v699_v38 = vld [vmem:[#allocation2 + $0x590] sm:$0xff]  ;;  %v3311_v23 = vadd.f32 %v8356_v52, %v695_v16  ;;  %v3181_v39 = vadd.f32 %v2290_v5, %v565_v21  ;;  %v3309_v36 = vadd.f32 %v2802_v6, %v693_v24  ;;  %v569_v45 = vld [vmem:[#allocation2 + $0x180] sm:$0xff] }
 0x142   : > { %5620 = vst.msk [vmem:[%s7994_s29 + $0x29c] sm:$0xf] %vm5452_vm4, %v6515_v11  ;;  %v3184_v37 = vadd.f32 %v6785_v25, %v568_v49  ;;  %v3312_v40 = vadd.f32 %v6913_v47, %v696_v61  ;;  %v3182_v41 = vadd.f32 %v2293_v32, %v566_v62  ;;  %v3310_v42 = vadd.f32 %v2805_v33, %v694_v29  ;;  %v697_v46 = vld [vmem:[#allocation2 + $0x580] sm:$0xff]  ;;  %v2818_v52 = vpop.f32.mrf.mxu1  ;;  %v572_v53 = vld [vmem:[#allocation2 + $0x198] sm:$0xff]  ;;  %v6789_v59 = vpop.f32.mrf.mxu0 }
 0x143   : > { %3434 = vst.msk [vmem:[#allocation2 + $0x140] sm:$0xff] %vm264_vm3, %v3177_v27  ;;  %3562 = vst.msk [vmem:[#allocation2 + $0x540] sm:$0xff] %vm264_vm3, %v3305_v28  ;;  %v3187_v50 = vadd.f32 %v6788_v43, %v571_v35  ;;  %v3315_v48 = vadd.f32 %v6916_v44, %v699_v38  ;;  %v700_v54 = vld [vmem:[#allocation2 + $0x598] sm:$0xff]  ;;  %v3185_v55 = vadd.f32 %v2306_v51, %v569_v45 }
 0x144   : > { %3437 = vst.msk [vmem:[#allocation2 + $0x158] sm:$0xff] %vm264_vm3, %v3180_v30  ;;  %3565 = vst.msk [vmem:[#allocation2 + $0x558] sm:$0xff] %vm264_vm3, %v3308_v31  ;;  %v3313_v56 = vadd.f32 %v2818_v52, %v697_v46  ;;  %v6917_v60 = vpop.f32.mrf.mxu1  ;;  %v3188_v3 = vadd.f32 %v6789_v59, %v572_v53  ;;  %v8418_v12 = vpop.f32.mrf.mxu0 }
 0x145   : > { %3435 = vst.msk [vmem:[#allocation2 + $0x148] sm:$0xff] %vm264_vm3, %v3178_v9  ;;  %3563 = vst.msk [vmem:[#allocation2 + $0x548] sm:$0xff] %vm264_vm3, %v3306_v10  ;;  %v3690_v57 = vld [vmem:[#allocation2 + $0x128] sm:$0xff]  ;;  %v3316_v4 = vadd.f32 %v6917_v60, %v700_v54 }
 0x146   : > { %3440 = vst.msk [vmem:[#allocation2 + $0x170] sm:$0xff] %vm264_vm3, %v3183_v22  ;;  %3568 = vst.msk [vmem:[#allocation2 + $0x570] sm:$0xff] %vm264_vm3, %v3311_v23  ;;  %v3818_v58 = vld [vmem:[#allocation2 + $0x528] sm:$0xff]  ;;  %v3953_v63 = vadd.f32 %v8248_v34, %v3690_v57  ;;  %v8420_v13 = vpop.f32.mrf.mxu1  ;;  %v8428_v26 = vpop.f32.mrf.mxu0 }
 0x147   : > { %3438 = vst.msk [vmem:[#allocation2 + $0x160] sm:$0xff] %vm264_vm3, %v3181_v39  ;;  %3566 = vst.msk [vmem:[#allocation2 + $0x560] sm:$0xff] %vm264_vm3, %v3309_v36  ;;  %v4081_v0 = vadd.f32 %v8248_v34, %v3818_v58 }
 0x148   : > { %3441 = vst.msk [vmem:[#allocation2 + $0x178] sm:$0xff] %vm264_vm3, %v3184_v37  ;;  %3569 = vst.msk [vmem:[#allocation2 + $0x578] sm:$0xff] %vm264_vm3, %v3312_v40  ;;  %v3695_v1 = vld [vmem:[#allocation2 + $0x150] sm:$0xff]  ;;  %v4209_v14 = vmax.f32 %v3953_v63, 0.0  ;;  %v8430_v11 = vpop.f32.mrf.mxu1  ;;  %v8432_v38 = vpop.f32.mrf.mxu0 }
 0x149   : > { %3439 = vst.msk [vmem:[#allocation2 + $0x168] sm:$0xff] %vm264_vm3, %v3182_v41  ;;  %3567 = vst.msk [vmem:[#allocation2 + $0x568] sm:$0xff] %vm264_vm3, %v3310_v42  ;;  %v3823_v2 = vld [vmem:[#allocation2 + $0x550] sm:$0xff]  ;;  %v3958_v5 = vadd.f32 %v8248_v34, %v3695_v1  ;;  %v4337_v15 = vmax.f32 %v4081_v0, 0.0 }
 0x14a   : > { %3444 = vst.msk [vmem:[#allocation2 + $0x190] sm:$0xff] %vm264_vm3, %v3187_v50  ;;  %3572 = vst.msk [vmem:[#allocation2 + $0x590] sm:$0xff] %vm264_vm3, %v3315_v48  ;;  %v4086_v6 = vadd.f32 %v8248_v34, %v3823_v2  ;;  %v3693_v7 = vld [vmem:[#allocation2 + $0x140] sm:$0xff]  ;;  %v6385_v27 = vpack.c.bf16 %v4209_v14, %v4209_v14  ;;  %v8434_v22 = vpop.f32.mrf.mxu1  ;;  %v8448_v46 = vpop.f32.mrf.mxu0 }
 0x14b   : > { %3442 = vst.msk [vmem:[#allocation2 + $0x180] sm:$0xff] %vm264_vm3, %v3185_v55  ;;  %3570 = vst.msk [vmem:[#allocation2 + $0x580] sm:$0xff] %vm264_vm3, %v3313_v56  ;;  %v3821_v8 = vld [vmem:[#allocation2 + $0x540] sm:$0xff]  ;;  %v3956_v16 = vadd.f32 %v8248_v34, %v3693_v7  ;;  %v3696_v18 = vld [vmem:[#allocation2 + $0x158] sm:$0xff]  ;;  %v4214_v20 = vmax.f32 %v3958_v5, 0.0  ;;  %v6513_v28 = vpack.c.bf16 %v4337_v15, %v4337_v15 }
 0x14c   : > { %v4084_v17 = vadd.f32 %v8248_v34, %v3821_v8  ;;  %v3824_v19 = vld [vmem:[#allocation2 + $0x558] sm:$0xff]  ;;  %3445 = vst.msk [vmem:[#allocation2 + $0x198] sm:$0xff] %vm264_vm3, %v3188_v3  ;;  %3573 = vst.msk [vmem:[#allocation2 + $0x598] sm:$0xff] %vm264_vm3, %v3316_v4  ;;  %v4342_v21 = vmax.f32 %v4086_v6, 0.0  ;;  %v3959_v24 = vadd.f32 %v8248_v34, %v3696_v18  ;;  %v3694_v25 = vld [vmem:[#allocation2 + $0x148] sm:$0xff]  ;;  %v8450_v50 = vpop.f32.mrf.mxu1  ;;  %v8464_v60 = vpop.f32.mrf.mxu0 }
 0x14d   : > { %v4087_v49 = vadd.f32 %v8248_v34, %v3824_v19  ;;  %v3822_v47 = vld [vmem:[#allocation2 + $0x548] sm:$0xff]  ;;  %v4212_v61 = vmax.f32 %v3956_v16, 0.0  ;;  %v3699_v29 = vld [vmem:[#allocation2 + $0x170] sm:$0xff]  ;;  %v6390_v31 = vpack.c.bf16 %v4214_v20, %v4214_v20  ;;  %5490 = vst.msk [vmem:[%s7994_s29 + $0x94] sm:$0xf] %vm5452_vm4, %v6385_v27  ;;  %v3957_v36 = vadd.f32 %v8248_v34, %v3694_v25 }
 0x14e   : > { %v4340_v62 = vmax.f32 %v4084_v17, 0.0  ;;  %v3827_v30 = vld [vmem:[#allocation2 + $0x570] sm:$0xff]  ;;  %v6518_v9 = vpack.c.bf16 %v4342_v21, %v4342_v21  ;;  %v4215_v10 = vmax.f32 %v3959_v24, 0.0  ;;  %v3697_v33 = vld [vmem:[#allocation2 + $0x160] sm:$0xff]  ;;  %5618 = vst.msk [vmem:[%s7994_s29 + $0x294] sm:$0xf] %vm5452_vm4, %v6513_v28  ;;  %v4085_v37 = vadd.f32 %v8248_v34, %v3822_v47  ;;  %v8466_v63 = vpop.f32.mrf.mxu1  ;;  %v8468_v17 = vpop.f32.mrf.mxu0 }
 0x14f   : > { %v4343_v32 = vmax.f32 %v4087_v49, 0.0  ;;  %v3825_v35 = vld [vmem:[#allocation2 + $0x560] sm:$0xff]  ;;  %v6388_v23 = vpack.c.bf16 %v4212_v61, %v4212_v61  ;;  %v3700_v40 = vld [vmem:[#allocation2 + $0x178] sm:$0xff]  ;;  %5495 = vst.msk [vmem:[%s7994_s29 + $0xa8] sm:$0xf] %vm5452_vm4, %v6390_v31  ;;  %v3962_v44 = vadd.f32 %v8248_v34, %v3699_v29  ;;  %v4090_v45 = vadd.f32 %v8248_v34, %v3827_v30 }
 0x150   : > { %v6516_v39 = vpack.c.bf16 %v4340_v62, %v4340_v62  ;;  %v3828_v41 = vld [vmem:[#allocation2 + $0x578] sm:$0xff]  ;;  %5623 = vst.msk [vmem:[%s7994_s29 + $0x2a8] sm:$0xf] %vm5452_vm4, %v6518_v9  ;;  %v6391_v42 = vpack.c.bf16 %v4215_v10, %v4215_v10  ;;  %v4213_v48 = vmax.f32 %v3957_v36, 0.0  ;;  %v4341_v51 = vmax.f32 %v4085_v37, 0.0  ;;  %v3698_v58 = vld [vmem:[#allocation2 + $0x168] sm:$0xff]  ;;  %v8470_v18 = vpop.f32.mrf.mxu1  ;;  %v8484_v62 = vpop.f32.mrf.mxu0 }
 0x151   : > { %v6519_v43 = vpack.c.bf16 %v4343_v32, %v4343_v32  ;;  %5493 = vst.msk [vmem:[%s7994_s29 + $0xa0] sm:$0xf] %vm5452_vm4, %v6388_v23  ;;  %v3960_v52 = vadd.f32 %v8248_v34, %v3697_v33  ;;  %v4088_v53 = vadd.f32 %v8248_v34, %v3825_v35  ;;  %v4218_v54 = vmax.f32 %v3962_v44, 0.0  ;;  %v3826_v59 = vld [vmem:[#allocation2 + $0x568] sm:$0xff]  ;;  %v3703_v4 = vld [vmem:[#allocation2 + $0x190] sm:$0xff] }
 0x152   : > { %5621 = vst.msk [vmem:[%s7994_s29 + $0x2a0] sm:$0xf] %vm5452_vm4, %v6516_v39  ;;  %5496 = vst.msk [vmem:[%s7994_s29 + $0xac] sm:$0xf] %vm5452_vm4, %v6391_v42  ;;  %v4346_v55 = vmax.f32 %v4090_v45, 0.0  ;;  %v3963_v56 = vadd.f32 %v8248_v34, %v3700_v40  ;;  %v4091_v57 = vadd.f32 %v8248_v34, %v3828_v41  ;;  %v6389_v0 = vpack.c.bf16 %v4213_v48, %v4213_v48  ;;  %v3831_v5 = vld [vmem:[#allocation2 + $0x590] sm:$0xff]  ;;  %v8486_v29 = vpop.f32.mrf.mxu1 }
 0x153   : > { %5624 = vst.msk [vmem:[%s7994_s29 + $0x2ac] sm:$0xf] %vm5452_vm4, %v6519_v43  ;;  %v6517_v1 = vpack.c.bf16 %v4341_v51, %v4341_v51  ;;  %v4216_v2 = vmax.f32 %v3960_v52, 0.0  ;;  %v4344_v3 = vmax.f32 %v4088_v53, 0.0  ;;  %v6394_v6 = vpack.c.bf16 %v4218_v54, %v4218_v54  ;;  %v3701_v15 = vld [vmem:[#allocation2 + $0x180] sm:$0xff]  ;;  %v3704_v49 = vld [vmem:[#allocation2 + $0x198] sm:$0xff]  ;;  %v8500_v43 = vpop.f32.mrf.mxu0 }
 0x154   : > { %v6522_v7 = vpack.c.bf16 %v4346_v55, %v4346_v55  ;;  %v4219_v8 = vmax.f32 %v3963_v56, 0.0  ;;  %v4347_v14 = vmax.f32 %v4091_v57, 0.0  ;;  %v3829_v16 = vld [vmem:[#allocation2 + $0x580] sm:$0xff]  ;;  %5494 = vst.msk [vmem:[%s7994_s29 + $0xa4] sm:$0xf] %vm5452_vm4, %v6389_v0  ;;  %v3961_v21 = vadd.f32 %v8248_v34, %v3698_v58  ;;  %v3832_v25 = vld [vmem:[#allocation2 + $0x598] sm:$0xff]  ;;  %v8502_v44 = vpop.f32.mrf.mxu1 }
 0x155   : > { %5622 = vst.msk [vmem:[%s7994_s29 + $0x2a4] sm:$0xf] %vm5452_vm4, %v6517_v1  ;;  %v6392_v19 = vpack.c.bf16 %v4216_v2, %v4216_v2  ;;  %v6520_v20 = vpack.c.bf16 %v4344_v3, %v4344_v3  ;;  %v4089_v24 = vadd.f32 %v8248_v34, %v3826_v59  ;;  %5499 = vst.msk [vmem:[%s7994_s29 + $0xb8] sm:$0xf] %vm5452_vm4, %v6394_v6  ;;  %v570_v32 = vld [vmem:[#allocation2 + $0x188] sm:$0xff]  ;;  %v575_v35 = vld [vmem:[#allocation2 + $0x1b0] sm:$0xff]  ;;  %v2341_v2 = vpop.f32.mrf.mxu0 }
 0x156   : > { %5627 = vst.msk [vmem:[%s7994_s29 + $0x2b8] sm:$0xf] %vm5452_vm4, %v6522_v7  ;;  %v6395_v47 = vpack.c.bf16 %v4219_v8, %v4219_v8  ;;  %v6523_v27 = vpack.c.bf16 %v4347_v14, %v4347_v14  ;;  %v3966_v28 = vadd.f32 %v8248_v34, %v3703_v4  ;;  %v4094_v61 = vadd.f32 %v8248_v34, %v3831_v5  ;;  %v698_v33 = vld [vmem:[#allocation2 + $0x588] sm:$0xff]  ;;  %v703_v40 = vld [vmem:[#allocation2 + $0x5b0] sm:$0xff]  ;;  %v573_v41 = vld [vmem:[#allocation2 + $0x1a0] sm:$0xff]  ;;  %v2853_v3 = vpop.f32.mrf.mxu1 }
 0x157   : > { %5497 = vst.msk [vmem:[%s7994_s29 + $0xb0] sm:$0xf] %vm5452_vm4, %v6392_v19  ;;  %5625 = vst.msk [vmem:[%s7994_s29 + $0x2b0] sm:$0xf] %vm5452_vm4, %v6520_v20  ;;  %v4217_v30 = vmax.f32 %v3961_v21, 0.0  ;;  %v4345_v31 = vmax.f32 %v4089_v24, 0.0  ;;  %v3964_v9 = vadd.f32 %v8248_v34, %v3701_v15  ;;  %v4092_v10 = vadd.f32 %v8248_v34, %v3829_v16 }
 0x158   : > { %5500 = vst.msk [vmem:[%s7994_s29 + $0xbc] sm:$0xf] %vm5452_vm4, %v6395_v47  ;;  %5628 = vst.msk [vmem:[%s7994_s29 + $0x2bc] sm:$0xf] %vm5452_vm4, %v6523_v27  ;;  %v4222_v23 = vmax.f32 %v3966_v28, 0.0  ;;  %v4350_v39 = vmax.f32 %v4094_v61, 0.0  ;;  %v3967_v36 = vadd.f32 %v8248_v34, %v3704_v49  ;;  %v4095_v37 = vadd.f32 %v8248_v34, %v3832_v25  ;;  %v6928_v25 = vpop.f32.mrf.mxu1 }
 0x159   : > { %v701_v42 = vld [vmem:[#allocation2 + $0x5a0] sm:$0xff]  ;;  %v6393_v45 = vpack.c.bf16 %v4217_v30, %v4217_v30  ;;  %v6521_v48 = vpack.c.bf16 %v4345_v31, %v4345_v31  ;;  %v4220_v51 = vmax.f32 %v3964_v9, 0.0  ;;  %v4348_v52 = vmax.f32 %v4092_v10, 0.0  ;;  %v576_v53 = vld [vmem:[#allocation2 + $0x1b8] sm:$0xff]  ;;  %v574_v55 = vld [vmem:[#allocation2 + $0x1a8] sm:$0xff] }
 0x15a   : > { %v704_v54 = vld [vmem:[#allocation2 + $0x5b8] sm:$0xff]  ;;  %v6398_v56 = vpack.c.bf16 %v4222_v23, %v4222_v23  ;;  %v6526_v57 = vpack.c.bf16 %v4350_v39, %v4350_v39  ;;  %v4223_v58 = vmax.f32 %v3967_v36, 0.0  ;;  %v4351_v34 = vmax.f32 %v4095_v37, 0.0  ;;  %v702_v59 = vld [vmem:[#allocation2 + $0x5a8] sm:$0xff]  ;;  %v579_v0 = vld [vmem:[#allocation2 + $0x1d0] sm:$0xff]  ;;  %v2866_v10 = vpop.f32.mrf.mxu1 }
 0x15b   : > { %v707_v1 = vld [vmem:[#allocation2 + $0x5d0] sm:$0xff]  ;;  %5498 = vst.msk [vmem:[%s7994_s29 + $0xb4] sm:$0xf] %vm5452_vm4, %v6393_v45  ;;  %5626 = vst.msk [vmem:[%s7994_s29 + $0x2b4] sm:$0xf] %vm5452_vm4, %v6521_v48  ;;  %v6396_v4 = vpack.c.bf16 %v4220_v51, %v4220_v51  ;;  %v6524_v5 = vpack.c.bf16 %v4348_v52, %v4348_v52  ;;  %v3186_v6 = vadd.f32 %v8418_v12, %v570_v32  ;;  %v577_v8 = vld [vmem:[#allocation2 + $0x1c0] sm:$0xff] }
 0x15c   : > { %v3314_v7 = vadd.f32 %v8420_v13, %v698_v33  ;;  %v705_v14 = vld [vmem:[#allocation2 + $0x5c0] sm:$0xff]  ;;  %v580_v15 = vld [vmem:[#allocation2 + $0x1d8] sm:$0xff]  ;;  %5503 = vst.msk [vmem:[%s7994_s29 + $0xc8] sm:$0xf] %vm5452_vm4, %v6398_v56  ;;  %5631 = vst.msk [vmem:[%s7994_s29 + $0x2c8] sm:$0xf] %vm5452_vm4, %v6526_v57  ;;  %v6399_v16 = vpack.c.bf16 %v4223_v58, %v4223_v58  ;;  %v6527_v19 = vpack.c.bf16 %v4351_v34, %v4351_v34  ;;  %v6800_v13 = vpop.f32.mrf.mxu0 }
 0x15d   : > { %v3191_v20 = vadd.f32 %v8428_v26, %v575_v35  ;;  %v3319_v21 = vadd.f32 %v8430_v11, %v703_v40  ;;  %v708_v24 = vld [vmem:[#allocation2 + $0x5d8] sm:$0xff]  ;;  %v578_v12 = vld [vmem:[#allocation2 + $0x1c8] sm:$0xff]  ;;  %5501 = vst.msk [vmem:[%s7994_s29 + $0xc0] sm:$0xf] %vm5452_vm4, %v6396_v4  ;;  %5629 = vst.msk [vmem:[%s7994_s29 + $0x2c0] sm:$0xf] %vm5452_vm4, %v6524_v5  ;;  %v3189_v47 = vadd.f32 %v8432_v38, %v573_v41 }
 0x15e   : > { %v706_v49 = vld [vmem:[#allocation2 + $0x5c8] sm:$0xff]  ;;  %3443 = vst.msk [vmem:[#allocation2 + $0x188] sm:$0xff] %vm264_vm3, %v3186_v6  ;;  %3571 = vst.msk [vmem:[#allocation2 + $0x588] sm:$0xff] %vm264_vm3, %v3314_v7  ;;  %v3317_v26 = vadd.f32 %v8434_v22, %v701_v42  ;;  %v3192_v11 = vadd.f32 %v8448_v46, %v576_v53  ;;  %v3320_v27 = vadd.f32 %v8450_v50, %v704_v54  ;;  %v583_v28 = vld [vmem:[#allocation2 + $0x1f0] sm:$0xff]  ;;  %v2354_v50 = vpop.f32.mrf.mxu0 }
 0x15f   : > { %v711_v61 = vld [vmem:[#allocation2 + $0x5f0] sm:$0xff]  ;;  %v581_v30 = vld [vmem:[#allocation2 + $0x1e0] sm:$0xff]  ;;  %5504 = vst.msk [vmem:[%s7994_s29 + $0xcc] sm:$0xf] %vm5452_vm4, %v6399_v16  ;;  %5632 = vst.msk [vmem:[%s7994_s29 + $0x2cc] sm:$0xf] %vm5452_vm4, %v6527_v19  ;;  %v3190_v31 = vadd.f32 %v8464_v60, %v574_v55  ;;  %v3318_v38 = vadd.f32 %v8466_v63, %v702_v59  ;;  %v3195_v22 = vadd.f32 %v8468_v17, %v579_v0 }
 0x160   : > { %3448 = vst.msk [vmem:[#allocation2 + $0x1b0] sm:$0xff] %vm264_vm3, %v3191_v20  ;;  %3576 = vst.msk [vmem:[#allocation2 + $0x5b0] sm:$0xff] %vm264_vm3, %v3319_v21  ;;  %v3323_v46 = vadd.f32 %v8470_v18, %v707_v1  ;;  %v709_v9 = vld [vmem:[#allocation2 + $0x5e0] sm:$0xff]  ;;  %v584_v32 = vld [vmem:[#allocation2 + $0x1f8] sm:$0xff]  ;;  %v3193_v60 = vadd.f32 %v8484_v62, %v577_v8  ;;  %v3321_v63 = vadd.f32 %v8486_v29, %v705_v14  ;;  %v6801_v37 = vpop.f32.mrf.mxu0  ;;  %v6929_v62 = vpop.f32.mrf.mxu1 }
 0x161   : > { %v712_v33 = vld [vmem:[#allocation2 + $0x5f8] sm:$0xff]  ;;  %3446 = vst.msk [vmem:[#allocation2 + $0x1a0] sm:$0xff] %vm264_vm3, %v3189_v47  ;;  %3574 = vst.msk [vmem:[#allocation2 + $0x5a0] sm:$0xff] %vm264_vm3, %v3317_v26  ;;  %v3196_v17 = vadd.f32 %v8500_v43, %v580_v15  ;;  %v3324_v18 = vadd.f32 %v8502_v44, %v708_v24  ;;  %v3194_v35 = vadd.f32 %v2341_v2, %v578_v12  ;;  %v582_v40 = vld [vmem:[#allocation2 + $0x1e8] sm:$0xff] }
 0x162   : > { %3449 = vst.msk [vmem:[#allocation2 + $0x1b8] sm:$0xff] %vm264_vm3, %v3192_v11  ;;  %3577 = vst.msk [vmem:[#allocation2 + $0x5b8] sm:$0xff] %vm264_vm3, %v3320_v27  ;;  %v3322_v23 = vadd.f32 %v2853_v3, %v706_v49  ;;  %v3199_v39 = vadd.f32 %v6800_v13, %v583_v28  ;;  %v3327_v36 = vadd.f32 %v6928_v25, %v711_v61  ;;  %v710_v29 = vld [vmem:[#allocation2 + $0x5e8] sm:$0xff]  ;;  %v2357_v45 = vpop.f32.mrf.mxu0  ;;  %v2869_v48 = vpop.f32.mrf.mxu1  ;;  %v587_v51 = vld [vmem:[#allocation2 + $0x210] sm:$0xff] }
 0x163   : > { %3447 = vst.msk [vmem:[#allocation2 + $0x1a8] sm:$0xff] %vm264_vm3, %v3190_v31  ;;  %3575 = vst.msk [vmem:[#allocation2 + $0x5a8] sm:$0xff] %vm264_vm3, %v3318_v38  ;;  %v3197_v41 = vadd.f32 %v2354_v50, %v581_v30  ;;  %v3325_v42 = vadd.f32 %v2866_v10, %v709_v9  ;;  %v3200_v43 = vadd.f32 %v6801_v37, %v584_v32  ;;  %v715_v52 = vld [vmem:[#allocation2 + $0x610] sm:$0xff]  ;;  %v8563_v34 = vld [vmem:[%s9445_s2] ss:$0 sm:$0xff] }
 0x164   : > { %3452 = vst.msk [vmem:[#allocation2 + $0x1d0] sm:$0xff] %vm264_vm3, %v3195_v22  ;;  %3580 = vst.msk [vmem:[#allocation2 + $0x5d0] sm:$0xff] %vm264_vm3, %v3323_v46  ;;  %v3328_v44 = vadd.f32 %v6929_v62, %v712_v33  ;;  %v3198_v53 = vadd.f32 %v2357_v45, %v582_v40  ;;  %v3326_v54 = vadd.f32 %v2869_v48, %v710_v29  ;;  %v6804_v57 = vpop.f32.mrf.mxu0  ;;  %v6932_v58 = vpop.f32.mrf.mxu1 }
 0x165   : > { %3450 = vst.msk [vmem:[#allocation2 + $0x1c0] sm:$0xff] %vm264_vm3, %v3193_v60  ;;  %3578 = vst.msk [vmem:[#allocation2 + $0x5c0] sm:$0xff] %vm264_vm3, %v3321_v63  ;;  %v3702_v55 = vld [vmem:[#allocation2 + $0x188] sm:$0xff]  ;;  %v3203_v3 = vadd.f32 %v6804_v57, %v587_v51  ;;  %v3331_v4 = vadd.f32 %v6932_v58, %v715_v52 }
 0x166   : > { %3453 = vst.msk [vmem:[#allocation2 + $0x1d8] sm:$0xff] %vm264_vm3, %v3196_v17  ;;  %3581 = vst.msk [vmem:[#allocation2 + $0x5d8] sm:$0xff] %vm264_vm3, %v3324_v18  ;;  %v3830_v56 = vld [vmem:[#allocation2 + $0x588] sm:$0xff]  ;;  %v3965_v59 = vadd.f32 %v8563_v34, %v3702_v55  ;;  %v8571_v15 = vpop.f32.mrf.mxu0  ;;  %v8573_v16 = vpop.f32.mrf.mxu1 }
 0x167   : > { %3451 = vst.msk [vmem:[#allocation2 + $0x1c8] sm:$0xff] %vm264_vm3, %v3194_v35  ;;  %3579 = vst.msk [vmem:[#allocation2 + $0x5c8] sm:$0xff] %vm264_vm3, %v3322_v23  ;;  %v4093_v0 = vadd.f32 %v8563_v34, %v3830_v56  ;;  %v3707_v1 = vld [vmem:[#allocation2 + $0x1b0] sm:$0xff] }
 0x168   : > { %3456 = vst.msk [vmem:[#allocation2 + $0x1f0] sm:$0xff] %vm264_vm3, %v3199_v39  ;;  %3584 = vst.msk [vmem:[#allocation2 + $0x5f0] sm:$0xff] %vm264_vm3, %v3327_v36  ;;  %v3835_v2 = vld [vmem:[#allocation2 + $0x5b0] sm:$0xff]  ;;  %v3970_v5 = vadd.f32 %v8563_v34, %v3707_v1  ;;  %v3705_v7 = vld [vmem:[#allocation2 + $0x1a0] sm:$0xff]  ;;  %v4221_v19 = vmax.f32 %v3965_v59, 0.0  ;;  %v8581_v27 = vpop.f32.mrf.mxu0  ;;  %v8583_v28 = vpop.f32.mrf.mxu1 }
 0x169   : > { %3454 = vst.msk [vmem:[#allocation2 + $0x1e0] sm:$0xff] %vm264_vm3, %v3197_v41  ;;  %3582 = vst.msk [vmem:[#allocation2 + $0x5e0] sm:$0xff] %vm264_vm3, %v3325_v42  ;;  %v4098_v6 = vadd.f32 %v8563_v34, %v3835_v2  ;;  %v3833_v8 = vld [vmem:[#allocation2 + $0x5a0] sm:$0xff]  ;;  %v3708_v14 = vld [vmem:[#allocation2 + $0x1b8] sm:$0xff]  ;;  %v4349_v20 = vmax.f32 %v4093_v0, 0.0  ;;  %v3968_v21 = vadd.f32 %v8563_v34, %v3705_v7 }
 0x16a   : > { %3457 = vst.msk [vmem:[#allocation2 + $0x1f8] sm:$0xff] %vm264_vm3, %v3200_v43  ;;  %3585 = vst.msk [vmem:[#allocation2 + $0x5f8] sm:$0xff] %vm264_vm3, %v3328_v44  ;;  %v4096_v24 = vadd.f32 %v8563_v34, %v3833_v8  ;;  %v3836_v12 = vld [vmem:[#allocation2 + $0x5b8] sm:$0xff]  ;;  %v4226_v49 = vmax.f32 %v3970_v5, 0.0  ;;  %v3971_v25 = vadd.f32 %v8563_v34, %v3708_v14  ;;  %v3706_v26 = vld [vmem:[#allocation2 + $0x1a8] sm:$0xff]  ;;  %v6397_v61 = vpack.c.bf16 %v4221_v19, %v4221_v19  ;;  %v8585_v63 = vpop.f32.mrf.mxu0  ;;  %v8587_v17 = vpop.f32.mrf.mxu1 }
 0x16b   : > { %3455 = vst.msk [vmem:[#allocation2 + $0x1e8] sm:$0xff] %vm264_vm3, %v3198_v53  ;;  %3583 = vst.msk [vmem:[#allocation2 + $0x5e8] sm:$0xff] %vm264_vm3, %v3326_v54  ;;  %v4354_v13 = vmax.f32 %v4098_v6, 0.0  ;;  %v4099_v47 = vadd.f32 %v8563_v34, %v3836_v12  ;;  %v3834_v11 = vld [vmem:[#allocation2 + $0x5a8] sm:$0xff]  ;;  %v6525_v30 = vpack.c.bf16 %v4349_v20, %v4349_v20  ;;  %v4224_v31 = vmax.f32 %v3968_v21, 0.0  ;;  %v3711_v22 = vld [vmem:[#allocation2 + $0x1d0] sm:$0xff] }
 0x16c   : > { %3460 = vst.msk [vmem:[#allocation2 + $0x210] sm:$0xff] %vm264_vm3, %v3203_v3  ;;  %3588 = vst.msk [vmem:[#allocation2 + $0x610] sm:$0xff] %vm264_vm3, %v3331_v4  ;;  %v4352_v38 = vmax.f32 %v4096_v24, 0.0  ;;  %v3839_v46 = vld [vmem:[#allocation2 + $0x5d0] sm:$0xff]  ;;  %v6402_v50 = vpack.c.bf16 %v4226_v49, %v4226_v49  ;;  %v4227_v10 = vmax.f32 %v3971_v25, 0.0  ;;  %v3709_v33 = vld [vmem:[#allocation2 + $0x1c0] sm:$0xff]  ;;  %v3969_v23 = vadd.f32 %v8563_v34, %v3706_v26  ;;  %v8601_v42 = vpop.f32.mrf.mxu0  ;;  %v8603_v43 = vpop.f32.mrf.mxu1 }
 0x16d   : > { %v6530_v9 = vpack.c.bf16 %v4354_v13, %v4354_v13  ;;  %v4355_v32 = vmax.f32 %v4099_v47, 0.0  ;;  %v3837_v60 = vld [vmem:[#allocation2 + $0x5c0] sm:$0xff]  ;;  %5502 = vst.msk [vmem:[%s7994_s29 + $0xc4] sm:$0xf] %vm5452_vm4, %v6397_v61  ;;  %5630 = vst.msk [vmem:[%s7994_s29 + $0x2c4] sm:$0xf] %vm5452_vm4, %v6525_v30  ;;  %v6400_v18 = vpack.c.bf16 %v4224_v31, %v4224_v31  ;;  %v4097_v39 = vadd.f32 %v8563_v34, %v3834_v11 }
 0x16e   : > { %v6528_v35 = vpack.c.bf16 %v4352_v38, %v4352_v38  ;;  %v3712_v36 = vld [vmem:[#allocation2 + $0x1d8] sm:$0xff]  ;;  %5507 = vst.msk [vmem:[%s7994_s29 + $0xd8] sm:$0xf] %vm5452_vm4, %v6402_v50  ;;  %v6403_v62 = vpack.c.bf16 %v4227_v10, %v4227_v10  ;;  %v3974_v29 = vadd.f32 %v8563_v34, %v3711_v22  ;;  %v4102_v41 = vadd.f32 %v8563_v34, %v3839_v46  ;;  %v3710_v56 = vld [vmem:[#allocation2 + $0x1c8] sm:$0xff]  ;;  %v8617_v58 = vpop.f32.mrf.mxu0  ;;  %v8619_v59 = vpop.f32.mrf.mxu1 }
 0x16f   : > { %v3840_v37 = vld [vmem:[#allocation2 + $0x5d8] sm:$0xff]  ;;  %5635 = vst.msk [vmem:[%s7994_s29 + $0x2d8] sm:$0xf] %vm5452_vm4, %v6530_v9  ;;  %v6531_v40 = vpack.c.bf16 %v4355_v32, %v4355_v32  ;;  %5505 = vst.msk [vmem:[%s7994_s29 + $0xd0] sm:$0xf] %vm5452_vm4, %v6400_v18  ;;  %v4225_v44 = vmax.f32 %v3969_v23, 0.0  ;;  %v3972_v48 = vadd.f32 %v8563_v34, %v3709_v33  ;;  %v4100_v51 = vadd.f32 %v8563_v34, %v3837_v60 }
 0x170   : > { %5633 = vst.msk [vmem:[%s7994_s29 + $0x2d0] sm:$0xf] %vm5452_vm4, %v6528_v35  ;;  %v4353_v45 = vmax.f32 %v4097_v39, 0.0  ;;  %5508 = vst.msk [vmem:[%s7994_s29 + $0xdc] sm:$0xf] %vm5452_vm4, %v6403_v62  ;;  %v4230_v52 = vmax.f32 %v3974_v29, 0.0  ;;  %v3975_v54 = vadd.f32 %v8563_v34, %v3712_v36  ;;  %v4103_v55 = vadd.f32 %v8563_v34, %v3840_v37  ;;  %v8621_v21 = vpop.f32.mrf.mxu0  ;;  %v8623_v24 = vpop.f32.mrf.mxu1 }
 0x171   : > { %5636 = vst.msk [vmem:[%s7994_s29 + $0x2dc] sm:$0xf] %vm5452_vm4, %v6531_v40  ;;  %v4358_v53 = vmax.f32 %v4102_v41, 0.0  ;;  %v3838_v57 = vld [vmem:[#allocation2 + $0x5c8] sm:$0xff]  ;;  %v6401_v0 = vpack.c.bf16 %v4225_v44, %v4225_v44  ;;  %v4228_v2 = vmax.f32 %v3972_v48, 0.0  ;;  %v4356_v3 = vmax.f32 %v4100_v51, 0.0 }
 0x172   : > { %v6529_v1 = vpack.c.bf16 %v4353_v45, %v4353_v45  ;;  %v3715_v4 = vld [vmem:[#allocation2 + $0x1f0] sm:$0xff]  ;;  %v6406_v6 = vpack.c.bf16 %v4230_v52, %v4230_v52  ;;  %v4231_v8 = vmax.f32 %v3975_v54, 0.0  ;;  %v4359_v14 = vmax.f32 %v4103_v55, 0.0  ;;  %v3713_v19 = vld [vmem:[#allocation2 + $0x1e0] sm:$0xff]  ;;  %v3716_v47 = vld [vmem:[#allocation2 + $0x1f8] sm:$0xff]  ;;  %v8637_v38 = vpop.f32.mrf.mxu0  ;;  %v8639_v22 = vpop.f32.mrf.mxu1 }
 0x173   : > { %v3843_v5 = vld [vmem:[#allocation2 + $0x5f0] sm:$0xff]  ;;  %v6534_v7 = vpack.c.bf16 %v4358_v53, %v4358_v53  ;;  %v3841_v20 = vld [vmem:[#allocation2 + $0x5e0] sm:$0xff]  ;;  %5506 = vst.msk [vmem:[%s7994_s29 + $0xd4] sm:$0xf] %vm5452_vm4, %v6401_v0  ;;  %v6404_v12 = vpack.c.bf16 %v4228_v2, %v4228_v2  ;;  %v6532_v49 = vpack.c.bf16 %v4356_v3, %v4356_v3  ;;  %v3973_v13 = vadd.f32 %v8563_v34, %v3710_v56  ;;  %v3844_v26 = vld [vmem:[#allocation2 + $0x5f8] sm:$0xff] }
 0x174   : > { %5634 = vst.msk [vmem:[%s7994_s29 + $0x2d4] sm:$0xf] %vm5452_vm4, %v6529_v1  ;;  %v4101_v25 = vadd.f32 %v8563_v34, %v3838_v57  ;;  %5511 = vst.msk [vmem:[%s7994_s29 + $0xe8] sm:$0xf] %vm5452_vm4, %v6406_v6  ;;  %v6407_v11 = vpack.c.bf16 %v4231_v8, %v4231_v8  ;;  %v6535_v61 = vpack.c.bf16 %v4359_v14, %v4359_v14  ;;  %v3714_v35 = vld [vmem:[#allocation2 + $0x1e8] sm:$0xff]  ;;  %v8653_v39 = vpop.f32.mrf.mxu0  ;;  %v8655_v36 = vpop.f32.mrf.mxu1  ;;  %v3719_v41 = vld [vmem:[#allocation2 + $0x210] sm:$0xff] }
 0x175   : > { %5639 = vst.msk [vmem:[%s7994_s29 + $0x2e8] sm:$0xf] %vm5452_vm4, %v6534_v7  ;;  %v3978_v30 = vadd.f32 %v8563_v34, %v3715_v4  ;;  %v4106_v31 = vadd.f32 %v8563_v34, %v3843_v5  ;;  %5509 = vst.msk [vmem:[%s7994_s29 + $0xe0] sm:$0xf] %vm5452_vm4, %v6404_v12  ;;  %v4229_v46 = vmax.f32 %v3973_v13, 0.0  ;;  %v3976_v9 = vadd.f32 %v8563_v34, %v3713_v19  ;;  %v3842_v23 = vld [vmem:[#allocation2 + $0x5e8] sm:$0xff] }
 0x176   : > { %5637 = vst.msk [vmem:[%s7994_s29 + $0x2e0] sm:$0xf] %vm5452_vm4, %v6532_v49  ;;  %v4357_v50 = vmax.f32 %v4101_v25, 0.0  ;;  %v4104_v10 = vadd.f32 %v8563_v34, %v3841_v20  ;;  %5512 = vst.msk [vmem:[%s7994_s29 + $0xec] sm:$0xf] %vm5452_vm4, %v6407_v11  ;;  %v3979_v60 = vadd.f32 %v8563_v34, %v3716_v47  ;;  %v4107_v18 = vadd.f32 %v8563_v34, %v3844_v26  ;;  %v3847_v44 = vld [vmem:[#allocation2 + $0x610] sm:$0xff]  ;;  %v8657_v57 = vpop.f32.mrf.mxu0  ;;  %v8659_v0 = vpop.f32.mrf.mxu1 }
 0x177   : > { %5640 = vst.msk [vmem:[%s7994_s29 + $0x2ec] sm:$0xf] %vm5452_vm4, %v6535_v61  ;;  %v4234_v32 = vmax.f32 %v3978_v30, 0.0  ;;  %v4362_v33 = vmax.f32 %v4106_v31, 0.0  ;;  %v6405_v37 = vpack.c.bf16 %v4229_v46, %v4229_v46  ;;  %v4232_v40 = vmax.f32 %v3976_v9, 0.0  ;;  %v585_v45 = vld [vmem:[#allocation2 + $0x200] sm:$0xff] }
 0x178   : > { %v6533_v62 = vpack.c.bf16 %v4357_v50, %v4357_v50  ;;  %v4360_v29 = vmax.f32 %v4104_v10, 0.0  ;;  %v4235_v52 = vmax.f32 %v3979_v60, 0.0  ;;  %v4363_v53 = vmax.f32 %v4107_v18, 0.0  ;;  %v713_v54 = vld [vmem:[#allocation2 + $0x600] sm:$0xff]  ;;  %v588_v55 = vld [vmem:[#allocation2 + $0x218] sm:$0xff]  ;;  %v586_v5 = vld [vmem:[#allocation2 + $0x208] sm:$0xff]  ;;  %v8673_v25 = vpop.f32.mrf.mxu0  ;;  %v8675_v47 = vpop.f32.mrf.mxu1 }
 0x179   : > { %v6410_v48 = vpack.c.bf16 %v4234_v32, %v4234_v32  ;;  %v6538_v51 = vpack.c.bf16 %v4362_v33, %v4362_v33  ;;  %v716_v56 = vld [vmem:[#allocation2 + $0x618] sm:$0xff]  ;;  %5510 = vst.msk [vmem:[%s7994_s29 + $0xe4] sm:$0xf] %vm5452_vm4, %v6405_v37  ;;  %v6408_v1 = vpack.c.bf16 %v4232_v40, %v4232_v40  ;;  %v3977_v3 = vadd.f32 %v8563_v34, %v3714_v35  ;;  %v714_v6 = vld [vmem:[#allocation2 + $0x608] sm:$0xff]  ;;  %v591_v7 = vld [vmem:[#allocation2 + $0x230] sm:$0xff] }
 0x17a   : > { %5638 = vst.msk [vmem:[%s7994_s29 + $0x2e4] sm:$0xf] %vm5452_vm4, %v6533_v62  ;;  %v6536_v2 = vpack.c.bf16 %v4360_v29, %v4360_v29  ;;  %v4105_v4 = vadd.f32 %v8563_v34, %v3842_v23  ;;  %v6411_v8 = vpack.c.bf16 %v4235_v52, %v4235_v52  ;;  %v6539_v14 = vpack.c.bf16 %v4363_v53, %v4363_v53  ;;  %v719_v12 = vld [vmem:[#allocation2 + $0x630] sm:$0xff]  ;;  %v589_v49 = vld [vmem:[#allocation2 + $0x220] sm:$0xff]  ;;  %v592_v31 = vld [vmem:[#allocation2 + $0x238] sm:$0xff]  ;;  %v2405_v23 = vpop.f32.mrf.mxu0 }
 0x17b   : > { %5515 = vst.msk [vmem:[%s7994_s29 + $0xf8] sm:$0xf] %vm5452_vm4, %v6410_v48  ;;  %5643 = vst.msk [vmem:[%s7994_s29 + $0x2f8] sm:$0xf] %vm5452_vm4, %v6538_v51  ;;  %v3982_v19 = vadd.f32 %v8563_v34, %v3719_v41  ;;  %v4110_v20 = vadd.f32 %v8563_v34, %v3847_v44  ;;  %v717_v13 = vld [vmem:[#allocation2 + $0x620] sm:$0xff]  ;;  %v4233_v26 = vmax.f32 %v3977_v3, 0.0  ;;  %v3201_v61 = vadd.f32 %v8571_v15, %v585_v45  ;;  %v2917_v15 = vpop.f32.mrf.mxu1 }
 0x17c   : > { %5513 = vst.msk [vmem:[%s7994_s29 + $0xf0] sm:$0xf] %vm5452_vm4, %v6408_v1  ;;  %5641 = vst.msk [vmem:[%s7994_s29 + $0x2f0] sm:$0xf] %vm5452_vm4, %v6536_v2  ;;  %v4361_v11 = vmax.f32 %v4105_v4, 0.0  ;;  %v3329_v30 = vadd.f32 %v8573_v16, %v713_v54  ;;  %v720_v46 = vld [vmem:[#allocation2 + $0x638] sm:$0xff]  ;;  %v3204_v32 = vadd.f32 %v8581_v27, %v588_v55  ;;  %v3332_v33 = vadd.f32 %v8583_v28, %v716_v56 }
 0x17d   : > { %v590_v50 = vld [vmem:[#allocation2 + $0x228] sm:$0xff]  ;;  %5516 = vst.msk [vmem:[%s7994_s29 + $0xfc] sm:$0xf] %vm5452_vm4, %v6411_v8  ;;  %5644 = vst.msk [vmem:[%s7994_s29 + $0x2fc] sm:$0xf] %vm5452_vm4, %v6539_v14  ;;  %v4238_v9 = vmax.f32 %v3982_v19, 0.0  ;;  %v6409_v37 = vpack.c.bf16 %v4233_v26, %v4233_v26  ;;  %v3202_v62 = vadd.f32 %v8585_v63, %v586_v5  ;;  %v3330_v40 = vadd.f32 %v8587_v17, %v714_v6  ;;  %v6816_v17 = vpop.f32.mrf.mxu0  ;;  %v6944_v53 = vpop.f32.mrf.mxu1 }
 0x17e   : > { %v4366_v10 = vmax.f32 %v4110_v20, 0.0  ;;  %v718_v60 = vld [vmem:[#allocation2 + $0x628] sm:$0xff]  ;;  %v595_v18 = vld [vmem:[#allocation2 + $0x250] sm:$0xff]  ;;  %v6537_v16 = vpack.c.bf16 %v4361_v11, %v4361_v11  ;;  %3458 = vst.msk [vmem:[#allocation2 + $0x200] sm:$0xff] %vm264_vm3, %v3201_v61  ;;  %3586 = vst.msk [vmem:[#allocation2 + $0x600] sm:$0xff] %vm264_vm3, %v3329_v30  ;;  %v3207_v45 = vadd.f32 %v8601_v42, %v591_v7  ;;  %v3335_v48 = vadd.f32 %v8603_v43, %v719_v12 }
 0x17f   : > { %v723_v35 = vld [vmem:[#allocation2 + $0x650] sm:$0xff]  ;;  %v593_v27 = vld [vmem:[#allocation2 + $0x240] sm:$0xff]  ;;  %v596_v28 = vld [vmem:[#allocation2 + $0x258] sm:$0xff]  ;;  %v6414_v41 = vpack.c.bf16 %v4238_v9, %v4238_v9  ;;  %3461 = vst.msk [vmem:[#allocation2 + $0x218] sm:$0xff] %vm264_vm3, %v3204_v32  ;;  %v3205_v54 = vadd.f32 %v8617_v58, %v589_v49  ;;  %v3333_v42 = vadd.f32 %v8619_v59, %v717_v13  ;;  %v3208_v43 = vadd.f32 %v8621_v21, %v592_v31  ;;  %v2930_v5 = vpop.f32.mrf.mxu1 }
 0x180   : > { %v721_v29 = vld [vmem:[#allocation2 + $0x640] sm:$0xff]  ;;  %v6542_v44 = vpack.c.bf16 %v4366_v10, %v4366_v10  ;;  %3589 = vst.msk [vmem:[#allocation2 + $0x618] sm:$0xff] %vm264_vm3, %v3332_v33  ;;  %v724_v51 = vld [vmem:[#allocation2 + $0x658] sm:$0xff]  ;;  %v594_v63 = vld [vmem:[#allocation2 + $0x248] sm:$0xff]  ;;  %v3336_v55 = vadd.f32 %v8623_v24, %v720_v46  ;;  %v3206_v3 = vadd.f32 %v8637_v38, %v590_v50  ;;  %v3334_v58 = vadd.f32 %v8639_v22, %v718_v60  ;;  %v2418_v24 = vpop.f32.mrf.mxu0 }
 0x181   : > { %v722_v52 = vld [vmem:[#allocation2 + $0x648] sm:$0xff]  ;;  %5514 = vst.msk [vmem:[%s7994_s29 + $0xf4] sm:$0xf] %vm5452_vm4, %v6409_v37  ;;  %5642 = vst.msk [vmem:[%s7994_s29 + $0x2f4] sm:$0xf] %vm5452_vm4, %v6537_v16  ;;  %v599_v56 = vld [vmem:[#allocation2 + $0x270] sm:$0xff]  ;;  %v3211_v59 = vadd.f32 %v8653_v39, %v595_v18  ;;  %v3339_v21 = vadd.f32 %v8655_v36, %v723_v35  ;;  %v3209_v38 = vadd.f32 %v8657_v57, %v593_v27  ;;  %v6945_v57 = vpop.f32.mrf.mxu1 }
 0x182   : > { %3459 = vst.msk [vmem:[#allocation2 + $0x208] sm:$0xff] %vm264_vm3, %v3202_v62  ;;  %3587 = vst.msk [vmem:[#allocation2 + $0x608] sm:$0xff] %vm264_vm3, %v3330_v40  ;;  %v727_v1 = vld [vmem:[#allocation2 + $0x670] sm:$0xff]  ;;  %v597_v2 = vld [vmem:[#allocation2 + $0x260] sm:$0xff]  ;;  %v3337_v22 = vadd.f32 %v8659_v0, %v721_v29  ;;  %v3212_v39 = vadd.f32 %v8673_v25, %v596_v28  ;;  %v3340_v36 = vadd.f32 %v8675_v47, %v724_v51  ;;  %v6817_v12 = vpop.f32.mrf.mxu0 }
 0x183   : > { %5519 = vst.msk [vmem:[%s7994_s29 + $0x108] sm:$0xf] %vm5452_vm4, %v6414_v41  ;;  %5647 = vst.msk [vmem:[%s7994_s29 + $0x308] sm:$0xf] %vm5452_vm4, %v6542_v44  ;;  %v725_v4 = vld [vmem:[#allocation2 + $0x660] sm:$0xff]  ;;  %v600_v6 = vld [vmem:[#allocation2 + $0x278] sm:$0xff]  ;;  %v3210_v8 = vadd.f32 %v2405_v23, %v594_v63  ;;  %v3338_v14 = vadd.f32 %v2917_v15, %v722_v52  ;;  %v3215_v19 = vadd.f32 %v6816_v17, %v599_v56  ;;  %v2933_v31 = vpop.f32.mrf.mxu1 }
 0x184   : > { %3464 = vst.msk [vmem:[#allocation2 + $0x230] sm:$0xff] %vm264_vm3, %v3207_v45  ;;  %3592 = vst.msk [vmem:[#allocation2 + $0x630] sm:$0xff] %vm264_vm3, %v3335_v48  ;;  %v728_v7 = vld [vmem:[#allocation2 + $0x678] sm:$0xff]  ;;  %v3343_v20 = vadd.f32 %v6944_v53, %v727_v1  ;;  %v598_v49 = vld [vmem:[#allocation2 + $0x268] sm:$0xff]  ;;  %v3213_v13 = vadd.f32 %v2418_v24, %v597_v2  ;;  %v3341_v25 = vadd.f32 %v2930_v5, %v725_v4  ;;  %v2421_v30 = vpop.f32.mrf.mxu0 }
 0x185   : > { %3462 = vst.msk [vmem:[#allocation2 + $0x220] sm:$0xff] %vm264_vm3, %v3205_v54  ;;  %3590 = vst.msk [vmem:[#allocation2 + $0x620] sm:$0xff] %vm264_vm3, %v3333_v42  ;;  %v726_v0 = vld [vmem:[#allocation2 + $0x668] sm:$0xff]  ;;  %v3216_v47 = vadd.f32 %v6817_v12, %v600_v6  ;;  %v3344_v26 = vadd.f32 %v6945_v57, %v728_v7  ;;  %v3717_v11 = vld [vmem:[#allocation2 + $0x200] sm:$0xff]  ;;  %v3214_v32 = vadd.f32 %v2421_v30, %v598_v49  ;;  %v8747_v37 = vpop.f32.mrf.mxu1 }
 0x186   : > { %3465 = vst.msk [vmem:[#allocation2 + $0x238] sm:$0xff] %vm264_vm3, %v3208_v43  ;;  %3593 = vst.msk [vmem:[#allocation2 + $0x638] sm:$0xff] %vm264_vm3, %v3336_v55  ;;  %v3845_v61 = vld [vmem:[#allocation2 + $0x600] sm:$0xff]  ;;  %v3980_v46 = vadd.f32 %v8563_v34, %v3717_v11  ;;  %v3720_v9 = vld [vmem:[#allocation2 + $0x218] sm:$0xff]  ;;  %v3342_v33 = vadd.f32 %v2933_v31, %v726_v0  ;;  %v8745_v15 = vpop.f32.mrf.mxu0 }
 0x187   : > { %3463 = vst.msk [vmem:[#allocation2 + $0x228] sm:$0xff] %vm264_vm3, %v3206_v3  ;;  %3591 = vst.msk [vmem:[#allocation2 + $0x628] sm:$0xff] %vm264_vm3, %v3334_v58  ;;  %v4108_v50 = vadd.f32 %v8563_v34, %v3845_v61  ;;  %v3848_v10 = vld [vmem:[#allocation2 + $0x618] sm:$0xff]  ;;  %v3983_v60 = vadd.f32 %v8563_v34, %v3720_v9  ;;  %v8757_v17 = vpop.f32.mrf.mxu1 }
 0x188   : > { %3468 = vst.msk [vmem:[#allocation2 + $0x250] sm:$0xff] %vm264_vm3, %v3211_v59  ;;  %3596 = vst.msk [vmem:[#allocation2 + $0x650] sm:$0xff] %vm264_vm3, %v3339_v21  ;;  %v4111_v18 = vadd.f32 %v8563_v34, %v3848_v10  ;;  %v4236_v16 = vmax.f32 %v3980_v46, 0.0  ;;  %v8755_v52 = vpop.f32.mrf.mxu0 }
 0x189   : > { %3466 = vst.msk [vmem:[#allocation2 + $0x240] sm:$0xff] %vm264_vm3, %v3209_v38  ;;  %3594 = vst.msk [vmem:[#allocation2 + $0x640] sm:$0xff] %vm264_vm3, %v3337_v22  ;;  %v3718_v35 = vld [vmem:[#allocation2 + $0x208] sm:$0xff]  ;;  %v4364_v62 = vmax.f32 %v4108_v50, 0.0  ;;  %v4239_v41 = vmax.f32 %v3983_v60, 0.0  ;;  %v8761_v4 = vpop.f32.mrf.mxu1 }
 0x18a   : > { %3469 = vst.msk [vmem:[#allocation2 + $0x258] sm:$0xff] %vm264_vm3, %v3212_v39  ;;  %3597 = vst.msk [vmem:[#allocation2 + $0x658] sm:$0xff] %vm264_vm3, %v3340_v36  ;;  %v3846_v23 = vld [vmem:[#allocation2 + $0x608] sm:$0xff]  ;;  %v3981_v40 = vadd.f32 %v8563_v34, %v3718_v35  ;;  %v4367_v44 = vmax.f32 %v4111_v18, 0.0  ;;  %v6412_v53 = vpack.c.bf16 %v4236_v16, %v4236_v16  ;;  %v8759_v24 = vpop.f32.mrf.mxu0 }
 0x18b   : > { %3467 = vst.msk [vmem:[#allocation2 + $0x248] sm:$0xff] %vm264_vm3, %v3210_v8  ;;  %3595 = vst.msk [vmem:[#allocation2 + $0x648] sm:$0xff] %vm264_vm3, %v3338_v14  ;;  %v4109_v27 = vadd.f32 %v8563_v34, %v3846_v23  ;;  %v3723_v29 = vld [vmem:[#allocation2 + $0x230] sm:$0xff]  ;;  %v6540_v54 = vpack.c.bf16 %v4364_v62, %v4364_v62  ;;  %v6415_v1 = vpack.c.bf16 %v4239_v41, %v4239_v41  ;;  %v8777_v12 = vpop.f32.mrf.mxu1 }
 0x18c   : > { %3472 = vst.msk [vmem:[#allocation2 + $0x270] sm:$0xff] %vm264_vm3, %v3215_v19  ;;  %3600 = vst.msk [vmem:[#allocation2 + $0x670] sm:$0xff] %vm264_vm3, %v3343_v20  ;;  %v3851_v28 = vld [vmem:[#allocation2 + $0x630] sm:$0xff]  ;;  %v3986_v45 = vadd.f32 %v8563_v34, %v3723_v29  ;;  %v3721_v51 = vld [vmem:[#allocation2 + $0x220] sm:$0xff]  ;;  %v4237_v42 = vmax.f32 %v3981_v40, 0.0  ;;  %v6543_v2 = vpack.c.bf16 %v4367_v44, %v4367_v44  ;;  %v8775_v20 = vpop.f32.mrf.mxu0 }
 0x18d   : > { %3470 = vst.msk [vmem:[#allocation2 + $0x260] sm:$0xff] %vm264_vm3, %v3213_v13  ;;  %3598 = vst.msk [vmem:[#allocation2 + $0x660] sm:$0xff] %vm264_vm3, %v3341_v25  ;;  %v4114_v48 = vadd.f32 %v8563_v34, %v3851_v28  ;;  %v3849_v63 = vld [vmem:[#allocation2 + $0x620] sm:$0xff]  ;;  %v4365_v43 = vmax.f32 %v4109_v27, 0.0  ;;  %v3724_v55 = vld [vmem:[#allocation2 + $0x238] sm:$0xff]  ;;  %v3984_v7 = vadd.f32 %v8563_v34, %v3721_v51  ;;  %v8793_v46 = vpop.f32.mrf.mxu1 }
 0x18e   : > { %3473 = vst.msk [vmem:[#allocation2 + $0x278] sm:$0xff] %vm264_vm3, %v3216_v47  ;;  %3601 = vst.msk [vmem:[#allocation2 + $0x678] sm:$0xff] %vm264_vm3, %v3344_v26  ;;  %v3852_v56 = vld [vmem:[#allocation2 + $0x638] sm:$0xff]  ;;  %v4242_v3 = vmax.f32 %v3986_v45, 0.0  ;;  %v3722_v59 = vld [vmem:[#allocation2 + $0x228] sm:$0xff]  ;;  %v6413_v5 = vpack.c.bf16 %v4237_v42, %v4237_v42  ;;  %v4112_v38 = vadd.f32 %v8563_v34, %v3849_v63  ;;  %v3987_v14 = vadd.f32 %v8563_v34, %v3724_v55  ;;  %v8791_v31 = vpop.f32.mrf.mxu0 }
 0x18f   : > { %3471 = vst.msk [vmem:[#allocation2 + $0x268] sm:$0xff] %vm264_vm3, %v3214_v32  ;;  %3599 = vst.msk [vmem:[#allocation2 + $0x668] sm:$0xff] %vm264_vm3, %v3342_v33  ;;  %v4370_v58 = vmax.f32 %v4114_v48, 0.0  ;;  %v3850_v21 = vld [vmem:[#allocation2 + $0x628] sm:$0xff]  ;;  %v6541_v6 = vpack.c.bf16 %v4365_v43, %v4365_v43  ;;  %v3727_v22 = vld [vmem:[#allocation2 + $0x250] sm:$0xff]  ;;  %v4115_v19 = vadd.f32 %v8563_v34, %v3852_v56  ;;  %v4240_v57 = vmax.f32 %v3984_v7, 0.0  ;;  %v8797_v29 = vpop.f32.mrf.mxu1 }
 0x190   : > { %5517 = vst.msk [vmem:[%s7994_s29 + $0x100] sm:$0xf] %vm5452_vm4, %v6412_v53  ;;  %5645 = vst.msk [vmem:[%s7994_s29 + $0x300] sm:$0xf] %vm5452_vm4, %v6540_v54  ;;  %v3855_v39 = vld [vmem:[#allocation2 + $0x650] sm:$0xff]  ;;  %v6418_v36 = vpack.c.bf16 %v4242_v3, %v4242_v3  ;;  %v4368_v49 = vmax.f32 %v4112_v38, 0.0  ;;  %v3985_v0 = vadd.f32 %v8563_v34, %v3722_v59  ;;  %v4113_v13 = vadd.f32 %v8563_v34, %v3850_v21  ;;  %v8795_v27 = vpop.f32.mrf.mxu0 }
 0x191   : > { %5520 = vst.msk [vmem:[%s7994_s29 + $0x10c] sm:$0xf] %vm5452_vm4, %v6415_v1  ;;  %5648 = vst.msk [vmem:[%s7994_s29 + $0x30c] sm:$0xf] %vm5452_vm4, %v6543_v2  ;;  %v6546_v8 = vpack.c.bf16 %v4370_v58, %v4370_v58  ;;  %v4243_v25 = vmax.f32 %v3987_v14, 0.0  ;;  %v4371_v47 = vmax.f32 %v4115_v19, 0.0  ;;  %v3990_v26 = vadd.f32 %v8563_v34, %v3727_v22  ;;  %v8813_v55 = vpop.f32.mrf.mxu1 }
 0x192   : > { %5518 = vst.msk [vmem:[%s7994_s29 + $0x104] sm:$0xf] %vm5452_vm4, %v6413_v5  ;;  %5646 = vst.msk [vmem:[%s7994_s29 + $0x304] sm:$0xf] %vm5452_vm4, %v6541_v6  ;;  %v4118_v11 = vadd.f32 %v8563_v34, %v3855_v39  ;;  %v3725_v61 = vld [vmem:[#allocation2 + $0x240] sm:$0xff]  ;;  %v6416_v50 = vpack.c.bf16 %v4240_v57, %v4240_v57  ;;  %v6544_v9 = vpack.c.bf16 %v4368_v49, %v4368_v49  ;;  %v4241_v10 = vmax.f32 %v3985_v0, 0.0  ;;  %v8811_v43 = vpop.f32.mrf.mxu0 }
 0x193   : > { %5523 = vst.msk [vmem:[%s7994_s29 + $0x118] sm:$0xf] %vm5452_vm4, %v6418_v36  ;;  %5651 = vst.msk [vmem:[%s7994_s29 + $0x318] sm:$0xf] %vm5452_vm4, %v6546_v8  ;;  %v3853_v30 = vld [vmem:[#allocation2 + $0x640] sm:$0xff]  ;;  %v4369_v32 = vmax.f32 %v4113_v13, 0.0  ;;  %v6419_v18 = vpack.c.bf16 %v4243_v25, %v4243_v25  ;;  %v6547_v35 = vpack.c.bf16 %v4371_v47, %v4371_v47  ;;  %v3988_v44 = vadd.f32 %v8563_v34, %v3725_v61  ;;  %v8829_v22 = vpop.f32.mrf.mxu1 }
 0x194   : > { %v3728_v33 = vld [vmem:[#allocation2 + $0x258] sm:$0xff]  ;;  %v4246_v23 = vmax.f32 %v3990_v26, 0.0  ;;  %v4374_v16 = vmax.f32 %v4118_v11, 0.0  ;;  %v3726_v62 = vld [vmem:[#allocation2 + $0x248] sm:$0xff]  ;;  %5521 = vst.msk [vmem:[%s7994_s29 + $0x110] sm:$0xf] %vm5452_vm4, %v6416_v50  ;;  %v6417_v28 = vpack.c.bf16 %v4241_v10, %v4241_v10  ;;  %v4116_v45 = vadd.f32 %v8563_v34, %v3853_v30  ;;  %v8827_v38 = vpop.f32.mrf.mxu0 }
 0x195   : > { %v3856_v60 = vld [vmem:[#allocation2 + $0x658] sm:$0xff]  ;;  %v3854_v40 = vld [vmem:[#allocation2 + $0x648] sm:$0xff]  ;;  %5649 = vst.msk [vmem:[%s7994_s29 + $0x310] sm:$0xf] %vm5452_vm4, %v6544_v9  ;;  %v6545_v41 = vpack.c.bf16 %v4369_v32, %v4369_v32  ;;  %v3731_v48 = vld [vmem:[#allocation2 + $0x270] sm:$0xff]  ;;  %v3991_v54 = vadd.f32 %v8563_v34, %v3728_v33  ;;  %v4244_v56 = vmax.f32 %v3988_v44, 0.0  ;;  %v3989_v2 = vadd.f32 %v8563_v34, %v3726_v62  ;;  %v8833_v61 = vpop.f32.mrf.mxu1 }
 0x196   : > { %v3859_v51 = vld [vmem:[#allocation2 + $0x670] sm:$0xff]  ;;  %5524 = vst.msk [vmem:[%s7994_s29 + $0x11c] sm:$0xf] %vm5452_vm4, %v6419_v18  ;;  %5652 = vst.msk [vmem:[%s7994_s29 + $0x31c] sm:$0xf] %vm5452_vm4, %v6547_v35  ;;  %v6422_v63 = vpack.c.bf16 %v4246_v23, %v4246_v23  ;;  %v6550_v53 = vpack.c.bf16 %v4374_v16, %v4374_v16  ;;  %v4119_v42 = vadd.f32 %v8563_v34, %v3856_v60  ;;  %v4372_v1 = vmax.f32 %v4116_v45, 0.0  ;;  %v8831_v11 = vpop.f32.mrf.mxu0 }
 0x197   : > { %5522 = vst.msk [vmem:[%s7994_s29 + $0x114] sm:$0xf] %vm5452_vm4, %v6417_v28  ;;  %5650 = vst.msk [vmem:[%s7994_s29 + $0x314] sm:$0xf] %vm5452_vm4, %v6545_v41  ;;  %v4117_v3 = vadd.f32 %v8563_v34, %v3854_v40  ;;  %v4247_v58 = vmax.f32 %v3991_v54, 0.0  ;;  %v3994_v21 = vadd.f32 %v8563_v34, %v3731_v48  ;;  %v4122_v5 = vadd.f32 %v8563_v34, %v3859_v51  ;;  %v3729_v6 = vld [vmem:[#allocation2 + $0x260] sm:$0xff]  ;;  %v8849_v44 = vpop.f32.mrf.mxu1 }
 0x198   : > { %5527 = vst.msk [vmem:[%s7994_s29 + $0x128] sm:$0xf] %vm5452_vm4, %v6422_v63  ;;  %5655 = vst.msk [vmem:[%s7994_s29 + $0x328] sm:$0xf] %vm5452_vm4, %v6550_v53  ;;  %v4375_v59 = vmax.f32 %v4119_v42, 0.0  ;;  %v3857_v7 = vld [vmem:[#allocation2 + $0x660] sm:$0xff]  ;;  %v6420_v39 = vpack.c.bf16 %v4244_v56, %v4244_v56  ;;  %v6548_v36 = vpack.c.bf16 %v4372_v1, %v4372_v1  ;;  %v3992_v9 = vadd.f32 %v8563_v34, %v3729_v6  ;;  %v8847_v41 = vpop.f32.mrf.mxu0 }
 0x199   : > { %v4245_v8 = vmax.f32 %v3989_v2, 0.0  ;;  %v4373_v14 = vmax.f32 %v4117_v3, 0.0  ;;  %v3732_v19 = vld [vmem:[#allocation2 + $0x278] sm:$0xff]  ;;  %v6423_v49 = vpack.c.bf16 %v4247_v58, %v4247_v58  ;;  %v4250_v13 = vmax.f32 %v3994_v21, 0.0  ;;  %v3730_v47 = vld [vmem:[#allocation2 + $0x268] sm:$0xff]  ;;  %v603_v32 = vld [vmem:[#allocation2 + $0x290] sm:$0xff]  ;;  %v8865_v6 = vpop.f32.mrf.mxu1 }
 0x19a   : > { %v3860_v57 = vld [vmem:[#allocation2 + $0x678] sm:$0xff]  ;;  %v6551_v0 = vpack.c.bf16 %v4375_v59, %v4375_v59  ;;  %v4378_v25 = vmax.f32 %v4122_v5, 0.0  ;;  %v3858_v26 = vld [vmem:[#allocation2 + $0x668] sm:$0xff]  ;;  %5525 = vst.msk [vmem:[%s7994_s29 + $0x120] sm:$0xf] %vm5452_vm4, %v6420_v39  ;;  %v4120_v10 = vadd.f32 %v8563_v34, %v3857_v7  ;;  %v731_v33 = vld [vmem:[#allocation2 + $0x690] sm:$0xff]  ;;  %v3995_v23 = vadd.f32 %v8563_v34, %v3732_v19  ;;  %v8863_v5 = vpop.f32.mrf.mxu0 }
 0x19b   : > { %5653 = vst.msk [vmem:[%s7994_s29 + $0x320] sm:$0xf] %vm5452_vm4, %v6548_v36  ;;  %v6421_v30 = vpack.c.bf16 %v4245_v8, %v4245_v8  ;;  %v6549_v50 = vpack.c.bf16 %v4373_v14, %v4373_v14  ;;  %v601_v60 = vld [vmem:[#allocation2 + $0x280] sm:$0xff]  ;;  %5528 = vst.msk [vmem:[%s7994_s29 + $0x12c] sm:$0xf] %vm5452_vm4, %v6423_v49  ;;  %v6426_v18 = vpack.c.bf16 %v4250_v13, %v4250_v13  ;;  %v604_v40 = vld [vmem:[#allocation2 + $0x298] sm:$0xff] }
 0x19c   : > { %5656 = vst.msk [vmem:[%s7994_s29 + $0x32c] sm:$0xf] %vm5452_vm4, %v6551_v0  ;;  %v6554_v35 = vpack.c.bf16 %v4378_v25, %v4378_v25  ;;  %v4123_v16 = vadd.f32 %v8563_v34, %v3860_v57  ;;  %v729_v62 = vld [vmem:[#allocation2 + $0x680] sm:$0xff]  ;;  %v732_v28 = vld [vmem:[#allocation2 + $0x698] sm:$0xff]  ;;  %v4248_v45 = vmax.f32 %v3992_v9, 0.0  ;;  %v4376_v48 = vmax.f32 %v4120_v10, 0.0 }
 0x19d   : > { %5526 = vst.msk [vmem:[%s7994_s29 + $0x124] sm:$0xf] %vm5452_vm4, %v6421_v30  ;;  %5654 = vst.msk [vmem:[%s7994_s29 + $0x324] sm:$0xf] %vm5452_vm4, %v6549_v50  ;;  %v3993_v51 = vadd.f32 %v8563_v34, %v3730_v47  ;;  %v4121_v63 = vadd.f32 %v8563_v34, %v3858_v26  ;;  %v602_v53 = vld [vmem:[#allocation2 + $0x288] sm:$0xff]  ;;  %v607_v42 = vld [vmem:[#allocation2 + $0x2b0] sm:$0xff]  ;;  %v3219_v2 = vadd.f32 %v8745_v15, %v603_v32  ;;  %v2469_v47 = vpop.f32.mrf.mxu0  ;;  %v2981_v26 = vpop.f32.mrf.mxu1 }
 0x19e   : > { %v730_v54 = vld [vmem:[#allocation2 + $0x688] sm:$0xff]  ;;  %5531 = vst.msk [vmem:[%s7994_s29 + $0x138] sm:$0xf] %vm5452_vm4, %v6426_v18  ;;  %5659 = vst.msk [vmem:[%s7994_s29 + $0x338] sm:$0xf] %vm5452_vm4, %v6554_v35  ;;  %v4251_v56 = vmax.f32 %v3995_v23, 0.0  ;;  %v3347_v3 = vadd.f32 %v8747_v37, %v731_v33  ;;  %v6424_v34 = vpack.c.bf16 %v4248_v45, %v4248_v45  ;;  %v6552_v7 = vpack.c.bf16 %v4376_v48, %v4376_v48 }
 0x19f   : > { %v4379_v1 = vmax.f32 %v4123_v16, 0.0  ;;  %v735_v58 = vld [vmem:[#allocation2 + $0x6b0] sm:$0xff]  ;;  %v605_v59 = vld [vmem:[#allocation2 + $0x2a0] sm:$0xff]  ;;  %v4249_v39 = vmax.f32 %v3993_v51, 0.0  ;;  %v4377_v36 = vmax.f32 %v4121_v63, 0.0  ;;  %v608_v8 = vld [vmem:[#allocation2 + $0x2b8] sm:$0xff]  ;;  %v3217_v37 = vadd.f32 %v8755_v52, %v601_v60  ;;  %v6832_v16 = vpop.f32.mrf.mxu0 }
 0x1a0   : > { %v733_v21 = vld [vmem:[#allocation2 + $0x6a0] sm:$0xff]  ;;  %v736_v14 = vld [vmem:[#allocation2 + $0x6b8] sm:$0xff]  ;;  %v606_v19 = vld [vmem:[#allocation2 + $0x2a8] sm:$0xff]  ;;  %v6427_v57 = vpack.c.bf16 %v4251_v56, %v4251_v56  ;;  %3476 = vst.msk [vmem:[#allocation2 + $0x290] sm:$0xff] %vm264_vm3, %v3219_v2  ;;  %v3345_v49 = vadd.f32 %v8757_v17, %v729_v62  ;;  %v3220_v9 = vadd.f32 %v8759_v24, %v604_v40  ;;  %v3348_v10 = vadd.f32 %v8761_v4, %v732_v28  ;;  %v6960_v62 = vpop.f32.mrf.mxu1 }
 0x1a1   : > { %v6555_v15 = vpack.c.bf16 %v4379_v1, %v4379_v1  ;;  %3604 = vst.msk [vmem:[#allocation2 + $0x690] sm:$0xff] %vm264_vm3, %v3347_v3  ;;  %v734_v0 = vld [vmem:[#allocation2 + $0x6a8] sm:$0xff]  ;;  %v611_v13 = vld [vmem:[#allocation2 + $0x2d0] sm:$0xff]  ;;  %v6425_v30 = vpack.c.bf16 %v4249_v39, %v4249_v39  ;;  %v6553_v50 = vpack.c.bf16 %v4377_v36, %v4377_v36  ;;  %v609_v52 = vld [vmem:[#allocation2 + $0x2c0] sm:$0xff]  ;;  %v3218_v33 = vadd.f32 %v8775_v20, %v602_v53 }
 0x1a2   : > { %v739_v25 = vld [vmem:[#allocation2 + $0x6d0] sm:$0xff]  ;;  %5529 = vst.msk [vmem:[%s7994_s29 + $0x130] sm:$0xf] %vm5452_vm4, %v6424_v34  ;;  %5657 = vst.msk [vmem:[%s7994_s29 + $0x330] sm:$0xf] %vm5452_vm4, %v6552_v7  ;;  %v737_v32 = vld [vmem:[#allocation2 + $0x6c0] sm:$0xff]  ;;  %v3346_v60 = vadd.f32 %v8777_v12, %v730_v54  ;;  %v3223_v24 = vadd.f32 %v8791_v31, %v607_v42  ;;  %v3351_v4 = vadd.f32 %v8793_v46, %v735_v58  ;;  %v2994_v63 = vpop.f32.mrf.mxu1 }
 0x1a3   : > { %v612_v17 = vld [vmem:[#allocation2 + $0x2d8] sm:$0xff]  ;;  %5532 = vst.msk [vmem:[%s7994_s29 + $0x13c] sm:$0xf] %vm5452_vm4, %v6427_v57  ;;  %5660 = vst.msk [vmem:[%s7994_s29 + $0x33c] sm:$0xf] %vm5452_vm4, %v6555_v15  ;;  %v610_v35 = vld [vmem:[#allocation2 + $0x2c8] sm:$0xff]  ;;  %v3221_v20 = vadd.f32 %v8795_v27, %v605_v59  ;;  %v3349_v12 = vadd.f32 %v8797_v29, %v733_v21  ;;  %v3224_v31 = vadd.f32 %v8811_v43, %v608_v8 }
 0x1a4   : > { %3474 = vst.msk [vmem:[#allocation2 + $0x280] sm:$0xff] %vm264_vm3, %v3217_v37  ;;  %3602 = vst.msk [vmem:[#allocation2 + $0x680] sm:$0xff] %vm264_vm3, %v3345_v49  ;;  %v740_v18 = vld [vmem:[#allocation2 + $0x6d8] sm:$0xff]  ;;  %v738_v23 = vld [vmem:[#allocation2 + $0x6c8] sm:$0xff]  ;;  %v3352_v46 = vadd.f32 %v8813_v55, %v736_v14  ;;  %v3222_v48 = vadd.f32 %v8827_v38, %v606_v19  ;;  %v3350_v27 = vadd.f32 %v8829_v22, %v734_v0  ;;  %v2482_v55 = vpop.f32.mrf.mxu0 }
 0x1a5   : > { %5530 = vst.msk [vmem:[%s7994_s29 + $0x134] sm:$0xf] %vm5452_vm4, %v6425_v30  ;;  %5658 = vst.msk [vmem:[%s7994_s29 + $0x334] sm:$0xf] %vm5452_vm4, %v6553_v50  ;;  %v615_v40 = vld [vmem:[#allocation2 + $0x2f0] sm:$0xff]  ;;  %v613_v45 = vld [vmem:[#allocation2 + $0x2e0] sm:$0xff]  ;;  %v3227_v29 = vadd.f32 %v8831_v11, %v611_v13  ;;  %v3355_v43 = vadd.f32 %v8833_v61, %v739_v25  ;;  %v3225_v38 = vadd.f32 %v8847_v41, %v609_v52  ;;  %v6961_v41 = vpop.f32.mrf.mxu1 }
 0x1a6   : > { %3477 = vst.msk [vmem:[#allocation2 + $0x298] sm:$0xff] %vm264_vm3, %v3220_v9  ;;  %3605 = vst.msk [vmem:[#allocation2 + $0x698] sm:$0xff] %vm264_vm3, %v3348_v10  ;;  %v743_v28 = vld [vmem:[#allocation2 + $0x6f0] sm:$0xff]  ;;  %v741_v51 = vld [vmem:[#allocation2 + $0x6e0] sm:$0xff]  ;;  %v3353_v22 = vadd.f32 %v8849_v44, %v737_v32  ;;  %v3228_v11 = vadd.f32 %v8863_v5, %v612_v17  ;;  %v3356_v61 = vadd.f32 %v8865_v6, %v740_v18  ;;  %v6833_v3 = vpop.f32.mrf.mxu0 }
 0x1a7   : > { %3475 = vst.msk [vmem:[#allocation2 + $0x288] sm:$0xff] %vm264_vm3, %v3218_v33  ;;  %3603 = vst.msk [vmem:[#allocation2 + $0x688] sm:$0xff] %vm264_vm3, %v3346_v60  ;;  %v616_v53 = vld [vmem:[#allocation2 + $0x2f8] sm:$0xff]  ;;  %v3226_v42 = vadd.f32 %v2469_v47, %v610_v35  ;;  %v3354_v56 = vadd.f32 %v2981_v26, %v738_v23  ;;  %v3231_v1 = vadd.f32 %v6832_v16, %v615_v40  ;;  %v614_v58 = vld [vmem:[#allocation2 + $0x2e8] sm:$0xff]  ;;  %v2997_v19 = vpop.f32.mrf.mxu1 }
 0x1a8   : > { %3480 = vst.msk [vmem:[#allocation2 + $0x2b0] sm:$0xff] %vm264_vm3, %v3223_v24  ;;  %3608 = vst.msk [vmem:[#allocation2 + $0x6b0] sm:$0xff] %vm264_vm3, %v3351_v4  ;;  %v744_v54 = vld [vmem:[#allocation2 + $0x6f8] sm:$0xff]  ;;  %v3359_v2 = vadd.f32 %v6960_v62, %v743_v28  ;;  %v742_v44 = vld [vmem:[#allocation2 + $0x6e8] sm:$0xff]  ;;  %v3229_v5 = vadd.f32 %v2482_v55, %v613_v45  ;;  %v3357_v6 = vadd.f32 %v2994_v63, %v741_v51  ;;  %v2485_v14 = vpop.f32.mrf.mxu0 }
 0x1a9   : > { %3478 = vst.msk [vmem:[#allocation2 + $0x2a0] sm:$0xff] %vm264_vm3, %v3221_v20  ;;  %3606 = vst.msk [vmem:[#allocation2 + $0x6a0] sm:$0xff] %vm264_vm3, %v3349_v12  ;;  %v3735_v59 = vld [vmem:[#allocation2 + $0x290] sm:$0xff]  ;;  %v3232_v34 = vadd.f32 %v6833_v3, %v616_v53  ;;  %v3360_v7 = vadd.f32 %v6961_v41, %v744_v54  ;;  %v8924_v39 = vld [vmem:[%s9445_s2] ss:$0 sm:$0xff]  ;;  %v3230_v0 = vadd.f32 %v2485_v14, %v614_v58  ;;  %v6964_v52 = vpop.f32.mrf.mxu1 }
 0x1aa   : > { %3481 = vst.msk [vmem:[#allocation2 + $0x2b8] sm:$0xff] %vm264_vm3, %v3224_v31  ;;  %3609 = vst.msk [vmem:[#allocation2 + $0x6b8] sm:$0xff] %vm264_vm3, %v3352_v46  ;;  %v3863_v21 = vld [vmem:[#allocation2 + $0x690] sm:$0xff]  ;;  %v3998_v36 = vadd.f32 %v8924_v39, %v3735_v59  ;;  %v3358_v13 = vadd.f32 %v2997_v19, %v742_v44  ;;  %v6836_v10 = vpop.f32.mrf.mxu0 }
 0x1ab   : > { %3479 = vst.msk [vmem:[#allocation2 + $0x2a8] sm:$0xff] %vm264_vm3, %v3222_v48  ;;  %3607 = vst.msk [vmem:[#allocation2 + $0x6a8] sm:$0xff] %vm264_vm3, %v3350_v27  ;;  %v4126_v8 = vadd.f32 %v8924_v39, %v3863_v21  ;;  %v619_v57 = vld [vmem:[#allocation2 + $0x310] sm:$0xff]  ;;  %v3733_v37 = vld [vmem:[#allocation2 + $0x280] sm:$0xff]  ;;  %v8944_v31 = vpop.f32.mrf.mxu1 }
 0x1ac   : > { %3484 = vst.msk [vmem:[#allocation2 + $0x2d0] sm:$0xff] %vm264_vm3, %v3227_v29  ;;  %3612 = vst.msk [vmem:[#allocation2 + $0x6d0] sm:$0xff] %vm264_vm3, %v3355_v43  ;;  %v747_v15 = vld [vmem:[#allocation2 + $0x710] sm:$0xff]  ;;  %v3861_v49 = vld [vmem:[#allocation2 + $0x680] sm:$0xff]  ;;  %v4254_v25 = vmax.f32 %v3998_v36, 0.0  ;;  %v3996_v26 = vadd.f32 %v8924_v39, %v3733_v37  ;;  %v3235_v4 = vadd.f32 %v6836_v10, %v619_v57  ;;  %v8942_v12 = vpop.f32.mrf.mxu0 }
 0x1ad   : > { %3482 = vst.msk [vmem:[#allocation2 + $0x2c0] sm:$0xff] %vm264_vm3, %v3225_v38  ;;  %3610 = vst.msk [vmem:[#allocation2 + $0x6c0] sm:$0xff] %vm264_vm3, %v3353_v22  ;;  %v4382_v47 = vmax.f32 %v4126_v8, 0.0  ;;  %v4124_v30 = vadd.f32 %v8924_v39, %v3861_v49  ;;  %v3736_v50 = vld [vmem:[#allocation2 + $0x298] sm:$0xff]  ;;  %v3363_v18 = vadd.f32 %v6964_v52, %v747_v15  ;;  %v8958_v38 = vpop.f32.mrf.mxu1 }
 0x1ae   : > { %3485 = vst.msk [vmem:[#allocation2 + $0x2d8] sm:$0xff] %vm264_vm3, %v3228_v11  ;;  %3613 = vst.msk [vmem:[#allocation2 + $0x6d8] sm:$0xff] %vm264_vm3, %v3356_v61  ;;  %v3864_v9 = vld [vmem:[#allocation2 + $0x698] sm:$0xff]  ;;  %v3999_v32 = vadd.f32 %v8924_v39, %v3736_v50  ;;  %v3734_v33 = vld [vmem:[#allocation2 + $0x288] sm:$0xff]  ;;  %v6430_v35 = vpack.c.bf16 %v4254_v25, %v4254_v25  ;;  %v4252_v16 = vmax.f32 %v3996_v26, 0.0  ;;  %v8956_v54 = vpop.f32.mrf.mxu0 }
 0x1af   : > { %3483 = vst.msk [vmem:[#allocation2 + $0x2c8] sm:$0xff] %vm264_vm3, %v3226_v42  ;;  %3611 = vst.msk [vmem:[#allocation2 + $0x6c8] sm:$0xff] %vm264_vm3, %v3354_v56  ;;  %v4127_v17 = vadd.f32 %v8924_v39, %v3864_v9  ;;  %v3862_v60 = vld [vmem:[#allocation2 + $0x688] sm:$0xff]  ;;  %v3739_v24 = vld [vmem:[#allocation2 + $0x2b0] sm:$0xff]  ;;  %v6558_v23 = vpack.c.bf16 %v4382_v47, %v4382_v47  ;;  %v4380_v62 = vmax.f32 %v4124_v30, 0.0  ;;  %v3997_v28 = vadd.f32 %v8924_v39, %v3734_v33  ;;  %v8968_v59 = vpop.f32.mrf.mxu1 }
 0x1b0   : > { %3488 = vst.msk [vmem:[#allocation2 + $0x2f0] sm:$0xff] %vm264_vm3, %v3231_v1  ;;  %3616 = vst.msk [vmem:[#allocation2 + $0x6f0] sm:$0xff] %vm264_vm3, %v3359_v2  ;;  %v3867_v20 = vld [vmem:[#allocation2 + $0x6b0] sm:$0xff]  ;;  %v4255_v46 = vmax.f32 %v3999_v32, 0.0  ;;  %v4125_v45 = vadd.f32 %v8924_v39, %v3862_v60  ;;  %v3737_v48 = vld [vmem:[#allocation2 + $0x2a0] sm:$0xff]  ;;  %v6428_v29 = vpack.c.bf16 %v4252_v16, %v4252_v16  ;;  %v4002_v55 = vadd.f32 %v8924_v39, %v3739_v24  ;;  %v8966_v44 = vpop.f32.mrf.mxu0 }
 0x1b1   : > { %3486 = vst.msk [vmem:[#allocation2 + $0x2e0] sm:$0xff] %vm264_vm3, %v3229_v5  ;;  %3614 = vst.msk [vmem:[#allocation2 + $0x6e0] sm:$0xff] %vm264_vm3, %v3357_v6  ;;  %v4383_v40 = vmax.f32 %v4127_v17, 0.0  ;;  %v3865_v27 = vld [vmem:[#allocation2 + $0x6a0] sm:$0xff]  ;;  %v6556_v43 = vpack.c.bf16 %v4380_v62, %v4380_v62  ;;  %v4130_v51 = vadd.f32 %v8924_v39, %v3867_v20  ;;  %v3740_v63 = vld [vmem:[#allocation2 + $0x2b8] sm:$0xff]  ;;  %v4253_v61 = vmax.f32 %v3997_v28, 0.0  ;;  %v8978_v37 = vpop.f32.mrf.mxu1 }
 0x1b2   : > { %3489 = vst.msk [vmem:[#allocation2 + $0x2f8] sm:$0xff] %vm264_vm3, %v3232_v34  ;;  %3617 = vst.msk [vmem:[#allocation2 + $0x6f8] sm:$0xff] %vm264_vm3, %v3360_v7  ;;  %v3868_v53 = vld [vmem:[#allocation2 + $0x6b8] sm:$0xff]  ;;  %v6431_v22 = vpack.c.bf16 %v4255_v46, %v4255_v46  ;;  %v4381_v42 = vmax.f32 %v4125_v45, 0.0  ;;  %v4258_v56 = vmax.f32 %v4002_v55, 0.0  ;;  %v4000_v2 = vadd.f32 %v8924_v39, %v3737_v48  ;;  %v3738_v41 = vld [vmem:[#allocation2 + $0x2a8] sm:$0xff]  ;;  %v8976_v15 = vpop.f32.mrf.mxu0 }
 0x1b3   : > { %3487 = vst.msk [vmem:[#allocation2 + $0x2e8] sm:$0xff] %vm264_vm3, %v3230_v0  ;;  %3615 = vst.msk [vmem:[#allocation2 + $0x6e8] sm:$0xff] %vm264_vm3, %v3358_v13  ;;  %v6559_v11 = vpack.c.bf16 %v4383_v40, %v4383_v40  ;;  %v4386_v1 = vmax.f32 %v4130_v51, 0.0  ;;  %v4128_v3 = vadd.f32 %v8924_v39, %v3865_v27  ;;  %v3866_v58 = vld [vmem:[#allocation2 + $0x6a8] sm:$0xff]  ;;  %v6429_v21 = vpack.c.bf16 %v4253_v61, %v4253_v61  ;;  %v3743_v7 = vld [vmem:[#allocation2 + $0x2d0] sm:$0xff]  ;;  %v8994_v33 = vpop.f32.mrf.mxu1 }
 0x1b4   : > { %3492 = vst.msk [vmem:[#allocation2 + $0x310] sm:$0xff] %vm264_vm3, %v3235_v4  ;;  %3620 = vst.msk [vmem:[#allocation2 + $0x710] sm:$0xff] %vm264_vm3, %v3363_v18  ;;  %v6557_v5 = vpack.c.bf16 %v4381_v42, %v4381_v42  ;;  %v4003_v6 = vadd.f32 %v8924_v39, %v3740_v63  ;;  %v4131_v34 = vadd.f32 %v8924_v39, %v3868_v53  ;;  %v3871_v36 = vld [vmem:[#allocation2 + $0x6d0] sm:$0xff]  ;;  %v4256_v19 = vmax.f32 %v4000_v2, 0.0  ;;  %v3741_v47 = vld [vmem:[#allocation2 + $0x2c0] sm:$0xff]  ;;  %v8992_v17 = vpop.f32.mrf.mxu0 }
 0x1b5   : > { %5535 = vst.msk [vmem:[%s7994_s29 + $0x148] sm:$0xf] %vm5452_vm4, %v6430_v35  ;;  %5663 = vst.msk [vmem:[%s7994_s29 + $0x348] sm:$0xf] %vm5452_vm4, %v6558_v23  ;;  %v6434_v8 = vpack.c.bf16 %v4258_v56, %v4258_v56  ;;  %v6562_v14 = vpack.c.bf16 %v4386_v1, %v4386_v1  ;;  %v4384_v57 = vmax.f32 %v4128_v3, 0.0  ;;  %v4001_v13 = vadd.f32 %v8924_v39, %v3738_v41  ;;  %v3869_v26 = vld [vmem:[#allocation2 + $0x6c0] sm:$0xff]  ;;  %v9004_v28 = vpop.f32.mrf.mxu1 }
 0x1b6   : > { %5533 = vst.msk [vmem:[%s7994_s29 + $0x140] sm:$0xf] %vm5452_vm4, %v6428_v29  ;;  %5661 = vst.msk [vmem:[%s7994_s29 + $0x340] sm:$0xf] %vm5452_vm4, %v6556_v43  ;;  %v4259_v49 = vmax.f32 %v4003_v6, 0.0  ;;  %v4387_v0 = vmax.f32 %v4131_v34, 0.0  ;;  %v4129_v25 = vadd.f32 %v8924_v39, %v3866_v58  ;;  %v6432_v30 = vpack.c.bf16 %v4256_v19, %v4256_v19  ;;  %v9002_v40 = vpop.f32.mrf.mxu0 }
 0x1b7   : > { %5536 = vst.msk [vmem:[%s7994_s29 + $0x14c] sm:$0xf] %vm5452_vm4, %v6431_v22  ;;  %5664 = vst.msk [vmem:[%s7994_s29 + $0x34c] sm:$0xf] %vm5452_vm4, %v6559_v11  ;;  %v6560_v50 = vpack.c.bf16 %v4384_v57, %v4384_v57  ;;  %v4006_v9 = vadd.f32 %v8924_v39, %v3743_v7  ;;  %v4134_v10 = vadd.f32 %v8924_v39, %v3871_v36  ;;  %v3744_v52 = vld [vmem:[#allocation2 + $0x2d8] sm:$0xff]  ;;  %v4257_v4 = vmax.f32 %v4001_v13, 0.0  ;;  %v9014_v61 = vpop.f32.mrf.mxu1 }
 0x1b8   : > { %5534 = vst.msk [vmem:[%s7994_s29 + $0x144] sm:$0xf] %vm5452_vm4, %v6429_v21  ;;  %5662 = vst.msk [vmem:[%s7994_s29 + $0x344] sm:$0xf] %vm5452_vm4, %v6557_v5  ;;  %v3872_v32 = vld [vmem:[#allocation2 + $0x6d8] sm:$0xff]  ;;  %v6435_v60 = vpack.c.bf16 %v4259_v49, %v4259_v49  ;;  %v6563_v24 = vpack.c.bf16 %v4387_v0, %v4387_v0  ;;  %v4385_v18 = vmax.f32 %v4129_v25, 0.0  ;;  %v4004_v16 = vadd.f32 %v8924_v39, %v3741_v47  ;;  %v9012_v11 = vpop.f32.mrf.mxu0 }
 0x1b9   : > { %5539 = vst.msk [vmem:[%s7994_s29 + $0x158] sm:$0xf] %vm5452_vm4, %v6434_v8  ;;  %5667 = vst.msk [vmem:[%s7994_s29 + $0x358] sm:$0xf] %vm5452_vm4, %v6562_v14  ;;  %v4262_v35 = vmax.f32 %v4006_v9, 0.0  ;;  %v4390_v23 = vmax.f32 %v4134_v10, 0.0  ;;  %v4132_v62 = vadd.f32 %v8924_v39, %v3869_v26  ;;  %v6433_v45 = vpack.c.bf16 %v4257_v4, %v4257_v4  ;;  %v9030_v49 = vpop.f32.mrf.mxu1 }
 0x1ba   : > { %5537 = vst.msk [vmem:[%s7994_s29 + $0x150] sm:$0xf] %vm5452_vm4, %v6432_v30  ;;  %5665 = vst.msk [vmem:[%s7994_s29 + $0x350] sm:$0xf] %vm5452_vm4, %v6560_v50  ;;  %v3742_v20 = vld [vmem:[#allocation2 + $0x2c8] sm:$0xff]  ;;  %v6561_v48 = vpack.c.bf16 %v4385_v18, %v4385_v18  ;;  %v4007_v27 = vadd.f32 %v8924_v39, %v3744_v52  ;;  %v4135_v29 = vadd.f32 %v8924_v39, %v3872_v32  ;;  %v3747_v43 = vld [vmem:[#allocation2 + $0x2f0] sm:$0xff]  ;;  %v9028_v36 = vpop.f32.mrf.mxu0 }
 0x1bb   : > { %v3870_v46 = vld [vmem:[#allocation2 + $0x6c8] sm:$0xff]  ;;  %5540 = vst.msk [vmem:[%s7994_s29 + $0x15c] sm:$0xf] %vm5452_vm4, %v6435_v60  ;;  %5668 = vst.msk [vmem:[%s7994_s29 + $0x35c] sm:$0xf] %vm5452_vm4, %v6563_v24  ;;  %v3875_v55 = vld [vmem:[#allocation2 + $0x6f0] sm:$0xff]  ;;  %v6438_v51 = vpack.c.bf16 %v4262_v35, %v4262_v35  ;;  %v6566_v63 = vpack.c.bf16 %v4390_v23, %v4390_v23  ;;  %v4005_v1 = vadd.f32 %v8924_v39, %v3742_v20  ;;  %v9046_v4 = vpop.f32.mrf.mxu1 }
 0x1bc   : > { %v4260_v53 = vmax.f32 %v4004_v16, 0.0  ;;  %v4388_v22 = vmax.f32 %v4132_v62, 0.0  ;;  %5538 = vst.msk [vmem:[%s7994_s29 + $0x154] sm:$0xf] %vm5452_vm4, %v6433_v45  ;;  %5666 = vst.msk [vmem:[%s7994_s29 + $0x354] sm:$0xf] %vm5452_vm4, %v6561_v48  ;;  %v4133_v2 = vadd.f32 %v8924_v39, %v3870_v46  ;;  %v4010_v5 = vadd.f32 %v8924_v39, %v3747_v43  ;;  %v9038_v50 = vpop.f32.mrf.mxu0 }
 0x1bd   : > { %v4263_v42 = vmax.f32 %v4007_v27, 0.0  ;;  %v4391_v56 = vmax.f32 %v4135_v29, 0.0  ;;  %v3745_v3 = vld [vmem:[#allocation2 + $0x2e0] sm:$0xff]  ;;  %5543 = vst.msk [vmem:[%s7994_s29 + $0x168] sm:$0xf] %vm5452_vm4, %v6438_v51  ;;  %v4138_v6 = vadd.f32 %v8924_v39, %v3875_v55  ;;  %v3748_v34 = vld [vmem:[#allocation2 + $0x2f8] sm:$0xff] }
 0x1be   : > { %v3873_v41 = vld [vmem:[#allocation2 + $0x6e0] sm:$0xff]  ;;  %5671 = vst.msk [vmem:[%s7994_s29 + $0x368] sm:$0xf] %vm5452_vm4, %v6566_v63  ;;  %v6436_v58 = vpack.c.bf16 %v4260_v53, %v4260_v53  ;;  %v6564_v21 = vpack.c.bf16 %v4388_v22, %v4388_v22  ;;  %v3876_v7 = vld [vmem:[#allocation2 + $0x6f8] sm:$0xff]  ;;  %v4261_v19 = vmax.f32 %v4005_v1, 0.0  ;;  %v4389_v57 = vmax.f32 %v4133_v2, 0.0  ;;  %v9048_v45 = vpop.f32.mrf.mxu0  ;;  %v9056_v53 = vpop.f32.mrf.mxu1 }
 0x1bf   : > { %v6439_v8 = vpack.c.bf16 %v4263_v42, %v4263_v42  ;;  %v6567_v14 = vpack.c.bf16 %v4391_v56, %v4391_v56  ;;  %v4266_v0 = vmax.f32 %v4010_v5, 0.0  ;;  %v4394_v13 = vmax.f32 %v4138_v6, 0.0  ;;  %v3746_v26 = vld [vmem:[#allocation2 + $0x2e8] sm:$0xff]  ;;  %v3751_v60 = vld [vmem:[#allocation2 + $0x310] sm:$0xff]  ;;  %v617_v62 = vld [vmem:[#allocation2 + $0x300] sm:$0xff] }
 0x1c0   : > { %5541 = vst.msk [vmem:[%s7994_s29 + $0x160] sm:$0xf] %vm5452_vm4, %v6436_v58  ;;  %5669 = vst.msk [vmem:[%s7994_s29 + $0x360] sm:$0xf] %vm5452_vm4, %v6564_v21  ;;  %v4008_v25 = vadd.f32 %v8924_v39, %v3745_v3  ;;  %v4136_v47 = vadd.f32 %v8924_v39, %v3873_v41  ;;  %v3874_v30 = vld [vmem:[#allocation2 + $0x6e8] sm:$0xff]  ;;  %v6437_v9 = vpack.c.bf16 %v4261_v19, %v4261_v19  ;;  %v3879_v24 = vld [vmem:[#allocation2 + $0x710] sm:$0xff]  ;;  %v9064_v58 = vpop.f32.mrf.mxu0  ;;  %v9066_v19 = vpop.f32.mrf.mxu1 }
 0x1c1   : > { %5544 = vst.msk [vmem:[%s7994_s29 + $0x16c] sm:$0xf] %vm5452_vm4, %v6439_v8  ;;  %5672 = vst.msk [vmem:[%s7994_s29 + $0x36c] sm:$0xf] %vm5452_vm4, %v6567_v14  ;;  %v6565_v10 = vpack.c.bf16 %v4389_v57, %v4389_v57  ;;  %v4011_v52 = vadd.f32 %v8924_v39, %v3748_v34  ;;  %v4139_v32 = vadd.f32 %v8924_v39, %v3876_v7  ;;  %v745_v20 = vld [vmem:[#allocation2 + $0x700] sm:$0xff]  ;;  %v620_v46 = vld [vmem:[#allocation2 + $0x318] sm:$0xff] }
 0x1c2   : > { %v6442_v18 = vpack.c.bf16 %v4266_v0, %v4266_v0  ;;  %v6570_v35 = vpack.c.bf16 %v4394_v13, %v4394_v13  ;;  %v4264_v23 = vmax.f32 %v4008_v25, 0.0  ;;  %v4392_v16 = vmax.f32 %v4136_v47, 0.0  ;;  %5542 = vst.msk [vmem:[%s7994_s29 + $0x164] sm:$0xf] %vm5452_vm4, %v6437_v9  ;;  %v748_v55 = vld [vmem:[#allocation2 + $0x718] sm:$0xff]  ;;  %v618_v51 = vld [vmem:[#allocation2 + $0x308] sm:$0xff]  ;;  %v9074_v9 = vpop.f32.mrf.mxu0 }
 0x1c3   : > { %5670 = vst.msk [vmem:[%s7994_s29 + $0x364] sm:$0xf] %vm5452_vm4, %v6565_v10  ;;  %v4267_v48 = vmax.f32 %v4011_v52, 0.0  ;;  %v4395_v27 = vmax.f32 %v4139_v32, 0.0  ;;  %v4009_v29 = vadd.f32 %v8924_v39, %v3746_v26  ;;  %v4137_v43 = vadd.f32 %v8924_v39, %v3874_v30  ;;  %v746_v63 = vld [vmem:[#allocation2 + $0x708] sm:$0xff]  ;;  %v623_v2 = vld [vmem:[#allocation2 + $0x330] sm:$0xff] }
 0x1c4   : > { %5547 = vst.msk [vmem:[%s7994_s29 + $0x178] sm:$0xf] %vm5452_vm4, %v6442_v18  ;;  %5675 = vst.msk [vmem:[%s7994_s29 + $0x378] sm:$0xf] %vm5452_vm4, %v6570_v35  ;;  %v6440_v22 = vpack.c.bf16 %v4264_v23, %v4264_v23  ;;  %v6568_v42 = vpack.c.bf16 %v4392_v16, %v4392_v16  ;;  %v4014_v56 = vadd.f32 %v8924_v39, %v3751_v60  ;;  %v751_v3 = vld [vmem:[#allocation2 + $0x730] sm:$0xff]  ;;  %v621_v41 = vld [vmem:[#allocation2 + $0x320] sm:$0xff]  ;;  %v6976_v18 = vpop.f32.mrf.mxu1 }
 0x1c5   : > { %v4142_v1 = vadd.f32 %v8924_v39, %v3879_v24  ;;  %v6443_v21 = vpack.c.bf16 %v4267_v48, %v4267_v48  ;;  %v6571_v5 = vpack.c.bf16 %v4395_v27, %v4395_v27  ;;  %v4265_v6 = vmax.f32 %v4009_v29, 0.0  ;;  %v749_v7 = vld [vmem:[#allocation2 + $0x720] sm:$0xff]  ;;  %v624_v8 = vld [vmem:[#allocation2 + $0x338] sm:$0xff]  ;;  %v622_v47 = vld [vmem:[#allocation2 + $0x328] sm:$0xff] }
 0x1c6   : > { %v4393_v34 = vmax.f32 %v4137_v43, 0.0  ;;  %v752_v14 = vld [vmem:[#allocation2 + $0x738] sm:$0xff]  ;;  %5545 = vst.msk [vmem:[%s7994_s29 + $0x170] sm:$0xf] %vm5452_vm4, %v6440_v22  ;;  %5673 = vst.msk [vmem:[%s7994_s29 + $0x370] sm:$0xf] %vm5452_vm4, %v6568_v42  ;;  %v3233_v13 = vadd.f32 %v8942_v12, %v617_v62  ;;  %v3361_v25 = vadd.f32 %v8944_v31, %v745_v20  ;;  %v3236_v32 = vadd.f32 %v8956_v54, %v620_v46  ;;  %v2546_v46 = vpop.f32.mrf.mxu0 }
 0x1c7   : > { %v4270_v57 = vmax.f32 %v4014_v56, 0.0  ;;  %v4398_v0 = vmax.f32 %v4142_v1, 0.0  ;;  %v750_v26 = vld [vmem:[#allocation2 + $0x728] sm:$0xff]  ;;  %v627_v30 = vld [vmem:[#allocation2 + $0x350] sm:$0xff]  ;;  %5548 = vst.msk [vmem:[%s7994_s29 + $0x17c] sm:$0xf] %vm5452_vm4, %v6443_v21  ;;  %v6441_v10 = vpack.c.bf16 %v4265_v6, %v4265_v6  ;;  %v3364_v60 = vadd.f32 %v8958_v38, %v748_v55 }
 0x1c8   : > { %5676 = vst.msk [vmem:[%s7994_s29 + $0x37c] sm:$0xf] %vm5452_vm4, %v6571_v5  ;;  %v6569_v52 = vpack.c.bf16 %v4393_v34, %v4393_v34  ;;  %v755_v12 = vld [vmem:[#allocation2 + $0x750] sm:$0xff]  ;;  %v625_v24 = vld [vmem:[#allocation2 + $0x340] sm:$0xff]  ;;  %v3234_v16 = vadd.f32 %v8966_v44, %v618_v51  ;;  %v3362_v62 = vadd.f32 %v8968_v59, %v746_v63  ;;  %v628_v20 = vld [vmem:[#allocation2 + $0x358] sm:$0xff]  ;;  %v3239_v48 = vadd.f32 %v8976_v15, %v623_v2  ;;  %v3058_v51 = vpop.f32.mrf.mxu1  ;;  %v6849_v56 = vpop.f32.mrf.mxu0 }
 0x1c9   : > { %v753_v31 = vld [vmem:[#allocation2 + $0x740] sm:$0xff]  ;;  %v6446_v35 = vpack.c.bf16 %v4270_v57, %v4270_v57  ;;  %v6574_v23 = vpack.c.bf16 %v4398_v0, %v4398_v0  ;;  %3490 = vst.msk [vmem:[#allocation2 + $0x300] sm:$0xff] %vm264_vm3, %v3233_v13  ;;  %3618 = vst.msk [vmem:[#allocation2 + $0x700] sm:$0xff] %vm264_vm3, %v3361_v25  ;;  %v756_v54 = vld [vmem:[#allocation2 + $0x758] sm:$0xff]  ;;  %v3367_v44 = vadd.f32 %v8978_v37, %v751_v3 }
 0x1ca   : > { %v626_v38 = vld [vmem:[#allocation2 + $0x348] sm:$0xff]  ;;  %5546 = vst.msk [vmem:[%s7994_s29 + $0x174] sm:$0xf] %vm5452_vm4, %v6441_v10  ;;  %5674 = vst.msk [vmem:[%s7994_s29 + $0x374] sm:$0xf] %vm5452_vm4, %v6569_v52  ;;  %v3237_v59 = vadd.f32 %v8992_v17, %v621_v41  ;;  %v3365_v27 = vadd.f32 %v8994_v33, %v749_v7  ;;  %v631_v43 = vld [vmem:[#allocation2 + $0x370] sm:$0xff]  ;;  %v3240_v15 = vadd.f32 %v9002_v40, %v624_v8  ;;  %v6977_v2 = vpop.f32.mrf.mxu1  ;;  %v2549_v21 = vpop.f32.mrf.mxu0 }
 0x1cb   : > { %3493 = vst.msk [vmem:[#allocation2 + $0x318] sm:$0xff] %vm264_vm3, %v3236_v32  ;;  %3621 = vst.msk [vmem:[#allocation2 + $0x718] sm:$0xff] %vm264_vm3, %v3364_v60  ;;  %v754_v29 = vld [vmem:[#allocation2 + $0x748] sm:$0xff]  ;;  %v759_v55 = vld [vmem:[#allocation2 + $0x770] sm:$0xff]  ;;  %v3368_v37 = vadd.f32 %v9004_v28, %v752_v14  ;;  %v3238_v17 = vadd.f32 %v9012_v11, %v622_v47  ;;  %v3366_v33 = vadd.f32 %v9014_v61, %v750_v26 }
 0x1cc   : > { %5551 = vst.msk [vmem:[%s7994_s29 + $0x188] sm:$0xf] %vm5452_vm4, %v6446_v35  ;;  %5679 = vst.msk [vmem:[%s7994_s29 + $0x388] sm:$0xf] %vm5452_vm4, %v6574_v23  ;;  %v629_v63 = vld [vmem:[#allocation2 + $0x360] sm:$0xff]  ;;  %v632_v42 = vld [vmem:[#allocation2 + $0x378] sm:$0xff]  ;;  %v3243_v40 = vadd.f32 %v9028_v36, %v627_v30  ;;  %v3371_v28 = vadd.f32 %v9030_v49, %v755_v12  ;;  %v3241_v11 = vadd.f32 %v9038_v50, %v625_v24  ;;  %v6852_v0 = vpop.f32.mrf.mxu0 }
 0x1cd   : > { %3491 = vst.msk [vmem:[#allocation2 + $0x308] sm:$0xff] %vm264_vm3, %v3234_v16  ;;  %3619 = vst.msk [vmem:[#allocation2 + $0x708] sm:$0xff] %vm264_vm3, %v3362_v62  ;;  %v757_v22 = vld [vmem:[#allocation2 + $0x760] sm:$0xff]  ;;  %v3369_v61 = vadd.f32 %v9046_v4, %v753_v31  ;;  %v760_v1 = vld [vmem:[#allocation2 + $0x778] sm:$0xff]  ;;  %v3244_v36 = vadd.f32 %v9048_v45, %v628_v20  ;;  %v3372_v49 = vadd.f32 %v9056_v53, %v756_v54  ;;  %v3061_v53 = vpop.f32.mrf.mxu1 }
 0x1ce   : > { %3496 = vst.msk [vmem:[#allocation2 + $0x330] sm:$0xff] %vm264_vm3, %v3239_v48  ;;  %3624 = vst.msk [vmem:[#allocation2 + $0x730] sm:$0xff] %vm264_vm3, %v3367_v44  ;;  %v630_v3 = vld [vmem:[#allocation2 + $0x368] sm:$0xff]  ;;  %v3242_v50 = vadd.f32 %v9064_v58, %v626_v38  ;;  %v3370_v4 = vadd.f32 %v9066_v19, %v754_v29  ;;  %v635_v5 = vld [vmem:[#allocation2 + $0x390] sm:$0xff]  ;;  %v3247_v6 = vadd.f32 %v9074_v9, %v631_v43  ;;  %v2562_v12 = vpop.f32.mrf.mxu0 }
 0x1cf   : > { %3494 = vst.msk [vmem:[#allocation2 + $0x320] sm:$0xff] %vm264_vm3, %v3237_v59  ;;  %3622 = vst.msk [vmem:[#allocation2 + $0x720] sm:$0xff] %vm264_vm3, %v3365_v27  ;;  %v758_v41 = vld [vmem:[#allocation2 + $0x768] sm:$0xff]  ;;  %v3375_v34 = vadd.f32 %v6976_v18, %v759_v55  ;;  %v3245_v45 = vadd.f32 %v2546_v46, %v629_v63  ;;  %v3373_v7 = vadd.f32 %v3058_v51, %v757_v22  ;;  %v763_v8 = vld [vmem:[#allocation2 + $0x790] sm:$0xff]  ;;  %v6980_v30 = vpop.f32.mrf.mxu1 }
 0x1d0   : > { %3497 = vst.msk [vmem:[#allocation2 + $0x338] sm:$0xff] %vm264_vm3, %v3240_v15  ;;  %3625 = vst.msk [vmem:[#allocation2 + $0x738] sm:$0xff] %vm264_vm3, %v3368_v37  ;;  %v3248_v58 = vadd.f32 %v6849_v56, %v632_v42  ;;  %v3376_v14 = vadd.f32 %v6977_v2, %v760_v1  ;;  %v3246_v19 = vadd.f32 %v2549_v21, %v630_v3  ;;  %v633_v13 = vld [vmem:[#allocation2 + $0x380] sm:$0xff]  ;;  %v9149_v44 = vpop.f32.mrf.mxu0 }
 0x1d1   : > { %3495 = vst.msk [vmem:[#allocation2 + $0x328] sm:$0xff] %vm264_vm3, %v3238_v17  ;;  %3623 = vst.msk [vmem:[#allocation2 + $0x728] sm:$0xff] %vm264_vm3, %v3366_v33  ;;  %v3374_v57 = vadd.f32 %v3061_v53, %v758_v41  ;;  %v3749_v25 = vld [vmem:[#allocation2 + $0x300] sm:$0xff]  ;;  %v3251_v26 = vadd.f32 %v6852_v0, %v635_v5  ;;  %v3379_v60 = vadd.f32 %v6980_v30, %v763_v8  ;;  %v9144_v16 = vpop.f32.mrf.mxu1 }
 0x1d2   : > { %3500 = vst.msk [vmem:[#allocation2 + $0x350] sm:$0xff] %vm264_vm3, %v3243_v40  ;;  %3628 = vst.msk [vmem:[#allocation2 + $0x750] sm:$0xff] %vm264_vm3, %v3371_v28  ;;  %v3877_v47 = vld [vmem:[#allocation2 + $0x700] sm:$0xff]  ;;  %v4012_v9 = vadd.f32 %v8924_v39, %v3749_v25  ;;  %v3752_v52 = vld [vmem:[#allocation2 + $0x318] sm:$0xff]  ;;  %v3249_v23 = vadd.f32 %v2562_v12, %v633_v13  ;;  %v9156_v56 = vpop.f32.mrf.mxu0 }
 0x1d3   : > { %3498 = vst.msk [vmem:[#allocation2 + $0x340] sm:$0xff] %vm264_vm3, %v3241_v11  ;;  %3626 = vst.msk [vmem:[#allocation2 + $0x740] sm:$0xff] %vm264_vm3, %v3369_v61  ;;  %v4140_v10 = vadd.f32 %v8924_v39, %v3877_v47  ;;  %v3880_v32 = vld [vmem:[#allocation2 + $0x718] sm:$0xff]  ;;  %v4015_v24 = vadd.f32 %v8924_v39, %v3752_v52  ;;  %v9154_v15 = vpop.f32.mrf.mxu1 }
 0x1d4   : > { %3501 = vst.msk [vmem:[#allocation2 + $0x358] sm:$0xff] %vm264_vm3, %v3244_v36  ;;  %3629 = vst.msk [vmem:[#allocation2 + $0x758] sm:$0xff] %vm264_vm3, %v3372_v49  ;;  %v4143_v31 = vadd.f32 %v8924_v39, %v3880_v32  ;;  %v3750_v18 = vld [vmem:[#allocation2 + $0x308] sm:$0xff]  ;;  %v4268_v62 = vmax.f32 %v4012_v9, 0.0  ;;  %v9166_v5 = vpop.f32.mrf.mxu0 }
 0x1d5   : > { %3499 = vst.msk [vmem:[#allocation2 + $0x348] sm:$0xff] %vm264_vm3, %v3242_v50  ;;  %3627 = vst.msk [vmem:[#allocation2 + $0x748] sm:$0xff] %vm264_vm3, %v3370_v4  ;;  %v3878_v35 = vld [vmem:[#allocation2 + $0x708] sm:$0xff]  ;;  %v4396_v20 = vmax.f32 %v4140_v10, 0.0  ;;  %v4013_v54 = vadd.f32 %v8924_v39, %v3750_v18  ;;  %v3755_v46 = vld [vmem:[#allocation2 + $0x330] sm:$0xff]  ;;  %v4271_v59 = vmax.f32 %v4015_v24, 0.0  ;;  %v9158_v3 = vpop.f32.mrf.mxu1 }
 0x1d6   : > { %3504 = vst.msk [vmem:[#allocation2 + $0x370] sm:$0xff] %vm264_vm3, %v3247_v6  ;;  %3632 = vst.msk [vmem:[#allocation2 + $0x770] sm:$0xff] %vm264_vm3, %v3375_v34  ;;  %v4141_v38 = vadd.f32 %v8924_v39, %v3878_v35  ;;  %v3883_v48 = vld [vmem:[#allocation2 + $0x730] sm:$0xff]  ;;  %v4399_v27 = vmax.f32 %v4143_v31, 0.0  ;;  %v4018_v29 = vadd.f32 %v8924_v39, %v3755_v46  ;;  %v3753_v55 = vld [vmem:[#allocation2 + $0x320] sm:$0xff]  ;;  %v6444_v37 = vpack.c.bf16 %v4268_v62, %v4268_v62 }
 0x1d7   : > { %3502 = vst.msk [vmem:[#allocation2 + $0x360] sm:$0xff] %vm264_vm3, %v3245_v45  ;;  %3630 = vst.msk [vmem:[#allocation2 + $0x760] sm:$0xff] %vm264_vm3, %v3373_v7  ;;  %v4146_v43 = vadd.f32 %v8924_v39, %v3883_v48  ;;  %v3881_v51 = vld [vmem:[#allocation2 + $0x720] sm:$0xff]  ;;  %v6572_v17 = vpack.c.bf16 %v4396_v20, %v4396_v20  ;;  %v4269_v33 = vmax.f32 %v4013_v54, 0.0  ;;  %v3756_v22 = vld [vmem:[#allocation2 + $0x338] sm:$0xff]  ;;  %v6447_v40 = vpack.c.bf16 %v4271_v59, %v4271_v59  ;;  %v9174_v53 = vpop.f32.mrf.mxu1 }
 0x1d8   : > { %3505 = vst.msk [vmem:[#allocation2 + $0x378] sm:$0xff] %vm264_vm3, %v3248_v58  ;;  %3633 = vst.msk [vmem:[#allocation2 + $0x778] sm:$0xff] %vm264_vm3, %v3376_v14  ;;  %v4397_v63 = vmax.f32 %v4141_v38, 0.0  ;;  %v3884_v42 = vld [vmem:[#allocation2 + $0x738] sm:$0xff]  ;;  %v6575_v28 = vpack.c.bf16 %v4399_v27, %v4399_v27  ;;  %v4274_v11 = vmax.f32 %v4018_v29, 0.0  ;;  %v3754_v1 = vld [vmem:[#allocation2 + $0x328] sm:$0xff]  ;;  %v4016_v49 = vadd.f32 %v8924_v39, %v3753_v55 }
 0x1d9   : > { %3503 = vst.msk [vmem:[#allocation2 + $0x368] sm:$0xff] %vm264_vm3, %v3246_v19  ;;  %3631 = vst.msk [vmem:[#allocation2 + $0x768] sm:$0xff] %vm264_vm3, %v3374_v57  ;;  %v4402_v61 = vmax.f32 %v4146_v43, 0.0  ;;  %v3882_v2 = vld [vmem:[#allocation2 + $0x728] sm:$0xff]  ;;  %v6445_v41 = vpack.c.bf16 %v4269_v33, %v4269_v33  ;;  %v4144_v50 = vadd.f32 %v8924_v39, %v3881_v51  ;;  %v3759_v4 = vld [vmem:[#allocation2 + $0x350] sm:$0xff]  ;;  %v4019_v45 = vadd.f32 %v8924_v39, %v3756_v22  ;;  %v9182_v57 = vpop.f32.mrf.mxu0  ;;  %v9190_v9 = vpop.f32.mrf.mxu1 }
 0x1da   : > { %3508 = vst.msk [vmem:[#allocation2 + $0x390] sm:$0xff] %vm264_vm3, %v3251_v26  ;;  %3636 = vst.msk [vmem:[#allocation2 + $0x790] sm:$0xff] %vm264_vm3, %v3379_v60  ;;  %v6573_v36 = vpack.c.bf16 %v4397_v63, %v4397_v63  ;;  %v3887_v21 = vld [vmem:[#allocation2 + $0x750] sm:$0xff]  ;;  %v6450_v6 = vpack.c.bf16 %v4274_v11, %v4274_v11  ;;  %v4147_v7 = vadd.f32 %v8924_v39, %v3884_v42  ;;  %v4272_v8 = vmax.f32 %v4016_v49, 0.0  ;;  %v3757_v26 = vld [vmem:[#allocation2 + $0x340] sm:$0xff] }
 0x1db   : > { %3506 = vst.msk [vmem:[#allocation2 + $0x380] sm:$0xff] %vm264_vm3, %v3249_v23  ;;  %v6578_v34 = vpack.c.bf16 %v4402_v61, %v4402_v61  ;;  %v4400_v58 = vmax.f32 %v4144_v50, 0.0  ;;  %v4017_v14 = vadd.f32 %v8924_v39, %v3754_v1  ;;  %v4145_v19 = vadd.f32 %v8924_v39, %v3882_v2  ;;  %v3885_v30 = vld [vmem:[#allocation2 + $0x740] sm:$0xff]  ;;  %v3760_v12 = vld [vmem:[#allocation2 + $0x358] sm:$0xff]  ;;  %v9192_v31 = vpop.f32.mrf.mxu0  ;;  %v9194_v38 = vpop.f32.mrf.mxu1 }
 0x1dc   : > { %5549 = vst.msk [vmem:[%s7994_s29 + $0x180] sm:$0xf] %vm5452_vm4, %v6444_v37  ;;  %5677 = vst.msk [vmem:[%s7994_s29 + $0x380] sm:$0xf] %vm5452_vm4, %v6572_v17  ;;  %v4275_v0 = vmax.f32 %v4019_v45, 0.0  ;;  %v4403_v13 = vmax.f32 %v4147_v7, 0.0  ;;  %v4022_v25 = vadd.f32 %v8924_v39, %v3759_v4  ;;  %v4150_v47 = vadd.f32 %v8924_v39, %v3887_v21 }
 0x1dd   : > { %5552 = vst.msk [vmem:[%s7994_s29 + $0x18c] sm:$0xf] %vm5452_vm4, %v6447_v40  ;;  %5680 = vst.msk [vmem:[%s7994_s29 + $0x38c] sm:$0xf] %vm5452_vm4, %v6575_v28  ;;  %v6448_v10 = vpack.c.bf16 %v4272_v8, %v4272_v8  ;;  %v6576_v52 = vpack.c.bf16 %v4400_v58, %v4400_v58  ;;  %v4273_v32 = vmax.f32 %v4017_v14, 0.0  ;;  %v4401_v60 = vmax.f32 %v4145_v19, 0.0  ;;  %v9202_v55 = vpop.f32.mrf.mxu0  ;;  %v9210_v63 = vpop.f32.mrf.mxu1 }
 0x1de   : > { %5550 = vst.msk [vmem:[%s7994_s29 + $0x184] sm:$0xf] %vm5452_vm4, %v6445_v41  ;;  %5678 = vst.msk [vmem:[%s7994_s29 + $0x384] sm:$0xf] %vm5452_vm4, %v6573_v36  ;;  %v3888_v24 = vld [vmem:[#allocation2 + $0x758] sm:$0xff]  ;;  %v6451_v18 = vpack.c.bf16 %v4275_v0, %v4275_v0  ;;  %v6579_v35 = vpack.c.bf16 %v4403_v13, %v4403_v13  ;;  %v4278_v23 = vmax.f32 %v4022_v25, 0.0  ;;  %v4020_v59 = vadd.f32 %v8924_v39, %v3757_v26 }
 0x1df   : > { %5555 = vst.msk [vmem:[%s7994_s29 + $0x198] sm:$0xf] %vm5452_vm4, %v6450_v6  ;;  %5683 = vst.msk [vmem:[%s7994_s29 + $0x398] sm:$0xf] %vm5452_vm4, %v6578_v34  ;;  %v4406_v62 = vmax.f32 %v4150_v47, 0.0  ;;  %v3758_v20 = vld [vmem:[#allocation2 + $0x348] sm:$0xff]  ;;  %v6449_v46 = vpack.c.bf16 %v4273_v32, %v4273_v32  ;;  %v6577_v48 = vpack.c.bf16 %v4401_v60, %v4401_v60  ;;  %v4148_v27 = vadd.f32 %v8924_v39, %v3885_v30  ;;  %v9218_v11 = vpop.f32.mrf.mxu0  ;;  %v9226_v50 = vpop.f32.mrf.mxu1 }
 0x1e0   : > { %v3886_v54 = vld [vmem:[#allocation2 + $0x748] sm:$0xff]  ;;  %5553 = vst.msk [vmem:[%s7994_s29 + $0x190] sm:$0xf] %vm5452_vm4, %v6448_v10  ;;  %5681 = vst.msk [vmem:[%s7994_s29 + $0x390] sm:$0xf] %vm5452_vm4, %v6576_v52  ;;  %v3763_v29 = vld [vmem:[#allocation2 + $0x370] sm:$0xff]  ;;  %v6454_v51 = vpack.c.bf16 %v4278_v23, %v4278_v23  ;;  %v4023_v17 = vadd.f32 %v8924_v39, %v3760_v12  ;;  %v4151_v33 = vadd.f32 %v8924_v39, %v3888_v24 }
 0x1e1   : > { %v3891_v43 = vld [vmem:[#allocation2 + $0x770] sm:$0xff]  ;;  %5556 = vst.msk [vmem:[%s7994_s29 + $0x19c] sm:$0xf] %vm5452_vm4, %v6451_v18  ;;  %5684 = vst.msk [vmem:[%s7994_s29 + $0x39c] sm:$0xf] %vm5452_vm4, %v6579_v35  ;;  %v6582_v37 = vpack.c.bf16 %v4406_v62, %v4406_v62  ;;  %v4276_v22 = vmax.f32 %v4020_v59, 0.0  ;;  %v4021_v40 = vadd.f32 %v8924_v39, %v3758_v20  ;;  %v4149_v28 = vadd.f32 %v8924_v39, %v3886_v54  ;;  %v9228_v8 = vpop.f32.mrf.mxu0  ;;  %v9230_v47 = vpop.f32.mrf.mxu1 }
 0x1e2   : > { %5554 = vst.msk [vmem:[%s7994_s29 + $0x194] sm:$0xf] %vm5452_vm4, %v6449_v46  ;;  %5682 = vst.msk [vmem:[%s7994_s29 + $0x394] sm:$0xf] %vm5452_vm4, %v6577_v48  ;;  %v4404_v42 = vmax.f32 %v4148_v27, 0.0  ;;  %v4279_v61 = vmax.f32 %v4023_v17, 0.0  ;;  %v4026_v2 = vadd.f32 %v8924_v39, %v3763_v29  ;;  %v4154_v41 = vadd.f32 %v8924_v39, %v3891_v43 }
 0x1e3   : > { %5559 = vst.msk [vmem:[%s7994_s29 + $0x1a8] sm:$0xf] %vm5452_vm4, %v6454_v51  ;;  %5687 = vst.msk [vmem:[%s7994_s29 + $0x3a8] sm:$0xf] %vm5452_vm4, %v6582_v37  ;;  %v4407_v1 = vmax.f32 %v4151_v33, 0.0  ;;  %v3761_v36 = vld [vmem:[#allocation2 + $0x360] sm:$0xff]  ;;  %v6452_v4 = vpack.c.bf16 %v4276_v22, %v4276_v22  ;;  %v9238_v12 = vpop.f32.mrf.mxu0  ;;  %v9246_v62 = vpop.f32.mrf.mxu1 }
 0x1e4   : > { %v3889_v49 = vld [vmem:[#allocation2 + $0x760] sm:$0xff]  ;;  %v6580_v21 = vpack.c.bf16 %v4404_v42, %v4404_v42  ;;  %v4277_v6 = vmax.f32 %v4021_v40, 0.0  ;;  %v4405_v34 = vmax.f32 %v4149_v28, 0.0  ;;  %v3764_v45 = vld [vmem:[#allocation2 + $0x378] sm:$0xff]  ;;  %v6455_v58 = vpack.c.bf16 %v4279_v61, %v4279_v61  ;;  %v3762_v13 = vld [vmem:[#allocation2 + $0x368] sm:$0xff] }
 0x1e5   : > { %v3892_v7 = vld [vmem:[#allocation2 + $0x778] sm:$0xff]  ;;  %v6583_v14 = vpack.c.bf16 %v4407_v1, %v4407_v1  ;;  %v4282_v19 = vmax.f32 %v4026_v2, 0.0  ;;  %v4410_v0 = vmax.f32 %v4154_v41, 0.0  ;;  %v3890_v25 = vld [vmem:[#allocation2 + $0x768] sm:$0xff]  ;;  %5557 = vst.msk [vmem:[%s7994_s29 + $0x1a0] sm:$0xf] %vm5452_vm4, %v6452_v4  ;;  %v4024_v10 = vadd.f32 %v8924_v39, %v3761_v36  ;;  %v9254_v43 = vpop.f32.mrf.mxu0  ;;  %v9262_v28 = vpop.f32.mrf.mxu1 }
 0x1e6   : > { %5685 = vst.msk [vmem:[%s7994_s29 + $0x3a0] sm:$0xf] %vm5452_vm4, %v6580_v21  ;;  %v6453_v26 = vpack.c.bf16 %v4277_v6, %v4277_v6  ;;  %v6581_v30 = vpack.c.bf16 %v4405_v34, %v4405_v34  ;;  %v4152_v52 = vadd.f32 %v8924_v39, %v3889_v49  ;;  %v3767_v32 = vld [vmem:[#allocation2 + $0x390] sm:$0xff]  ;;  %5560 = vst.msk [vmem:[%s7994_s29 + $0x1ac] sm:$0xf] %vm5452_vm4, %v6455_v58  ;;  %v761_v59 = vld [vmem:[#allocation2 + $0x780] sm:$0xff] }
 0x1e7   : > { %v3895_v60 = vld [vmem:[#allocation2 + $0x790] sm:$0xff]  ;;  %5688 = vst.msk [vmem:[%s7994_s29 + $0x3ac] sm:$0xf] %vm5452_vm4, %v6583_v14  ;;  %v6458_v24 = vpack.c.bf16 %v4282_v19, %v4282_v19  ;;  %v6586_v18 = vpack.c.bf16 %v4410_v0, %v4410_v0  ;;  %v4027_v35 = vadd.f32 %v8924_v39, %v3764_v45  ;;  %v4155_v23 = vadd.f32 %v8924_v39, %v3892_v7  ;;  %v636_v27 = vld [vmem:[#allocation2 + $0x398] sm:$0xff]  ;;  %v3765_v22 = vld [vmem:[#allocation2 + $0x380] sm:$0xff]  ;;  %v9264_v21 = vpop.f32.mrf.mxu0  ;;  %v9266_v0 = vpop.f32.mrf.mxu1 }
 0x1e8   : > { %5558 = vst.msk [vmem:[%s7994_s29 + $0x1a4] sm:$0xf] %vm5452_vm4, %v6453_v26  ;;  %5686 = vst.msk [vmem:[%s7994_s29 + $0x3a4] sm:$0xf] %vm5452_vm4, %v6581_v30  ;;  %v4280_v20 = vmax.f32 %v4024_v10, 0.0  ;;  %v4408_v54 = vmax.f32 %v4152_v52, 0.0  ;;  %v4025_v46 = vadd.f32 %v8924_v39, %v3762_v13  ;;  %v4153_v48 = vadd.f32 %v8924_v39, %v3890_v25 }
 0x1e9   : > { %v764_v29 = vld [vmem:[#allocation2 + $0x798] sm:$0xff]  ;;  %5563 = vst.msk [vmem:[%s7994_s29 + $0x1b8] sm:$0xf] %vm5452_vm4, %v6458_v24  ;;  %5691 = vst.msk [vmem:[%s7994_s29 + $0x3b8] sm:$0xf] %vm5452_vm4, %v6586_v18  ;;  %v4283_v51 = vmax.f32 %v4027_v35, 0.0  ;;  %v4030_v17 = vadd.f32 %v8924_v39, %v3767_v32  ;;  %v4158_v33 = vadd.f32 %v8924_v39, %v3895_v60  ;;  %v4028_v26 = vadd.f32 %v8924_v39, %v3765_v22  ;;  %v9274_v60 = vpop.f32.mrf.mxu0 }
 0x1ea   : > { %v4411_v37 = vmax.f32 %v4155_v23, 0.0  ;;  %v634_v42 = vld [vmem:[#allocation2 + $0x388] sm:$0xff]  ;;  %v6456_v61 = vpack.c.bf16 %v4280_v20, %v4280_v20  ;;  %v6584_v1 = vpack.c.bf16 %v4408_v54, %v4408_v54  ;;  %v4281_v2 = vmax.f32 %v4025_v46, 0.0  ;;  %v639_v36 = vld [vmem:[#allocation2 + $0x3b0] sm:$0xff]  ;;  %v637_v4 = vld [vmem:[#allocation2 + $0x3a0] sm:$0xff]  ;;  %v3122_v54 = vpop.f32.mrf.mxu1 }
 0x1eb   : > { %v762_v40 = vld [vmem:[#allocation2 + $0x788] sm:$0xff]  ;;  %v4409_v41 = vmax.f32 %v4153_v48, 0.0  ;;  %v767_v49 = vld [vmem:[#allocation2 + $0x7b0] sm:$0xff]  ;;  %v6459_v6 = vpack.c.bf16 %v4283_v51, %v4283_v51  ;;  %v4286_v45 = vmax.f32 %v4030_v17, 0.0  ;;  %v4414_v7 = vmax.f32 %v4158_v33, 0.0  ;;  %v765_v58 = vld [vmem:[#allocation2 + $0x7a0] sm:$0xff]  ;;  %v6865_v51 = vpop.f32.mrf.mxu0 }
 0x1ec   : > { %v6587_v34 = vpack.c.bf16 %v4411_v37, %v4411_v37  ;;  %v640_v14 = vld [vmem:[#allocation2 + $0x3b8] sm:$0xff]  ;;  %5561 = vst.msk [vmem:[%s7994_s29 + $0x1b0] sm:$0xf] %vm5452_vm4, %v6456_v61  ;;  %5689 = vst.msk [vmem:[%s7994_s29 + $0x3b0] sm:$0xf] %vm5452_vm4, %v6584_v1  ;;  %v6457_v13 = vpack.c.bf16 %v4281_v2, %v4281_v2  ;;  %v3377_v30 = vadd.f32 %v9144_v16, %v761_v59  ;;  %v638_v10 = vld [vmem:[#allocation2 + $0x3a8] sm:$0xff] }
 0x1ed   : > { %v768_v19 = vld [vmem:[#allocation2 + $0x7b8] sm:$0xff]  ;;  %v6585_v25 = vpack.c.bf16 %v4409_v41, %v4409_v41  ;;  %v766_v52 = vld [vmem:[#allocation2 + $0x7a8] sm:$0xff]  ;;  %v643_v32 = vld [vmem:[#allocation2 + $0x3d0] sm:$0xff]  ;;  %5564 = vst.msk [vmem:[%s7994_s29 + $0x1bc] sm:$0xf] %vm5452_vm4, %v6459_v6  ;;  %v6462_v24 = vpack.c.bf16 %v4286_v45, %v4286_v45  ;;  %v6590_v18 = vpack.c.bf16 %v4414_v7, %v4414_v7  ;;  %v3252_v35 = vadd.f32 %v9149_v44, %v636_v27 }
 0x1ee   : > { %5692 = vst.msk [vmem:[%s7994_s29 + $0x3bc] sm:$0xf] %vm5452_vm4, %v6587_v34  ;;  %v3380_v23 = vadd.f32 %v9154_v15, %v764_v29  ;;  %v771_v39 = vld [vmem:[#allocation2 + $0x7d0] sm:$0xff]  ;;  %v641_v16 = vld [vmem:[#allocation2 + $0x3c0] sm:$0xff]  ;;  %5562 = vst.msk [vmem:[%s7994_s29 + $0x1b4] sm:$0xf] %vm5452_vm4, %v6457_v13  ;;  %v3250_v48 = vadd.f32 %v9156_v56, %v634_v42  ;;  %v3378_v59 = vadd.f32 %v9158_v3, %v762_v40  ;;  %v6993_v42 = vpop.f32.mrf.mxu1 }
 0x1ef   : > { %v769_v20 = vld [vmem:[#allocation2 + $0x7c0] sm:$0xff]  ;;  %5690 = vst.msk [vmem:[%s7994_s29 + $0x3b4] sm:$0xf] %vm5452_vm4, %v6585_v25  ;;  %v4284_v46 = vmax.f32 %v4028_v26, 0.0  ;;  %v3255_v44 = vadd.f32 %v9166_v5, %v639_v36  ;;  %v644_v15 = vld [vmem:[#allocation2 + $0x3d8] sm:$0xff]  ;;  %v642_v29 = vld [vmem:[#allocation2 + $0x3c8] sm:$0xff]  ;;  %v3383_v37 = vadd.f32 %v9174_v53, %v767_v49  ;;  %v3253_v56 = vadd.f32 %v9182_v57, %v637_v4  ;;  %v2613_v49 = vpop.f32.mrf.mxu0 }
 0x1f0   : > { %3634 = vst.msk [vmem:[#allocation2 + $0x780] sm:$0xff] %vm264_vm3, %v3377_v30  ;;  %v772_v27 = vld [vmem:[#allocation2 + $0x7d8] sm:$0xff]  ;;  %3509 = vst.msk [vmem:[#allocation2 + $0x398] sm:$0xff] %vm264_vm3, %v3252_v35  ;;  %v3381_v3 = vadd.f32 %v9190_v9, %v765_v58  ;;  %v3256_v5 = vadd.f32 %v9192_v31, %v640_v14  ;;  %v770_v17 = vld [vmem:[#allocation2 + $0x7c8] sm:$0xff]  ;;  %v3384_v61 = vadd.f32 %v9194_v38, %v768_v19  ;;  %v3125_v6 = vpop.f32.mrf.mxu1 }
 0x1f1   : > { %5567 = vst.msk [vmem:[%s7994_s29 + $0x1c8] sm:$0xf] %vm5452_vm4, %v6462_v24  ;;  %5695 = vst.msk [vmem:[%s7994_s29 + $0x3c8] sm:$0xf] %vm5452_vm4, %v6590_v18  ;;  %v647_v33 = vld [vmem:[#allocation2 + $0x3f0] sm:$0xff]  ;;  %v6460_v40 = vpack.c.bf16 %v4284_v46, %v4284_v46  ;;  %v3254_v53 = vadd.f32 %v9202_v55, %v638_v10  ;;  %v3382_v57 = vadd.f32 %v9210_v63, %v766_v52  ;;  %v645_v9 = vld [vmem:[#allocation2 + $0x3e0] sm:$0xff] }
 0x1f2   : > { %3637 = vst.msk [vmem:[#allocation2 + $0x798] sm:$0xff] %vm264_vm3, %v3380_v23  ;;  %v775_v22 = vld [vmem:[#allocation2 + $0x7f0] sm:$0xff]  ;;  %3507 = vst.msk [vmem:[#allocation2 + $0x388] sm:$0xff] %vm264_vm3, %v3250_v48  ;;  %v773_v31 = vld [vmem:[#allocation2 + $0x7e0] sm:$0xff]  ;;  %v3259_v2 = vadd.f32 %v9218_v11, %v643_v32  ;;  %v3387_v38 = vadd.f32 %v9226_v50, %v771_v39  ;;  %v3257_v55 = vadd.f32 %v9228_v8, %v641_v16 }
 0x1f3   : > { %3635 = vst.msk [vmem:[#allocation2 + $0x788] sm:$0xff] %vm264_vm3, %v3378_v59  ;;  %3512 = vst.msk [vmem:[#allocation2 + $0x3b0] sm:$0xff] %vm264_vm3, %v3255_v44  ;;  %v648_v1 = vld [vmem:[#allocation2 + $0x3f8] sm:$0xff]  ;;  %v3385_v63 = vadd.f32 %v9230_v47, %v769_v20  ;;  %v646_v36 = vld [vmem:[#allocation2 + $0x3e8] sm:$0xff]  ;;  %v3260_v11 = vadd.f32 %v9238_v12, %v644_v15  ;;  %v3388_v50 = vadd.f32 %v9246_v62, %v772_v27 }
 0x1f4   : > { %3640 = vst.msk [vmem:[#allocation2 + $0x7b0] sm:$0xff] %vm264_vm3, %v3383_v37  ;;  %3510 = vst.msk [vmem:[#allocation2 + $0x3a0] sm:$0xff] %vm264_vm3, %v3253_v56  ;;  %v776_v41 = vld [vmem:[#allocation2 + $0x7f8] sm:$0xff]  ;;  %v774_v4 = vld [vmem:[#allocation2 + $0x7e8] sm:$0xff]  ;;  %v3258_v8 = vadd.f32 %v9254_v43, %v642_v29  ;;  %v3386_v47 = vadd.f32 %v9262_v28, %v770_v17  ;;  %v3263_v34 = vadd.f32 %v9264_v21, %v647_v33 }
 0x1f5   : > { %3638 = vst.msk [vmem:[#allocation2 + $0x7a0] sm:$0xff] %vm264_vm3, %v3381_v3  ;;  %3513 = vst.msk [vmem:[#allocation2 + $0x3b8] sm:$0xff] %vm264_vm3, %v3256_v5  ;;  %v3391_v45 = vadd.f32 %v9266_v0, %v775_v22  ;;  %v3261_v12 = vadd.f32 %v9274_v60, %v645_v9  ;;  %v3389_v7 = vadd.f32 %v3122_v54, %v773_v31  ;;  %v9341_v21 = vld [vmem:[%s9445_s2] ss:$0 sm:$0xff] }
 0x1f6   : > { %5565 = vst.msk [vmem:[%s7994_s29 + $0x1c0] sm:$0xf] %vm5452_vm4, %v6460_v40  ;;  %v3264_v62 = vadd.f32 %v6865_v51, %v648_v1  ;;  %v3392_v43 = vadd.f32 %v6993_v42, %v776_v41  ;;  %v3262_v28 = vadd.f32 %v2613_v49, %v646_v36  ;;  %v3390_v58 = vadd.f32 %v3125_v6, %v774_v4 }
 0x1f7   : > { %3641 = vst.msk [vmem:[#allocation2 + $0x7b8] sm:$0xff] %vm264_vm3, %v3384_v61  ;;  %3511 = vst.msk [vmem:[#allocation2 + $0x3a8] sm:$0xff] %vm264_vm3, %v3254_v53  ;;  %v3893_v14 = vld [vmem:[#allocation2 + $0x780] sm:$0xff]  ;;  %v3768_v0 = vld [vmem:[#allocation2 + $0x398] sm:$0xff] }
 0x1f8   : > { %3639 = vst.msk [vmem:[#allocation2 + $0x7a8] sm:$0xff] %vm264_vm3, %v3382_v57  ;;  %3516 = vst.msk [vmem:[#allocation2 + $0x3d0] sm:$0xff] %vm264_vm3, %v3259_v2  ;;  %v4156_v19 = vadd.f32 %v9341_v21, %v3893_v14  ;;  %v4031_v25 = vadd.f32 %v9341_v21, %v3768_v0 }
 0x1f9   : > { %3644 = vst.msk [vmem:[#allocation2 + $0x7d0] sm:$0xff] %vm264_vm3, %v3387_v38  ;;  %3514 = vst.msk [vmem:[#allocation2 + $0x3c0] sm:$0xff] %vm264_vm3, %v3257_v55  ;;  %v3896_v13 = vld [vmem:[#allocation2 + $0x798] sm:$0xff]  ;;  %v3766_v30 = vld [vmem:[#allocation2 + $0x388] sm:$0xff] }
 0x1fa   : > { %3642 = vst.msk [vmem:[#allocation2 + $0x7c0] sm:$0xff] %vm264_vm3, %v3385_v63  ;;  %3517 = vst.msk [vmem:[#allocation2 + $0x3d8] sm:$0xff] %vm264_vm3, %v3260_v11  ;;  %v4159_v26 = vadd.f32 %v9341_v21, %v3896_v13  ;;  %v3894_v10 = vld [vmem:[#allocation2 + $0x788] sm:$0xff]  ;;  %v3771_v52 = vld [vmem:[#allocation2 + $0x3b0] sm:$0xff]  ;;  %v4412_v32 = vmax.f32 %v4156_v19, 0.0  ;;  %v4029_v60 = vadd.f32 %v9341_v21, %v3766_v30  ;;  %v4287_v39 = vmax.f32 %v4031_v25, 0.0 }
 0x1fb   : > { %3645 = vst.msk [vmem:[#allocation2 + $0x7d8] sm:$0xff] %vm264_vm3, %v3388_v50  ;;  %3515 = vst.msk [vmem:[#allocation2 + $0x3c8] sm:$0xff] %vm264_vm3, %v3258_v8  ;;  %v4157_v24 = vadd.f32 %v9341_v21, %v3894_v10  ;;  %v4034_v18 = vadd.f32 %v9341_v21, %v3771_v52  ;;  %v3899_v35 = vld [vmem:[#allocation2 + $0x7b0] sm:$0xff]  ;;  %v3769_v23 = vld [vmem:[#allocation2 + $0x3a0] sm:$0xff] }
 0x1fc   : > { %3643 = vst.msk [vmem:[#allocation2 + $0x7c8] sm:$0xff] %vm264_vm3, %v3386_v47  ;;  %3520 = vst.msk [vmem:[#allocation2 + $0x3f0] sm:$0xff] %vm264_vm3, %v3263_v34  ;;  %v4415_v16 = vmax.f32 %v4159_v26, 0.0  ;;  %v4162_v20 = vadd.f32 %v9341_v21, %v3899_v35  ;;  %v4032_v54 = vadd.f32 %v9341_v21, %v3769_v23  ;;  %v3897_v46 = vld [vmem:[#allocation2 + $0x7a0] sm:$0xff]  ;;  %v6588_v48 = vpack.c.bf16 %v4412_v32, %v4412_v32  ;;  %v3772_v27 = vld [vmem:[#allocation2 + $0x3b8] sm:$0xff] }
 0x1fd   : > { %3648 = vst.msk [vmem:[#allocation2 + $0x7f0] sm:$0xff] %vm264_vm3, %v3391_v45  ;;  %3518 = vst.msk [vmem:[#allocation2 + $0x3e0] sm:$0xff] %vm264_vm3, %v3261_v12  ;;  %v4285_v59 = vmax.f32 %v4029_v60, 0.0  ;;  %v4413_v44 = vmax.f32 %v4157_v24, 0.0  ;;  %v4290_v15 = vmax.f32 %v4034_v18, 0.0  ;;  %v6463_v51 = vpack.c.bf16 %v4287_v39, %v4287_v39 }
 0x1fe   : > { %3646 = vst.msk [vmem:[#allocation2 + $0x7e0] sm:$0xff] %vm264_vm3, %v3389_v7  ;;  %3521 = vst.msk [vmem:[#allocation2 + $0x3f8] sm:$0xff] %vm264_vm3, %v3264_v62  ;;  %v3900_v29 = vld [vmem:[#allocation2 + $0x7b8] sm:$0xff]  ;;  %v6591_v37 = vpack.c.bf16 %v4415_v16, %v4415_v16  ;;  %v4418_v56 = vmax.f32 %v4162_v20, 0.0  ;;  %v4288_v3 = vmax.f32 %v4032_v54, 0.0  ;;  %v3770_v5 = vld [vmem:[#allocation2 + $0x3a8] sm:$0xff]  ;;  %v4160_v61 = vadd.f32 %v9341_v21, %v3897_v46 }
 0x1ff   : > { %3649 = vst.msk [vmem:[#allocation2 + $0x7f8] sm:$0xff] %vm264_vm3, %v3392_v43  ;;  %3519 = vst.msk [vmem:[#allocation2 + $0x3e8] sm:$0xff] %vm264_vm3, %v3262_v28  ;;  %v3898_v17 = vld [vmem:[#allocation2 + $0x7a8] sm:$0xff]  ;;  %v3775_v33 = vld [vmem:[#allocation2 + $0x3d0] sm:$0xff]  ;;  %v6461_v22 = vpack.c.bf16 %v4285_v59, %v4285_v59  ;;  %v6589_v42 = vpack.c.bf16 %v4413_v44, %v4413_v44  ;;  %v6466_v40 = vpack.c.bf16 %v4290_v15, %v4290_v15 }
 0x200   : > { %3647 = vst.msk [vmem:[#allocation2 + $0x7e8] sm:$0xff] %vm264_vm3, %v3390_v58  ;;  %v3903_v53 = vld [vmem:[#allocation2 + $0x7d0] sm:$0xff]  ;;  %v3773_v57 = vld [vmem:[#allocation2 + $0x3c0] sm:$0xff]  ;;  %v6594_v9 = vpack.c.bf16 %v4418_v56, %v4418_v56  ;;  %v6464_v31 = vpack.c.bf16 %v4288_v3, %v4288_v3  ;;  %v4035_v1 = vadd.f32 %v9341_v21, %v3772_v27  ;;  %v4163_v2 = vadd.f32 %v9341_v21, %v3900_v29 }
 0x201   : > { %5693 = vst.msk [vmem:[%s7994_s29 + $0x3c0] sm:$0xf] %vm5452_vm4, %v6588_v48  ;;  %5568 = vst.msk [vmem:[%s7994_s29 + $0x1cc] sm:$0xf] %vm5452_vm4, %v6463_v51  ;;  %v4416_v38 = vmax.f32 %v4160_v61, 0.0  ;;  %v4033_v55 = vadd.f32 %v9341_v21, %v3770_v5  ;;  %v4161_v63 = vadd.f32 %v9341_v21, %v3898_v17  ;;  %v4038_v41 = vadd.f32 %v9341_v21, %v3775_v33  ;;  %v3901_v11 = vld [vmem:[#allocation2 + $0x7c0] sm:$0xff] }
 0x202   : > { %5696 = vst.msk [vmem:[%s7994_s29 + $0x3cc] sm:$0xf] %vm5452_vm4, %v6591_v37  ;;  %5566 = vst.msk [vmem:[%s7994_s29 + $0x1c4] sm:$0xf] %vm5452_vm4, %v6461_v22  ;;  %v4291_v36 = vmax.f32 %v4035_v1, 0.0  ;;  %v4419_v49 = vmax.f32 %v4163_v2, 0.0  ;;  %v4166_v4 = vadd.f32 %v9341_v21, %v3903_v53  ;;  %v4036_v6 = vadd.f32 %v9341_v21, %v3773_v57 }
 0x203   : > { %5694 = vst.msk [vmem:[%s7994_s29 + $0x3c4] sm:$0xf] %vm5452_vm4, %v6589_v42  ;;  %5571 = vst.msk [vmem:[%s7994_s29 + $0x1d8] sm:$0xf] %vm5452_vm4, %v6466_v40  ;;  %v6592_v50 = vpack.c.bf16 %v4416_v38, %v4416_v38  ;;  %v4289_v8 = vmax.f32 %v4033_v55, 0.0  ;;  %v4417_v47 = vmax.f32 %v4161_v63, 0.0  ;;  %v4164_v26 = vadd.f32 %v9341_v21, %v3901_v11 }
 0x204   : > { %5699 = vst.msk [vmem:[%s7994_s29 + $0x3d8] sm:$0xf] %vm5452_vm4, %v6594_v9  ;;  %5569 = vst.msk [vmem:[%s7994_s29 + $0x1d0] sm:$0xf] %vm5452_vm4, %v6464_v31  ;;  %v4294_v34 = vmax.f32 %v4038_v41, 0.0  ;;  %v3776_v45 = vld [vmem:[#allocation2 + $0x3d8] sm:$0xff]  ;;  %v6467_v7 = vpack.c.bf16 %v4291_v36, %v4291_v36  ;;  %v6595_v62 = vpack.c.bf16 %v4419_v49, %v4419_v49 }
 0x205   : > { %v3904_v12 = vld [vmem:[#allocation2 + $0x7d8] sm:$0xff]  ;;  %v4422_v43 = vmax.f32 %v4166_v4, 0.0  ;;  %v4292_v28 = vmax.f32 %v4036_v6, 0.0  ;;  %v3774_v58 = vld [vmem:[#allocation2 + $0x3c8] sm:$0xff]  ;;  %v3779_v19 = vld [vmem:[#allocation2 + $0x3f0] sm:$0xff]  ;;  %v6465_v0 = vpack.c.bf16 %v4289_v8, %v4289_v8  ;;  %v6593_v13 = vpack.c.bf16 %v4417_v47, %v4417_v47 }
 0x206   : > { %v3902_v14 = vld [vmem:[#allocation2 + $0x7c8] sm:$0xff]  ;;  %5697 = vst.msk [vmem:[%s7994_s29 + $0x3d0] sm:$0xf] %vm5452_vm4, %v6592_v50  ;;  %v6470_v25 = vpack.c.bf16 %v4294_v34, %v4294_v34  ;;  %v3907_v30 = vld [vmem:[#allocation2 + $0x7f0] sm:$0xff]  ;;  %v3777_v10 = vld [vmem:[#allocation2 + $0x3e0] sm:$0xff]  ;;  %v4039_v60 = vadd.f32 %v9341_v21, %v3776_v45  ;;  %v4167_v24 = vadd.f32 %v9341_v21, %v3904_v12  ;;  %v4420_v18 = vmax.f32 %v4164_v26, 0.0 }
 0x207   : > { %5572 = vst.msk [vmem:[%s7994_s29 + $0x1dc] sm:$0xf] %vm5452_vm4, %v6467_v7  ;;  %5700 = vst.msk [vmem:[%s7994_s29 + $0x3dc] sm:$0xf] %vm5452_vm4, %v6595_v62  ;;  %v6598_v52 = vpack.c.bf16 %v4422_v43, %v4422_v43  ;;  %v6468_v32 = vpack.c.bf16 %v4292_v28, %v4292_v28  ;;  %v4037_v35 = vadd.f32 %v9341_v21, %v3774_v58  ;;  %v3905_v48 = vld [vmem:[#allocation2 + $0x7e0] sm:$0xff]  ;;  %v3780_v29 = vld [vmem:[#allocation2 + $0x3f8] sm:$0xff] }
 0x208   : > { %5570 = vst.msk [vmem:[%s7994_s29 + $0x1d4] sm:$0xf] %vm5452_vm4, %v6465_v0  ;;  %5698 = vst.msk [vmem:[%s7994_s29 + $0x3d4] sm:$0xf] %vm5452_vm4, %v6593_v13  ;;  %v4165_v23 = vadd.f32 %v9341_v21, %v3902_v14  ;;  %v4042_v39 = vadd.f32 %v9341_v21, %v3779_v19  ;;  %v4295_v16 = vmax.f32 %v4039_v60, 0.0  ;;  %v4423_v20 = vmax.f32 %v4167_v24, 0.0 }
 0x209   : > { %5575 = vst.msk [vmem:[%s7994_s29 + $0x1e8] sm:$0xf] %vm5452_vm4, %v6470_v25  ;;  %5703 = vst.msk [vmem:[%s7994_s29 + $0x3e8] sm:$0xf] %vm5452_vm4, %v6598_v52  ;;  %v4170_v54 = vadd.f32 %v9341_v21, %v3907_v30  ;;  %v4040_v46 = vadd.f32 %v9341_v21, %v3777_v10  ;;  %v6596_v59 = vpack.c.bf16 %v4420_v18, %v4420_v18  ;;  %v4293_v44 = vmax.f32 %v4037_v35, 0.0  ;;  %v3908_v51 = vld [vmem:[#allocation2 + $0x7f8] sm:$0xff] }
 0x20a   : > { %5573 = vst.msk [vmem:[%s7994_s29 + $0x1e0] sm:$0xf] %vm5452_vm4, %v6468_v32  ;;  %v4421_v15 = vmax.f32 %v4165_v23, 0.0  ;;  %v4298_v27 = vmax.f32 %v4042_v39, 0.0  ;;  %v6471_v37 = vpack.c.bf16 %v4295_v16, %v4295_v16  ;;  %v6599_v56 = vpack.c.bf16 %v4423_v20, %v4423_v20  ;;  %v3778_v17 = vld [vmem:[#allocation2 + $0x3e8] sm:$0xff] }
 0x20b   : > { %v4426_v3 = vmax.f32 %v4170_v54, 0.0  ;;  %v4296_v5 = vmax.f32 %v4040_v46, 0.0  ;;  %v3906_v33 = vld [vmem:[#allocation2 + $0x7e8] sm:$0xff]  ;;  %5701 = vst.msk [vmem:[%s7994_s29 + $0x3e0] sm:$0xf] %vm5452_vm4, %v6596_v59  ;;  %v6469_v22 = vpack.c.bf16 %v4293_v44, %v4293_v44  ;;  %v4168_v61 = vadd.f32 %v9341_v21, %v3905_v48 }
 0x20c   : > { %v6597_v42 = vpack.c.bf16 %v4421_v15, %v4421_v15  ;;  %v6474_v40 = vpack.c.bf16 %v4298_v27, %v4298_v27  ;;  %5576 = vst.msk [vmem:[%s7994_s29 + $0x1ec] sm:$0xf] %vm5452_vm4, %v6471_v37  ;;  %5704 = vst.msk [vmem:[%s7994_s29 + $0x3ec] sm:$0xf] %vm5452_vm4, %v6599_v56  ;;  %v4043_v9 = vadd.f32 %v9341_v21, %v3780_v29 }
 0x20d   : > { %v6602_v53 = vpack.c.bf16 %v4426_v3, %v4426_v3  ;;  %v6472_v57 = vpack.c.bf16 %v4296_v5, %v4296_v5  ;;  %v4171_v31 = vadd.f32 %v9341_v21, %v3908_v51  ;;  %5574 = vst.msk [vmem:[%s7994_s29 + $0x1e4] sm:$0xf] %vm5452_vm4, %v6469_v22  ;;  %v4424_v1 = vmax.f32 %v4168_v61, 0.0 }
 0x20e   : > { %5702 = vst.msk [vmem:[%s7994_s29 + $0x3e4] sm:$0xf] %vm5452_vm4, %v6597_v42  ;;  %5579 = vst.msk [vmem:[%s7994_s29 + $0x1f8] sm:$0xf] %vm5452_vm4, %v6474_v40  ;;  %v4041_v2 = vadd.f32 %v9341_v21, %v3778_v17  ;;  %v4169_v38 = vadd.f32 %v9341_v21, %v3906_v33  ;;  %v4299_v55 = vmax.f32 %v4043_v9, 0.0 }
 0x20f   : > { %5707 = vst.msk [vmem:[%s7994_s29 + $0x3f8] sm:$0xf] %vm5452_vm4, %v6602_v53  ;;  %5577 = vst.msk [vmem:[%s7994_s29 + $0x1f0] sm:$0xf] %vm5452_vm4, %v6472_v57  ;;  %v4427_v63 = vmax.f32 %v4171_v31, 0.0  ;;  %v6600_v41 = vpack.c.bf16 %v4424_v1, %v4424_v1 }
 0x210   : > { %v4297_v36 = vmax.f32 %v4041_v2, 0.0  ;;  %v4425_v49 = vmax.f32 %v4169_v38, 0.0  ;;  %v6475_v4 = vpack.c.bf16 %v4299_v55, %v4299_v55 }
 0x211   : > { %v6603_v6 = vpack.c.bf16 %v4427_v63, %v4427_v63  ;;  %5705 = vst.msk [vmem:[%s7994_s29 + $0x3f0] sm:$0xf] %vm5452_vm4, %v6600_v41 }
 0x212   : > { %v6473_v11 = vpack.c.bf16 %v4297_v36, %v4297_v36  ;;  %v6601_v50 = vpack.c.bf16 %v4425_v49, %v4425_v49  ;;  %5580 = vst.msk [vmem:[%s7994_s29 + $0x1fc] sm:$0xf] %vm5452_vm4, %v6475_v4 }
 0x213   : > { %5708 = vst.msk [vmem:[%s7994_s29 + $0x3fc] sm:$0xf] %vm5452_vm4, %v6603_v6 }
 0x214   : > { %5578 = vst.msk [vmem:[%s7994_s29 + $0x1f4] sm:$0xf] %vm5452_vm4, %v6473_v11  ;;  %5706 = vst.msk [vmem:[%s7994_s29 + $0x3f4] sm:$0xf] %vm5452_vm4, %v6601_v50 }
 0x215 PF: > { %s13_s14 = sadd.s32 1, %s7180_s14   ;;  %s9447_s12 = smov %s7176_s13 }
 0x216   : > { %p10_p5 = scmp.ge.s32.totalorder %s13_s14, 39   ;;  %s9448_s13 = smov %s9450_s15 }
 0x218   :  { %12 = sbr.rel (!%p10_p5) target bundleno = 2 (0x2), region = 76 }

</bundles_post_ra>
